<compile_context>
chip_gen: v7x
topology: tpu7x:2x2x1
jax: 0.10.0
libtpu: 0.0.40
codegen_flags: <defaults>
</compile_context>

<pallas_src>
import functools

import jax
import jax.numpy as jnp
from jax.experimental import pallas as pl
from jax.experimental.pallas import tpu as pltpu


# ----------------------------------------------------------------------------
# Kernel 1: ViT self-attention sub-layer (LayerNorm + fused-QKV MHSA + proj)
# ----------------------------------------------------------------------------
def vit_attention_kernel(x_ref, gamma_ref, beta_ref, wqkv_ref, wo_ref, o_ref,
                         *, heads, dim_head, eps):
    # x block: (1, N, D) -> squeeze batch.  LayerNorm statistics kept in f32.
    x = x_ref[0].astype(jnp.float32)                                # (N, D)
    mean = jnp.mean(x, axis=-1, keepdims=True)
    var = jnp.mean((x - mean) ** 2, axis=-1, keepdims=True)
    xn = (x - mean) * jax.lax.rsqrt(var + eps)
    xn = xn * gamma_ref[...] + beta_ref[...]
    xn_b = xn.astype(jnp.bfloat16)                                  # cast once

    inner = heads * dim_head

    # ONE lane-dense fused QKV projection: (N, 768) @ (768, 2304).
    # Full 256-wide MXU utilization, single pipeline fill, no broadcast copy.
    # Softmax scale is already folded into the Q columns (see prepare_*).
    qkv = jnp.dot(xn_b, wqkv_ref[...],
                  preferred_element_type=jnp.float32).astype(jnp.bfloat16)

    def head_major(base):
        # Static per-head views of the packed QKV result -> (heads, N, dim_head)
        # via a cheap leading-axis stack (no 12x broadcast of xn anywhere).
        return jnp.stack(
            [qkv[:, base + h * dim_head: base + (h + 1) * dim_head]
             for h in range(heads)], axis=0)

    q = head_major(0)               # (H, N, d), pre-scaled
    k = head_major(inner)
    v = head_major(2 * inner)

    # Scores: batched over heads, contraction over the trailing dim of both
    # operands (no explicit transpose), f32 MXU accumulation.
    s = jnp.einsum('hnd,hmd->hnm', q, k, preferred_element_type=jnp.float32)
    s = s - jnp.max(s, axis=-1, keepdims=True)
    e = jnp.exp(s)
    attn = (e * pl.reciprocal(jnp.sum(e, axis=-1, keepdims=True), approx=True)
            ).astype(jnp.bfloat16)

    # Context: batched attn @ V.
    ctx = jnp.einsum('hnm,hmd->hnd', attn, v,
                     preferred_element_type=jnp.float32).astype(jnp.bfloat16)

    # Concatenate heads along lanes -> (N, 768), then ONE lane-dense output
    # projection (replaces the (12, N, 768) f32 pre-sum + 11 extra adds).
    ctx_flat = jnp.concatenate([ctx[h] for h in range(heads)], axis=-1)
    y = jnp.dot(ctx_flat, wo_ref[...], preferred_element_type=jnp.float32)
    o_ref[0] = y.astype(o_ref.dtype)


def prepare_vit_attention_params(gamma, beta, w_qkv, w_out, *, heads, dim_head):
    """One-time weight repacking (hoisted out of the per-call forward path).

    w_qkv: (3*inner, D) PyTorch Linear layout; w_out: (D, inner).
    """
    inner = heads * dim_head
    D = w_qkv.shape[1]
    assert w_qkv.shape == (3 * inner, D)
    assert w_out.shape == (D, inner)
    scale = float(dim_head) ** -0.5

    wq, wk, wv = jnp.split(jnp.asarray(w_qkv), 3, axis=0)           # (inner, D)
    wq = wq * scale          # fold attention scale into Q weights (zero runtime cost)
    # Packed (D, 3*inner): columns = [Q heads | K heads | V heads], head-major.
    wqkv_packed = jnp.concatenate([wq, wk, wv], axis=0).T.astype(jnp.bfloat16)
    wo_packed = jnp.asarray(w_out).T.astype(jnp.bfloat16)           # (inner, D)
    gamma2 = jnp.asarray(gamma).reshape(1, D).astype(jnp.float32)
    beta2 = jnp.asarray(beta).reshape(1, D).astype(jnp.float32)
    return gamma2, beta2, wqkv_packed, wo_packed


def vit_attention_forward(x, packed_params, *, heads, dim_head, eps=1e-5):
    """x: (B, N, D); packed_params from prepare_vit_attention_params (run once)."""
    gamma2, beta2, wqkv_packed, wo_packed = packed_params
    B, N, D = x.shape
    inner = heads * dim_head

    kernel = functools.partial(vit_attention_kernel, heads=heads,
                               dim_head=dim_head, eps=eps)
    return pl.pallas_call(
        kernel,
        out_shape=jax.ShapeDtypeStruct((B, N, D), x.dtype),
        grid=(B,),
        in_specs=[
            pl.BlockSpec((1, N, D), lambda b: (b, 0, 0)),       # x (one batch row)
            pl.BlockSpec((1, D), lambda b: (0, 0)),             # LayerNorm gamma
            pl.BlockSpec((1, D), lambda b: (0, 0)),             # LayerNorm beta
            pl.BlockSpec((D, 3 * inner), lambda b: (0, 0)),     # packed Wqkv (768,2304)
            pl.BlockSpec((inner, D), lambda b: (0, 0)),         # packed Wout (768,768)
        ],
        out_specs=pl.BlockSpec((1, N, D), lambda b: (b, 0, 0)),
        compiler_params=pltpu.CompilerParams(
            dimension_semantics=("parallel",),
            # Actual need (double-buffered ~4.7 MB weights + activation blocks
            # + intermediates) << 32 MiB; never request all of v7x's 64 MiB.
            vmem_limit_bytes=32 * 1024 * 1024),
    )(x, gamma2, beta2, wqkv_packed, wo_packed)


# ----------------------------------------------------------------------------
# Kernel 2: ImgEncoder mlp_head — CLS token -> Linear(768, 256) (+bias)
# ----------------------------------------------------------------------------
def cls_head_kernel(cls_ref, w_ref, b_ref, o_ref):
    y = jnp.dot(cls_ref[...].astype(jnp.bfloat16), w_ref[...],
                preferred_element_type=jnp.float32)                 # (B, 256)
    o_ref[...] = (y + b_ref[...]).astype(o_ref.dtype)


def prepare_head_params(w_head, b_head):
    """One-time repack of the mlp_head weights into a lane-dense (D, O) bf16 operand."""
    O, D = w_head.shape
    w_t = jnp.asarray(w_head).T.astype(jnp.bfloat16)                # (D, O)
    b2 = jnp.asarray(b_head).reshape(1, O).astype(jnp.float32)
    return w_t, b2


def mlp_head_forward(last_hidden_state, packed_head):
    """ImgEncoder head: cls = last_hidden_state[:, 0, :]; cls @ W.T + b.

    NOTE: this (B,768)@(768,256) matmul is launch-overhead-bound at small B; it
    is kept as a Pallas kernel for module completeness, but in a production
    stack it would be fused into the final encoder-layer kernel or left to XLA.
    """
    w_t, b2 = packed_head
    B, N, D = last_hidden_state.shape
    O = w_t.shape[1]
    cls = last_hidden_state[:, 0, :]                                # CLS token (B, D)
    return pl.pallas_call(
        cls_head_kernel,
        out_shape=jax.ShapeDtypeStruct((B, O), last_hidden_state.dtype),
        grid=(1,),
        in_specs=[
            pl.BlockSpec((B, D), lambda i: (0, 0)),
            pl.BlockSpec((D, O), lambda i: (0, 0)),
            pl.BlockSpec((1, O), lambda i: (0, 0)),
        ],
        out_specs=pl.BlockSpec((B, O), lambda i: (0, 0)),
    )(cls, w_t, b2)


# ----------------------------------------------------------------------------
# Pure-JAX (f32) references
# ----------------------------------------------------------------------------
def vit_attention_reference(x, gamma, beta, w_qkv, w_out, *, heads, dim_head, eps=1e-5):
    B, N, D = x.shape
    inner = heads * dim_head
    mean = jnp.mean(x, axis=-1, keepdims=True)
    var = jnp.mean((x - mean) ** 2, axis=-1, keepdims=True)
    xn = (x - mean) / jnp.sqrt(var + eps) * gamma + beta
    qkv = xn @ w_qkv.T
    q, k, v = jnp.split(qkv, 3, axis=-1)

    def to_heads(t):                                               # 'b n (h d) -> b h n d'
        return t.reshape(B, N, heads, dim_head).transpose(0, 2, 1, 3)

    q, k, v = map(to_heads, (q, k, v))
    dots = jnp.einsum('bhnd,bhmd->bhnm', q, k) * (dim_head ** -0.5)
    attn = jax.nn.softmax(dots, axis=-1)
    out = jnp.einsum('bhnm,bhmd->bhnd', attn, v)
    out = out.transpose(0, 2, 1, 3).reshape(B, N, inner)
    return out @ w_out.T


if __name__ == "__main__":
    # ViT-base config (google/vit-base-patch16-224): hidden=768, 12 heads x 64.
    # Small sequence length for the demo (real ViT-base uses N=197 tokens).
    B, N = 2, 8
    D, heads, dim_head = 768, 12, 64
    inner = heads * dim_head
    head_out = 256                       # ImgEncoder mlp_head: Linear(768, 256)

    key = jax.random.PRNGKey(0)
    kx, kqkv, kproj, khead = jax.random.split(key, 4)

    hidden = jax.random.normal(kx, (B, N, D), dtype=jnp.float32)   # ViT hidden states
    w_qkv = jax.random.normal(kqkv, (3 * inner, D), dtype=jnp.float32) * 0.02
    w_proj = jax.random.normal(kproj, (D, inner), dtype=jnp.float32) * 0.02
    gamma = jnp.ones((D,), jnp.float32)
    beta = jnp.zeros((D,), jnp.float32)
    w_head = jax.random.normal(khead, (head_out, D), dtype=jnp.float32) * 0.02
    b_head = jnp.zeros((head_out,), jnp.float32)

    # One-time weight repacking (hoisted out of the forward path).
    attn_params = prepare_vit_attention_params(gamma, beta, w_qkv, w_proj,
                                               heads=heads, dim_head=dim_head)
    head_params = prepare_head_params(w_head, b_head)

    # Pallas forward: ViT self-attention sub-layer -> CLS token -> mlp_head
    attn_out = vit_attention_forward(hidden, attn_params,
                                     heads=heads, dim_head=dim_head)
    emb = mlp_head_forward(attn_out, head_params)
    emb = jax.block_until_ready(emb)

    # References (pure f32)
    attn_ref = vit_attention_reference(hidden, gamma, beta, w_qkv, w_proj,
                                       heads=heads, dim_head=dim_head)
    emb_ref = attn_ref[:, 0, :] @ w_head.T + b_head

    assert emb.shape == (B, head_out)
    # bf16 MXU operands + approx-reciprocal softmax -> bf16-level tolerances vs f32 ref
    assert jnp.allclose(attn_out, attn_ref, atol=5e-2, rtol=5e-2), "attention mismatch"
    assert jnp.allclose(emb, emb_ref, atol=5e-2, rtol=5e-2), "mlp_head mismatch"

    print("KERNEL_OK")
</pallas_src>

<mosaic_0001>
module attributes {stable_mosaic.version = 11 : i64} {
  func.func @vit_attention_kernel(%arg0: i32, %arg1: memref<1x8x768xf32, #tpu.memory_space<vmem>>, %arg2: memref<1x768xf32, #tpu.memory_space<vmem>>, %arg3: memref<1x768xf32, #tpu.memory_space<vmem>>, %arg4: memref<768x2304xbf16, #tpu.memory_space<vmem>>, %arg5: memref<768x768xbf16, #tpu.memory_space<vmem>>, %arg6: memref<1x8x768xf32, #tpu.memory_space<vmem>>) attributes {dimension_semantics = [#tpu.dimension_semantics<parallel>], iteration_bounds = array<i64: 2>, scalar_prefetch = 0 : i64, scratch_operands = 0 : i64, tpu.core_type = #tpu.core_type<tc>, window_params = [{transform_indices = @transform_0, window_bounds = array<i64: 1, 8, 768>}, {pipeline_mode = #tpu.pipeline_mode<synchronous>, transform_indices = @transform_1, window_bounds = array<i64: 1, 768>}, {pipeline_mode = #tpu.pipeline_mode<synchronous>, transform_indices = @transform_2, window_bounds = array<i64: 1, 768>}, {pipeline_mode = #tpu.pipeline_mode<synchronous>, transform_indices = @transform_3, window_bounds = array<i64: 768, 2304>}, {pipeline_mode = #tpu.pipeline_mode<synchronous>, transform_indices = @transform_4, window_bounds = array<i64: 768, 768>}, {transform_indices = @transform_5, window_bounds = array<i64: 1, 8, 768>}]} {
    %c0 = arith.constant 0 : index
    %c0_0 = arith.constant 0 : index
    %c0_1 = arith.constant 0 : index
    %0 = vector.load %arg1[%c0, %c0_0, %c0_1] : memref<1x8x768xf32, #tpu.memory_space<vmem>>, vector<1x8x768xf32>
    %1 = vector.shape_cast %0 : vector<1x8x768xf32> to vector<8x768xf32>
    %cst = arith.constant dense<0.000000e+00> : vector<8xf32>
    %2 = vector.multi_reduction <add>, %1, %cst [1] : vector<8x768xf32> to vector<8xf32>
    %3 = vector.shape_cast %2 : vector<8xf32> to vector<8x1xf32>
    %cst_2 = arith.constant 7.680000e+02 : f32
    %4 = vector.broadcast %cst_2 : f32 to vector<8x1xf32>
    %5 = arith.divf %3, %4 : vector<8x1xf32>
    %6 = vector.broadcast %5 : vector<8x1xf32> to vector<8x768xf32>
    %7 = arith.subf %1, %6 : vector<8x768xf32>
    %8 = arith.mulf %7, %7 : vector<8x768xf32>
    %cst_3 = arith.constant dense<0.000000e+00> : vector<8xf32>
    %9 = vector.multi_reduction <add>, %8, %cst_3 [1] : vector<8x768xf32> to vector<8xf32>
    %10 = vector.shape_cast %9 : vector<8xf32> to vector<8x1xf32>
    %cst_4 = arith.constant 7.680000e+02 : f32
    %11 = vector.broadcast %cst_4 : f32 to vector<8x1xf32>
    %12 = arith.divf %10, %11 : vector<8x1xf32>
    %13 = vector.broadcast %5 : vector<8x1xf32> to vector<8x768xf32>
    %14 = arith.subf %1, %13 : vector<8x768xf32>
    %cst_5 = arith.constant 9.99999974E-6 : f32
    %15 = vector.broadcast %cst_5 : f32 to vector<8x1xf32>
    %16 = arith.addf %12, %15 : vector<8x1xf32>
    %17 = math.rsqrt %16 : vector<8x1xf32>
    %18 = vector.broadcast %17 : vector<8x1xf32> to vector<8x768xf32>
    %19 = arith.mulf %14, %18 : vector<8x768xf32>
    %c0_6 = arith.constant 0 : index
    %c0_7 = arith.constant 0 : index
    %20 = vector.load %arg2[%c0_6, %c0_7] : memref<1x768xf32, #tpu.memory_space<vmem>>, vector<1x768xf32>
    %21 = vector.broadcast %20 : vector<1x768xf32> to vector<8x768xf32>
    %22 = arith.mulf %19, %21 : vector<8x768xf32>
    %c0_8 = arith.constant 0 : index
    %c0_9 = arith.constant 0 : index
    %23 = vector.load %arg3[%c0_8, %c0_9] : memref<1x768xf32, #tpu.memory_space<vmem>>, vector<1x768xf32>
    %24 = vector.broadcast %23 : vector<1x768xf32> to vector<8x768xf32>
    %25 = arith.addf %22, %24 : vector<8x768xf32>
    %26 = arith.truncf %25 : vector<8x768xf32> to vector<8x768xbf16>
    %c0_10 = arith.constant 0 : index
    %c0_11 = arith.constant 0 : index
    %27 = vector.load %arg4[%c0_10, %c0_11] : memref<768x2304xbf16, #tpu.memory_space<vmem>>, vector<768x2304xbf16>
    %cst_12 = arith.constant dense<0.000000e+00> : vector<8x2304xf32>
    %28 = tpu.matmul %26, %27, %cst_12 {dimension_numbers = #tpu.dot_dimension_numbers<[1], [0], [0], [1], [0, 0, 1, 1], [], []>} : vector<8x768xbf16>, vector<768x2304xbf16>, vector<8x2304xf32> -> vector<8x2304xf32>
    %29 = arith.truncf %28 : vector<8x2304xf32> to vector<8x2304xbf16>
    %30 = vector.extract_strided_slice %29 {offsets = [0, 0], sizes = [8, 64], strides = [1, 1]} : vector<8x2304xbf16> to vector<8x64xbf16>
    %31 = vector.extract_strided_slice %29 {offsets = [0, 64], sizes = [8, 64], strides = [1, 1]} : vector<8x2304xbf16> to vector<8x64xbf16>
    %32 = vector.extract_strided_slice %29 {offsets = [0, 128], sizes = [8, 64], strides = [1, 1]} : vector<8x2304xbf16> to vector<8x64xbf16>
    %33 = vector.extract_strided_slice %29 {offsets = [0, 192], sizes = [8, 64], strides = [1, 1]} : vector<8x2304xbf16> to vector<8x64xbf16>
    %34 = vector.extract_strided_slice %29 {offsets = [0, 256], sizes = [8, 64], strides = [1, 1]} : vector<8x2304xbf16> to vector<8x64xbf16>
    %35 = vector.extract_strided_slice %29 {offsets = [0, 320], sizes = [8, 64], strides = [1, 1]} : vector<8x2304xbf16> to vector<8x64xbf16>
    %36 = vector.extract_strided_slice %29 {offsets = [0, 384], sizes = [8, 64], strides = [1, 1]} : vector<8x2304xbf16> to vector<8x64xbf16>
    %37 = vector.extract_strided_slice %29 {offsets = [0, 448], sizes = [8, 64], strides = [1, 1]} : vector<8x2304xbf16> to vector<8x64xbf16>
    %38 = vector.extract_strided_slice %29 {offsets = [0, 512], sizes = [8, 64], strides = [1, 1]} : vector<8x2304xbf16> to vector<8x64xbf16>
    %39 = vector.extract_strided_slice %29 {offsets = [0, 576], sizes = [8, 64], strides = [1, 1]} : vector<8x2304xbf16> to vector<8x64xbf16>
    %40 = vector.extract_strided_slice %29 {offsets = [0, 640], sizes = [8, 64], strides = [1, 1]} : vector<8x2304xbf16> to vector<8x64xbf16>
    %41 = vector.extract_strided_slice %29 {offsets = [0, 704], sizes = [8, 64], strides = [1, 1]} : vector<8x2304xbf16> to vector<8x64xbf16>
    %42 = vector.shape_cast %30 : vector<8x64xbf16> to vector<1x8x64xbf16>
    %43 = vector.shape_cast %31 : vector<8x64xbf16> to vector<1x8x64xbf16>
    %44 = vector.shape_cast %32 : vector<8x64xbf16> to vector<1x8x64xbf16>
    %45 = vector.shape_cast %33 : vector<8x64xbf16> to vector<1x8x64xbf16>
    %46 = vector.shape_cast %34 : vector<8x64xbf16> to vector<1x8x64xbf16>
    %47 = vector.shape_cast %35 : vector<8x64xbf16> to vector<1x8x64xbf16>
    %48 = vector.shape_cast %36 : vector<8x64xbf16> to vector<1x8x64xbf16>
    %49 = vector.shape_cast %37 : vector<8x64xbf16> to vector<1x8x64xbf16>
    %50 = vector.shape_cast %38 : vector<8x64xbf16> to vector<1x8x64xbf16>
    %51 = vector.shape_cast %39 : vector<8x64xbf16> to vector<1x8x64xbf16>
    %52 = vector.shape_cast %40 : vector<8x64xbf16> to vector<1x8x64xbf16>
    %53 = vector.shape_cast %41 : vector<8x64xbf16> to vector<1x8x64xbf16>
    %54 = tpu.concatenate %42, %43, %44, %45, %46, %47, %48, %49, %50, %51, %52, %53 in 0 : vector<1x8x64xbf16>, vector<1x8x64xbf16>, vector<1x8x64xbf16>, vector<1x8x64xbf16>, vector<1x8x64xbf16>, vector<1x8x64xbf16>, vector<1x8x64xbf16>, vector<1x8x64xbf16>, vector<1x8x64xbf16>, vector<1x8x64xbf16>, vector<1x8x64xbf16>, vector<1x8x64xbf16> -> vector<12x8x64xbf16>
    %55 = vector.extract_strided_slice %29 {offsets = [0, 768], sizes = [8, 64], strides = [1, 1]} : vector<8x2304xbf16> to vector<8x64xbf16>
    %56 = vector.extract_strided_slice %29 {offsets = [0, 832], sizes = [8, 64], strides = [1, 1]} : vector<8x2304xbf16> to vector<8x64xbf16>
    %57 = vector.extract_strided_slice %29 {offsets = [0, 896], sizes = [8, 64], strides = [1, 1]} : vector<8x2304xbf16> to vector<8x64xbf16>
    %58 = vector.extract_strided_slice %29 {offsets = [0, 960], sizes = [8, 64], strides = [1, 1]} : vector<8x2304xbf16> to vector<8x64xbf16>
    %59 = vector.extract_strided_slice %29 {offsets = [0, 1024], sizes = [8, 64], strides = [1, 1]} : vector<8x2304xbf16> to vector<8x64xbf16>
    %60 = vector.extract_strided_slice %29 {offsets = [0, 1088], sizes = [8, 64], strides = [1, 1]} : vector<8x2304xbf16> to vector<8x64xbf16>
    %61 = vector.extract_strided_slice %29 {offsets = [0, 1152], sizes = [8, 64], strides = [1, 1]} : vector<8x2304xbf16> to vector<8x64xbf16>
    %62 = vector.extract_strided_slice %29 {offsets = [0, 1216], sizes = [8, 64], strides = [1, 1]} : vector<8x2304xbf16> to vector<8x64xbf16>
    %63 = vector.extract_strided_slice %29 {offsets = [0, 1280], sizes = [8, 64], strides = [1, 1]} : vector<8x2304xbf16> to vector<8x64xbf16>
    %64 = vector.extract_strided_slice %29 {offsets = [0, 1344], sizes = [8, 64], strides = [1, 1]} : vector<8x2304xbf16> to vector<8x64xbf16>
    %65 = vector.extract_strided_slice %29 {offsets = [0, 1408], sizes = [8, 64], strides = [1, 1]} : vector<8x2304xbf16> to vector<8x64xbf16>
    %66 = vector.extract_strided_slice %29 {offsets = [0, 1472], sizes = [8, 64], strides = [1, 1]} : vector<8x2304xbf16> to vector<8x64xbf16>
    %67 = vector.shape_cast %55 : vector<8x64xbf16> to vector<1x8x64xbf16>
    %68 = vector.shape_cast %56 : vector<8x64xbf16> to vector<1x8x64xbf16>
    %69 = vector.shape_cast %57 : vector<8x64xbf16> to vector<1x8x64xbf16>
    %70 = vector.shape_cast %58 : vector<8x64xbf16> to vector<1x8x64xbf16>
    %71 = vector.shape_cast %59 : vector<8x64xbf16> to vector<1x8x64xbf16>
    %72 = vector.shape_cast %60 : vector<8x64xbf16> to vector<1x8x64xbf16>
    %73 = vector.shape_cast %61 : vector<8x64xbf16> to vector<1x8x64xbf16>
    %74 = vector.shape_cast %62 : vector<8x64xbf16> to vector<1x8x64xbf16>
    %75 = vector.shape_cast %63 : vector<8x64xbf16> to vector<1x8x64xbf16>
    %76 = vector.shape_cast %64 : vector<8x64xbf16> to vector<1x8x64xbf16>
    %77 = vector.shape_cast %65 : vector<8x64xbf16> to vector<1x8x64xbf16>
    %78 = vector.shape_cast %66 : vector<8x64xbf16> to vector<1x8x64xbf16>
    %79 = tpu.concatenate %67, %68, %69, %70, %71, %72, %73, %74, %75, %76, %77, %78 in 0 : vector<1x8x64xbf16>, vector<1x8x64xbf16>, vector<1x8x64xbf16>, vector<1x8x64xbf16>, vector<1x8x64xbf16>, vector<1x8x64xbf16>, vector<1x8x64xbf16>, vector<1x8x64xbf16>, vector<1x8x64xbf16>, vector<1x8x64xbf16>, vector<1x8x64xbf16>, vector<1x8x64xbf16> -> vector<12x8x64xbf16>
    %80 = vector.extract_strided_slice %29 {offsets = [0, 1536], sizes = [8, 64], strides = [1, 1]} : vector<8x2304xbf16> to vector<8x64xbf16>
    %81 = vector.extract_strided_slice %29 {offsets = [0, 1600], sizes = [8, 64], strides = [1, 1]} : vector<8x2304xbf16> to vector<8x64xbf16>
    %82 = vector.extract_strided_slice %29 {offsets = [0, 1664], sizes = [8, 64], strides = [1, 1]} : vector<8x2304xbf16> to vector<8x64xbf16>
    %83 = vector.extract_strided_slice %29 {offsets = [0, 1728], sizes = [8, 64], strides = [1, 1]} : vector<8x2304xbf16> to vector<8x64xbf16>
    %84 = vector.extract_strided_slice %29 {offsets = [0, 1792], sizes = [8, 64], strides = [1, 1]} : vector<8x2304xbf16> to vector<8x64xbf16>
    %85 = vector.extract_strided_slice %29 {offsets = [0, 1856], sizes = [8, 64], strides = [1, 1]} : vector<8x2304xbf16> to vector<8x64xbf16>
    %86 = vector.extract_strided_slice %29 {offsets = [0, 1920], sizes = [8, 64], strides = [1, 1]} : vector<8x2304xbf16> to vector<8x64xbf16>
    %87 = vector.extract_strided_slice %29 {offsets = [0, 1984], sizes = [8, 64], strides = [1, 1]} : vector<8x2304xbf16> to vector<8x64xbf16>
    %88 = vector.extract_strided_slice %29 {offsets = [0, 2048], sizes = [8, 64], strides = [1, 1]} : vector<8x2304xbf16> to vector<8x64xbf16>
    %89 = vector.extract_strided_slice %29 {offsets = [0, 2112], sizes = [8, 64], strides = [1, 1]} : vector<8x2304xbf16> to vector<8x64xbf16>
    %90 = vector.extract_strided_slice %29 {offsets = [0, 2176], sizes = [8, 64], strides = [1, 1]} : vector<8x2304xbf16> to vector<8x64xbf16>
    %91 = vector.extract_strided_slice %29 {offsets = [0, 2240], sizes = [8, 64], strides = [1, 1]} : vector<8x2304xbf16> to vector<8x64xbf16>
    %92 = vector.shape_cast %80 : vector<8x64xbf16> to vector<1x8x64xbf16>
    %93 = vector.shape_cast %81 : vector<8x64xbf16> to vector<1x8x64xbf16>
    %94 = vector.shape_cast %82 : vector<8x64xbf16> to vector<1x8x64xbf16>
    %95 = vector.shape_cast %83 : vector<8x64xbf16> to vector<1x8x64xbf16>
    %96 = vector.shape_cast %84 : vector<8x64xbf16> to vector<1x8x64xbf16>
    %97 = vector.shape_cast %85 : vector<8x64xbf16> to vector<1x8x64xbf16>
    %98 = vector.shape_cast %86 : vector<8x64xbf16> to vector<1x8x64xbf16>
    %99 = vector.shape_cast %87 : vector<8x64xbf16> to vector<1x8x64xbf16>
    %100 = vector.shape_cast %88 : vector<8x64xbf16> to vector<1x8x64xbf16>
    %101 = vector.shape_cast %89 : vector<8x64xbf16> to vector<1x8x64xbf16>
    %102 = vector.shape_cast %90 : vector<8x64xbf16> to vector<1x8x64xbf16>
    %103 = vector.shape_cast %91 : vector<8x64xbf16> to vector<1x8x64xbf16>
    %104 = tpu.concatenate %92, %93, %94, %95, %96, %97, %98, %99, %100, %101, %102, %103 in 0 : vector<1x8x64xbf16>, vector<1x8x64xbf16>, vector<1x8x64xbf16>, vector<1x8x64xbf16>, vector<1x8x64xbf16>, vector<1x8x64xbf16>, vector<1x8x64xbf16>, vector<1x8x64xbf16>, vector<1x8x64xbf16>, vector<1x8x64xbf16>, vector<1x8x64xbf16>, vector<1x8x64xbf16> -> vector<12x8x64xbf16>
    "tpu.trace_start"() <{level = 10 : i32, message = "hnd,hmd->hnm"}> : () -> ()
    %cst_13 = arith.constant dense<0.000000e+00> : vector<12x8x8xf32>
    %105 = tpu.matmul %54, %79, %cst_13 {dimension_numbers = #tpu.dot_dimension_numbers<[2], [2], [1], [1], [0, 0, 0, 1, 1, 1], [0], [0]>} : vector<12x8x64xbf16>, vector<12x8x64xbf16>, vector<12x8x8xf32> -> vector<12x8x8xf32>
    "tpu.trace_stop"() : () -> ()
    %cst_14 = arith.constant dense<0xFF800000> : vector<12x8xf32>
    %106 = vector.multi_reduction <maximumf>, %105, %cst_14 [2] : vector<12x8x8xf32> to vector<12x8xf32>
    %107 = vector.shape_cast %106 : vector<12x8xf32> to vector<12x8x1xf32>
    %108 = vector.broadcast %107 : vector<12x8x1xf32> to vector<12x8x8xf32>
    %109 = arith.subf %105, %108 : vector<12x8x8xf32>
    %110 = math.exp %109 : vector<12x8x8xf32>
    %cst_15 = arith.constant dense<0.000000e+00> : vector<12x8xf32>
    %111 = vector.multi_reduction <add>, %110, %cst_15 [2] : vector<12x8x8xf32> to vector<12x8xf32>
    %112 = vector.shape_cast %111 : vector<12x8xf32> to vector<12x8x1xf32>
    %113 = tpu.reciprocal %112 {approx = true} : vector<12x8x1xf32> -> vector<12x8x1xf32>
    %114 = vector.broadcast %113 : vector<12x8x1xf32> to vector<12x8x8xf32>
    %115 = arith.mulf %110, %114 : vector<12x8x8xf32>
    %116 = arith.truncf %115 : vector<12x8x8xf32> to vector<12x8x8xbf16>
    "tpu.trace_start"() <{level = 10 : i32, message = "hnm,hmd->hnd"}> : () -> ()
    %cst_16 = arith.constant dense<0.000000e+00> : vector<12x8x64xf32>
    %117 = tpu.matmul %116, %104, %cst_16 {dimension_numbers = #tpu.dot_dimension_numbers<[2], [1], [1], [2], [0, 0, 0, 1, 1, 2], [0], [0]>} : vector<12x8x8xbf16>, vector<12x8x64xbf16>, vector<12x8x64xf32> -> vector<12x8x64xf32>
    "tpu.trace_stop"() : () -> ()
    %118 = arith.truncf %117 : vector<12x8x64xf32> to vector<12x8x64xbf16>
    %119 = vector.extract_strided_slice %118 {offsets = [0, 0, 0], sizes = [1, 8, 64], strides = [1, 1, 1]} : vector<12x8x64xbf16> to vector<1x8x64xbf16>
    %120 = vector.shape_cast %119 : vector<1x8x64xbf16> to vector<8x64xbf16>
    %121 = vector.extract_strided_slice %118 {offsets = [1, 0, 0], sizes = [1, 8, 64], strides = [1, 1, 1]} : vector<12x8x64xbf16> to vector<1x8x64xbf16>
    %122 = vector.shape_cast %121 : vector<1x8x64xbf16> to vector<8x64xbf16>
    %123 = vector.extract_strided_slice %118 {offsets = [2, 0, 0], sizes = [1, 8, 64], strides = [1, 1, 1]} : vector<12x8x64xbf16> to vector<1x8x64xbf16>
    %124 = vector.shape_cast %123 : vector<1x8x64xbf16> to vector<8x64xbf16>
    %125 = vector.extract_strided_slice %118 {offsets = [3, 0, 0], sizes = [1, 8, 64], strides = [1, 1, 1]} : vector<12x8x64xbf16> to vector<1x8x64xbf16>
    %126 = vector.shape_cast %125 : vector<1x8x64xbf16> to vector<8x64xbf16>
    %127 = vector.extract_strided_slice %118 {offsets = [4, 0, 0], sizes = [1, 8, 64], strides = [1, 1, 1]} : vector<12x8x64xbf16> to vector<1x8x64xbf16>
    %128 = vector.shape_cast %127 : vector<1x8x64xbf16> to vector<8x64xbf16>
    %129 = vector.extract_strided_slice %118 {offsets = [5, 0, 0], sizes = [1, 8, 64], strides = [1, 1, 1]} : vector<12x8x64xbf16> to vector<1x8x64xbf16>
    %130 = vector.shape_cast %129 : vector<1x8x64xbf16> to vector<8x64xbf16>
    %131 = vector.extract_strided_slice %118 {offsets = [6, 0, 0], sizes = [1, 8, 64], strides = [1, 1, 1]} : vector<12x8x64xbf16> to vector<1x8x64xbf16>
    %132 = vector.shape_cast %131 : vector<1x8x64xbf16> to vector<8x64xbf16>
    %133 = vector.extract_strided_slice %118 {offsets = [7, 0, 0], sizes = [1, 8, 64], strides = [1, 1, 1]} : vector<12x8x64xbf16> to vector<1x8x64xbf16>
    %134 = vector.shape_cast %133 : vector<1x8x64xbf16> to vector<8x64xbf16>
    %135 = vector.extract_strided_slice %118 {offsets = [8, 0, 0], sizes = [1, 8, 64], strides = [1, 1, 1]} : vector<12x8x64xbf16> to vector<1x8x64xbf16>
    %136 = vector.shape_cast %135 : vector<1x8x64xbf16> to vector<8x64xbf16>
    %137 = vector.extract_strided_slice %118 {offsets = [9, 0, 0], sizes = [1, 8, 64], strides = [1, 1, 1]} : vector<12x8x64xbf16> to vector<1x8x64xbf16>
    %138 = vector.shape_cast %137 : vector<1x8x64xbf16> to vector<8x64xbf16>
    %139 = vector.extract_strided_slice %118 {offsets = [10, 0, 0], sizes = [1, 8, 64], strides = [1, 1, 1]} : vector<12x8x64xbf16> to vector<1x8x64xbf16>
    %140 = vector.shape_cast %139 : vector<1x8x64xbf16> to vector<8x64xbf16>
    %141 = vector.extract_strided_slice %118 {offsets = [11, 0, 0], sizes = [1, 8, 64], strides = [1, 1, 1]} : vector<12x8x64xbf16> to vector<1x8x64xbf16>
    %142 = vector.shape_cast %141 : vector<1x8x64xbf16> to vector<8x64xbf16>
    %143 = tpu.concatenate %120, %122, %124, %126, %128, %130, %132, %134, %136, %138, %140, %142 in 1 : vector<8x64xbf16>, vector<8x64xbf16>, vector<8x64xbf16>, vector<8x64xbf16>, vector<8x64xbf16>, vector<8x64xbf16>, vector<8x64xbf16>, vector<8x64xbf16>, vector<8x64xbf16>, vector<8x64xbf16>, vector<8x64xbf16>, vector<8x64xbf16> -> vector<8x768xbf16>
    %c0_17 = arith.constant 0 : index
    %c0_18 = arith.constant 0 : index
    %144 = vector.load %arg5[%c0_17, %c0_18] : memref<768x768xbf16, #tpu.memory_space<vmem>>, vector<768x768xbf16>
    %cst_19 = arith.constant dense<0.000000e+00> : vector<8x768xf32>
    %145 = tpu.matmul %143, %144, %cst_19 {dimension_numbers = #tpu.dot_dimension_numbers<[1], [0], [0], [1], [0, 0, 1, 1], [], []>} : vector<8x768xbf16>, vector<768x768xbf16>, vector<8x768xf32> -> vector<8x768xf32>
    %c0_20 = arith.constant 0 : index
    %c0_21 = arith.constant 0 : index
    %c0_22 = arith.constant 0 : index
    %146 = vector.load %arg6[%c0_20, %c0_21, %c0_22] : memref<1x8x768xf32, #tpu.memory_space<vmem>>, vector<1x8x768xf32>
    %147 = vector.shape_cast %146 : vector<1x8x768xf32> to vector<8x768xf32>
    %148 = vector.shape_cast %145 : vector<8x768xf32> to vector<1x8x768xf32>
    tpu.vector_store %arg6[%c0_20, %c0_21, %c0_22], %148 {strides = array<i32>} : memref<1x8x768xf32, #tpu.memory_space<vmem>>, vector<1x8x768xf32>,
    return
  }
  func.func @transform_0(%arg0: i32) -> (i32, i32, i32) {
    %c0_i32 = arith.constant 0 : i32
    %c0_i32_0 = arith.constant 0 : i32
    %c0_i32_1 = arith.constant 0 : i32
    return %arg0, %c0_i32, %c0_i32_0 : i32, i32, i32
  }
  func.func @transform_1(%arg0: i32) -> (i32, i32) {
    %c0_i32 = arith.constant 0 : i32
    %c0_i32_0 = arith.constant 0 : i32
    %c0_i32_1 = arith.constant 0 : i32
    return %c0_i32, %c0_i32_0 : i32, i32
  }
  func.func @transform_2(%arg0: i32) -> (i32, i32) {
    %c0_i32 = arith.constant 0 : i32
    %c0_i32_0 = arith.constant 0 : i32
    %c0_i32_1 = arith.constant 0 : i32
    return %c0_i32, %c0_i32_0 : i32, i32
  }
  func.func @transform_3(%arg0: i32) -> (i32, i32) {
    %c0_i32 = arith.constant 0 : i32
    %c0_i32_0 = arith.constant 0 : i32
    %c0_i32_1 = arith.constant 0 : i32
    return %c0_i32, %c0_i32_0 : i32, i32
  }
  func.func @transform_4(%arg0: i32) -> (i32, i32) {
    %c0_i32 = arith.constant 0 : i32
    %c0_i32_0 = arith.constant 0 : i32
    %c0_i32_1 = arith.constant 0 : i32
    return %c0_i32, %c0_i32_0 : i32, i32
  }
  func.func @transform_5(%arg0: i32) -> (i32, i32, i32) {
    %c0_i32 = arith.constant 0 : i32
    %c0_i32_0 = arith.constant 0 : i32
    %c0_i32_1 = arith.constant 0 : i32
    return %arg0, %c0_i32, %c0_i32_0 : i32, i32, i32
  }
}

</mosaic_0001>

<bundles_post_ra>
// kernel: tpu_custom_call.1
= control target key start
LH: loop header
LB: loop body
LE: loop exit
PB: predicated region body
PF: predicated region fallthrough
CT: control target
= control target key end

     0   :  { %10 = vsyncpa [#allocation3], 0  ;;  %s14759_s0 = inlined_call_operand.hbm [shape: f32[2,8,768], index: 0, kind: input, shape index: {}]   ;;  %s14760_s1 = inlined_call_operand.hbm [shape: f32[1,768], index: 1, kind: input, shape index: {}]   ;;  %s14761_s2 = inlined_call_operand.hbm [shape: f32[1,768], index: 2, kind: input, shape index: {}]   ;;  %s14762_s3 = inlined_call_operand.hbm [shape: bf16[768,2304], index: 3, kind: input, shape index: {}]   ;;  %s14763_s4 = inlined_call_operand.hbm [shape: bf16[768,768], index: 4, kind: input, shape index: {}]   ;;  %s14764_s5 = inlined_call_operand.hbm [shape: f32[2,8,768], index: 5, kind: output, shape index: {}]  }
   0x1   :  { %12 = vsyncpa [#allocation3 + $0x1], 0 }
   0x2   :  { %13 = vsyncpa [#allocation6], 0 }
   0x3   :  { %14 = vsyncpa [#allocation9], 0 }
   0x4   :  { %15 = vsyncpa [#allocation4], 0 }
   0x5   :  { %17 = vsyncpa [#allocation4 + $0x1], 0  ;;  %s13936_s18 = smov 0   ;;  %s13938_s19 = smov 0  }
   0x6   :  { %s13940_s20 = smov 0   ;;  %s13942_s21 = smov 0  }
   0x7 LB: > { %s13893_s22 = smov [#allocation5]   ;;  %s13957_s24 = sadd.s32 4294967295, %s13891_s21   ;;  %s13891_s21 = sphi %s13942_s21, %s14787_s21   ;;  %s13887_s20 = sphi %s13940_s20, %s14786_s20   ;;  %s13883_s19 = sphi %s13938_s19, %s14785_s19   ;;  %s13879_s18 = sphi %s13936_s18, %s14784_s18  }
   0x8   : > { %s177_s23 = sshll.u32 %s13893_s22, 4  ;;  %p10316_p0 = scmp.ge.s32.totalorder %s13891_s21, 1  ;;  %s178_s23 = int_to_ptr.vmem [resolvable:$true] %s177_s23 }
   0x9   : > { %p14765_p1 = scmp.eq.s32.totalorder %s13957_s24, 0  ;;  %p164_p2 = scmp.lt.s32.totalorder %s13891_s21, 3 }
   0xa   : > { %s13894_s26 = smov [#allocation8]   ;;  %s13895_s29 = smov [#allocation7]  }
   0xb   : > { %p13962_p3 = pnand %p10316_p0, %p164_p2  ;;  %s198_s27 = sshll.u32 %s13894_s26, 4  ;;  %s13969_s27 = int_to_ptr.vmem [resolvable:$true] %s198_s27 }
   0xc   : > { %s188_s30 = sshll.u32 %s13895_s29, 4  ;;  %s13675_s8 = scalar_lea.hbm %s14760_s1, 96  ;;  %s13977_s30 = int_to_ptr.vmem [resolvable:$true] %s188_s30 }
   0xd   : > { %s14768_s25 = scalar_select %p13962_p3, 1, 0 }
   0xe   : > { %p11817_p5 = pneg %p13962_p3  ;;  %p13676_p7 = scmp.ne.s32.totalorder %s14760_s1, %s13675_s8 }
   0xf   : > { %p13682_p11 = scmp.lt.u32.totalorder %s13675_s8, %s14760_s1 }
  0x10   : > { %p13973_p6 = pnand %p11817_p5, %p14765_p1 }
  0x12   : > { %p13987_p8 = pneg %p13973_p6 }
  0x14   : > { %p13678_p9 = pnand %p13987_p8, %p13676_p7 }
  0x16   : > { %p13679_p10 = pneg %p13678_p9 }
  0x18   : > { %p13684_p12 = pnand %p13682_p11, %p13679_p10 }
  0x1a   : > { %13687 = shalt.err (!%p13684_p12)
}
  0x1b   : > { %s13688_s14 = scalar_lea.vmem %s178_s23, 96  ;;  %p13696_p5 = scmp.lt.s32.totalorder %s178_s23, %s178_s23 }
  0x1c   : > { %p13689_p13 = scmp.ne.s32.totalorder %s178_s23, %s13688_s14  ;;  %p13697_p4 = scmp.lt.s32.totalorder %s13688_s14, %s13688_s14 }
  0x1e   : > { %p13691_p0 = pnand %p13689_p13, %p13987_p8  ;;  %p13698_p1 = por %p13697_p4, %p13696_p5 }
  0x20   : > { %p13692_p2 = pneg %p13691_p0 }
  0x22   : > { %p13699_p3 = pnand %p13698_p1, %p13692_p2 }
  0x24   : > { %13702 = shalt.err (!%p13699_p3)
}
  0x25   : > { %11820 = dma.hbm_to_vmem [thread:$0]  (!%p13973_p6), %s14760_s1, 96, %s178_s23, [#allocation6]  }
  0x26   : > { %s13703_s26 = scalar_lea.hbm %s14762_s3, 110592 }
  0x27   : > { %p13704_p7 = scmp.ne.s32.totalorder %s14762_s3, %s13703_s26  ;;  %p13710_p1 = scmp.lt.u32.totalorder %s13703_s26, %s14762_s3 }
  0x29   : > { %p13706_p9 = pnand %p13704_p7, %p13987_p8 }
  0x2b   : > { %p13707_p4 = pneg %p13706_p9 }
  0x2d   : > { %p13712_p3 = pnand %p13710_p1, %p13707_p4 }
  0x2f   : > { %13715 = shalt.err (!%p13712_p3)
}
  0x30   : > { %s13716_s23 = scalar_lea.vmem %s13969_s27, 110592  ;;  %p13724_p13 = scmp.lt.s32.totalorder %s13969_s27, %s13969_s27 }
  0x31   : > { %p13717_p10 = scmp.ne.s32.totalorder %s13969_s27, %s13716_s23  ;;  %p13725_p0 = scmp.lt.s32.totalorder %s13716_s23, %s13716_s23 }
  0x33   : > { %p13719_p11 = pnand %p13717_p10, %p13987_p8  ;;  %p13726_p2 = por %p13725_p0, %p13724_p13 }
  0x35   : > { %p13720_p12 = pneg %p13719_p11 }
  0x37   : > { %p13727_p5 = pnand %p13726_p2, %p13720_p12 }
  0x39   : > { %13730 = shalt.err (!%p13727_p5)
}
  0x3a   : > { %s13896_s9 = smov 1152   ;;  %s13897_s10 = smov 72  }
  0x3b   : > { %11826 = dma.hbm_to_vmem [thread:$0]  (!%p13973_p6), %s14762_s3, 110592, %s13969_s27, [#allocation9], %s13896_s9, %s13896_s9, %s13897_s10  }
  0x3c   : > { %s13731_s16 = scalar_lea.hbm %s14761_s2, 96 }
  0x3d   : > { %p13732_p7 = scmp.ne.s32.totalorder %s14761_s2, %s13731_s16  ;;  %p13738_p1 = scmp.lt.u32.totalorder %s13731_s16, %s14761_s2 }
  0x3f   : > { %p13734_p9 = pnand %p13732_p7, %p13987_p8 }
  0x41   : > { %p13735_p4 = pneg %p13734_p9 }
  0x43   : > { %p13740_p3 = pnand %p13738_p1, %p13735_p4 }
  0x45   : > { %13743 = shalt.err (!%p13740_p3)
}
  0x46   : > { %s13744_s27 = scalar_lea.vmem %s13977_s30, 96  ;;  %p13752_p13 = scmp.lt.s32.totalorder %s13977_s30, %s13977_s30 }
  0x47   : > { %p13745_p10 = scmp.ne.s32.totalorder %s13977_s30, %s13744_s27  ;;  %p13753_p0 = scmp.lt.s32.totalorder %s13744_s27, %s13744_s27 }
  0x49   : > { %p13747_p11 = pnand %p13745_p10, %p13987_p8  ;;  %p13754_p2 = por %p13753_p0, %p13752_p13 }
  0x4b   : > { %p13748_p12 = pneg %p13747_p11 }
  0x4d   : > { %p13755_p5 = pnand %p13754_p2, %p13748_p12 }
  0x4f   : > { %13758 = shalt.err (!%p13755_p5)
}
  0x50   : > { %11823 = dma.hbm_to_vmem [thread:$0]  (!%p13973_p6), %s14761_s2, 96, %s13977_s30, [#allocation6]  }
  0x51   : > { %s13898_s8 = smov [#allocation10]   ;;  %s13759_s12 = scalar_lea.hbm %s14763_s4, 36864 }
  0x52   : > { %s211_s23 = sshll.u32 %s13898_s8, 4  ;;  %p13760_p7 = scmp.ne.s32.totalorder %s14763_s4, %s13759_s12  ;;  %s212_s23 = int_to_ptr.vmem [resolvable:$true] %s211_s23 }
  0x53   : > { %p13766_p1 = scmp.lt.u32.totalorder %s13759_s12, %s14763_s4 }
  0x54   : > { %p13762_p9 = pnand %p13760_p7, %p13987_p8 }
  0x56   : > { %p13763_p4 = pneg %p13762_p9 }
  0x58   : > { %p13768_p3 = pnand %p13766_p1, %p13763_p4 }
  0x5a   : > { %13771 = shalt.err (!%p13768_p3)
}
  0x5b   : > { %s13772_s30 = scalar_lea.vmem %s212_s23, 36864  ;;  %p13780_p13 = scmp.lt.s32.totalorder %s212_s23, %s212_s23 }
  0x5c   : > { %p13773_p10 = scmp.ne.s32.totalorder %s212_s23, %s13772_s30  ;;  %p13781_p0 = scmp.lt.s32.totalorder %s13772_s30, %s13772_s30 }
  0x5e   : > { %p13775_p11 = pnand %p13773_p10, %p13987_p8  ;;  %p13782_p2 = por %p13781_p0, %p13780_p13 }
  0x60   : > { %p13776_p12 = pneg %p13775_p11 }
  0x62   : > { %p13783_p5 = pnand %p13782_p2, %p13776_p12 }
  0x64   : > { %13786 = shalt.err (!%p13783_p5)
}
  0x65   : > { %s13899_s17 = smov 384   ;;  %s13900_s11 = smov 24  }
  0x66   : > { %11829 = dma.hbm_to_vmem [thread:$0]  (!%p13973_p6), %s14763_s4, 36864, %s212_s23, [#allocation9], %s13899_s17, %s13899_s17, %s13900_s11  }
  0x67   : > { %s10315_s29 = sadd.s32 4294967294, %s13891_s21   ;;  %s14069_s27 = sadd.s32 1, %s13891_s21  }
  0x68   : > { %s27_s6 = ssub.s32 %s13891_s21, %s14069_s27  ;;  %s30_s7 = sadd.s32 1, %s13887_s20 }
  0x69   : > { %p28_p8 = scmp.eq.s32.totalorder %s27_s6, 0  ;;  %p37_p7 = scmp.ne.s32.totalorder %s13887_s20, %s13883_s19 }
  0x6a   : > { %p38_p9 = scmp.eq.s32.totalorder %s13891_s21, 0  ;;  %p43_p4 = scmp.ne.s32.totalorder %s13883_s19, %s13879_s18 }
  0x6b   : > { %s14080_s8 = scalar_select %p28_p8, %s13887_s20, %s30_s7  }
  0x6c   : > { %p39_p1 = por %p38_p9, %p37_p7  ;;  %p14771_p3 = scmp.eq.s32.totalorder %s13957_s24, 0 }
  0x6d   : > { %p151_p6 = scmp.eq.s32.totalorder %s13957_s24, 1  ;;  %p157_p11 = scmp.eq.s32.totalorder %s10315_s29, 1 }
  0x6e   : > { %p14084_p10 = por %p14771_p3, %p43_p4  ;;  %p11842_p12 = scmp.lt.s32.totalorder %s13891_s21, 2 }
  0x6f   : > { %s225_s23 = sand.u32 1, %s13887_s20   ;;  %p14091_p13 = por %p151_p6, %p37_p7 }
  0x70   : > { %p14095_p0 = por %p157_p11, %p43_p4  ;;  %s11793_s12 = smul.u32 48, %s225_s23 }
  0x71   : > { %s14773_s9 = scalar_select %p14091_p13, 1, 0 }
  0x72   : > { %s14774_s10 = scalar_select %p14095_p0, 1, 0 }
  0x73   : > { %s11794_s13 = smul.u32 768, %s13891_s21  ;;  %p14100_p2 = pnand %p11842_p12, %p39_p1 }
  0x74   : > { %s229_s17 = scalar_lea.vmem [#allocation2], %s11793_s12  ;;  %s226_s22 = scalar_lea.sflag [#allocation3], %s225_s23 }
  0x75   : > { %s14107_s30 = scalar_lea.hbm %s14759_s0, %s11794_s13  ;;  %s237_s11 = sshll.u32 %s229_s17, 4  ;;  %s14109_s11 = int_to_ptr.vmem [resolvable:$true] %s237_s11 }
  0x76   : > { %s13787_s26 = scalar_lea.hbm %s14107_s30, 768  ;;  %p13789_p8 = pneg %p14100_p2 }
  0x77   : > { %p13788_p5 = scmp.ne.s32.totalorder %s14107_s30, %s13787_s26  ;;  %s13792_s7 = scalar_lea.hbm %s14759_s0, 1536 }
  0x78   : > { %p13793_p4 = scmp.lt.u32.totalorder %s14107_s30, %s14759_s0  ;;  %p13794_p1 = scmp.lt.u32.totalorder %s13792_s7, %s13787_s26 }
  0x79   : > { %p13790_p7 = pnand %p13789_p8, %p13788_p5  ;;  %p13796_p6 = scmp.lt.u32.totalorder %s13787_s26, %s14107_s30 }
  0x7a   : > { %p13795_p3 = por %p13794_p1, %p13793_p4 }
  0x7b   : > { %p13791_p9 = pneg %p13790_p7 }
  0x7c   : > { %p13797_p11 = por %p13796_p6, %p13795_p3 }
  0x7e   : > { %p13798_p12 = pnand %p13797_p11, %p13791_p9 }
  0x80   : > { %13801 = shalt.err (!%p13798_p12)
}
  0x81   : > { %s13802_s23 = scalar_lea.vmem %s14109_s11, 768  ;;  %s13901_s12 = smov [#allocation2]  }
  0x82   : > { %p13803_p5 = scmp.ne.s32.totalorder %s14109_s11, %s13802_s23  ;;  %s13807_s16 = sshll.u32 %s13901_s12, 4  ;;  %s13808_s16 = int_to_ptr.vmem [resolvable:$false] %s13807_s16 }
  0x83   : > { %s13809_s17 = scalar_lea.vmem %s13808_s16, 1536  ;;  %p13810_p13 = scmp.lt.s32.totalorder %s14109_s11, %s13808_s16 }
  0x84   : > { %p13805_p7 = pnand %p13803_p5, %p13789_p8  ;;  %p13811_p4 = scmp.lt.s32.totalorder %s13809_s17, %s13802_s23 }
  0x86   : > { %p13806_p0 = pneg %p13805_p7  ;;  %p13812_p1 = por %p13811_p4, %p13810_p13 }
  0x88   : > { %p13813_p3 = pnand %p13812_p1, %p13806_p0 }
  0x8a   : > { %13816 = shalt.err (!%p13813_p3)
}
  0x8b   : > { %11833 = dma.hbm_to_vmem [thread:$0]  (!%p14100_p2), %s14107_s30, 768, %s14109_s11, %s226_s22  }
  0x8c   : > { %p14776_p9 = scmp.ne.s32.totalorder %s14768_s25, 0 }
  0x8d   : > { %s14139_s26 = sand.u32 (!%p14776_p9), 1, %s13883_s19  }
  0x8e   : > { %246 = sbr.rel (%p14776_p9) target bundleno = 2788 (0xae4), region = 40  ;;  %s249_s6 = scalar_lea.sflag (!%p14776_p9), [#allocation3], %s14139_s26 }
  0x8f   : > { %s11795_s29 = smul.u32 (!%p14776_p9), 48, %s14139_s26 }
  0x91   : > { %s14145_s7 = scalar_lea.vmem (!%p14776_p9), [#allocation2], %s11795_s29 }
  0x95   : > { %13862 = dma.done.wait (%p14084_p10), %s249_s6, 768  }
  0x96   : > { %13864 = vsyncadd (%p14084_p10), %s249_s6, 4294966528  ;;  %p14777_p13 = scmp.eq.s32.totalorder %s13957_s24, 0 }
  0x98   : > { %13866 = dma.done.wait (%p14777_p13), [#allocation6], 192   ;;  %p14778_p0 = pmov %p14777_p13 }
  0x9a   : > { %13868 = vsyncadd (%p14778_p0), [#allocation6], 4294967104  ;;  %p14779_p2 = pmov %p14778_p0 }
  0x9b   : > { %p14780_p8 = pmov %p14778_p0 }
  0x9c   : > { %13870 = dma.done.wait (%p14779_p2), [#allocation9], 147456  }
  0x9d   : > { %13872 = vsyncadd (%p14780_p8), [#allocation9], 4294819840  ;;  %v296_v0 = vld [vmem:[%s14145_s7] sm:$0xff]  ;;  %v297_v1 = vld [vmem:[%s14145_s7 + $0x8] sm:$0xff]  ;;  %s13902_s25 = smov 64   ;;  %vm13904_vm0 = vmmov 0  }
  0x9e   : > { %v298_v2 = vld [vmem:[%s14145_s7 + $0x10] sm:$0xff]  ;;  %v299_v3 = vld [vmem:[%s14145_s7 + $0x18] sm:$0xff]  ;;  %v302_v4 = vadd.f32 %v297_v1, %v296_v0  ;;  %v300_v5 = vld [vmem:[%s14145_s7 + $0x20] sm:$0xff]  ;;  %vm6784_vm1 = vcmask 523264   ;;  %vm7485_vm2 = vcmask 1043456   ;;  %vm7337_vm3 = vcmask 64512  }
  0x9f   : > { %v301_v7 = vld [vmem:[%s14145_s7 + $0x28] sm:$0xff]  ;;  %v13669_v55 = vld [vmem:[%s14145_s7] sm:$0xff]  ;;  %v13671_v59 = vld [vmem:[%s14145_s7 + $0x10] sm:$0xff]  ;;  %s294_s28 = scalar_lea.vmem [#allocation11], %s11795_s29  ;;  %s11796_s14 = smul.u32 768, %s13957_s24 }
  0xa0   : > { %v303_v6 = vadd.f32 %v302_v4, %v298_v2  ;;  %v11891_v11 = vld [vmem:[#allocation8 + $0x4] ss:$72 sps:$4 sm:$0xff]   ;;  %v11895_v13 = vld [vmem:[#allocation8] ss:$72 sps:$4 sm:$0xff]   ;;  %v11897_v15 = vld [vmem:[#allocation8 + $0x94] ss:$72 sps:$4 sm:$0xff]  }
  0xa1   : > { %v11893_v12 = vld [vmem:[#allocation8 + $0x904] ss:$72 sps:$4 sm:$0xff]   ;;  %v11896_v14 = vld [vmem:[#allocation8 + $0x900] ss:$72 sps:$4 sm:$0xff]   ;;  %v11899_v16 = vld [vmem:[#allocation8 + $0x994] ss:$72 sps:$4 sm:$0xff]   ;;  %5605 = vmatprep.subr.bf16.mxu1 %v11891_v11  ;;  %s14715_s13 = scalar_lea.hbm %s14764_s5, %s11796_s14 }
  0xa2   : > { %v304_v8 = vadd.f32 %v303_v6, %v299_v3  ;;  %5646 = vmatprep.subr.bf16.mxu0 %v11893_v12  ;;  %5606 = vmatpush1.bf16.msra.mxu1 %v11895_v13  ;;  %v11901_v17 = vld [vmem:[#allocation8 + $0x90] ss:$72 sps:$4 sm:$0xff]   ;;  %v11903_v19 = vld [vmem:[#allocation8 + $0x124] ss:$72 sps:$4 sm:$0xff]   ;;  %v11907_v21 = vld [vmem:[#allocation8 + $0x120] ss:$72 sps:$4 sm:$0xff]  }
  0xa3   : > { %5647 = vmatpush1.bf16.msra.mxu0 %v11896_v14  ;;  %v11902_v18 = vld [vmem:[#allocation8 + $0x990] ss:$72 sps:$4 sm:$0xff]   ;;  %5607 = vmatprep.subr.bf16.mxu1 %v11897_v15  ;;  %v11905_v20 = vld [vmem:[#allocation8 + $0xa24] ss:$72 sps:$4 sm:$0xff]   ;;  %v11908_v22 = vld [vmem:[#allocation8 + $0xa20] ss:$72 sps:$4 sm:$0xff]  }
  0xa4   : > { %v305_v9 = vadd.f32 %v304_v8, %v300_v5  ;;  %5648 = vmatprep.subr.bf16.mxu0 %v11899_v16  ;;  %v11909_v23 = vld [vmem:[#allocation8 + $0x1b4] ss:$72 sps:$4 sm:$0xff]   ;;  %v11913_v25 = vld [vmem:[#allocation8 + $0x1b0] ss:$72 sps:$4 sm:$0xff]   ;;  %v11915_v27 = vld [vmem:[#allocation8 + $0x244] ss:$72 sps:$4 sm:$0xff]  }
  0xa5   : > { %v11911_v24 = vld [vmem:[#allocation8 + $0xab4] ss:$72 sps:$4 sm:$0xff]   ;;  %v11914_v26 = vld [vmem:[#allocation8 + $0xab0] ss:$72 sps:$4 sm:$0xff]   ;;  %v11917_v28 = vld [vmem:[#allocation8 + $0xb44] ss:$72 sps:$4 sm:$0xff]  }
  0xa6   : > { %v306_v10 = vadd.f32 %v305_v9, %v301_v7  ;;  %5608 = vmatpush1.bf16.msra.mxu1 %v11901_v17  ;;  %v11919_v29 = vld [vmem:[#allocation8 + $0x240] ss:$72 sps:$4 sm:$0xff]   ;;  %v11921_v31 = vld [vmem:[#allocation8 + $0x2d4] ss:$72 sps:$4 sm:$0xff]   ;;  %v11925_v33 = vld [vmem:[#allocation8 + $0x2d0] ss:$72 sps:$4 sm:$0xff]  }
  0xa7   : > { %5649 = vmatpush1.bf16.msra.mxu0 %v11902_v18  ;;  %5609 = vmatprep.subr.bf16.mxu1 %v11903_v19  ;;  %v11920_v30 = vld [vmem:[#allocation8 + $0xb40] ss:$72 sps:$4 sm:$0xff]   ;;  %v11923_v32 = vld [vmem:[#allocation8 + $0xbd4] ss:$72 sps:$4 sm:$0xff]   ;;  %v11926_v34 = vld [vmem:[#allocation8 + $0xbd0] ss:$72 sps:$4 sm:$0xff]  }
  0xa8   : > { %307 = vadd.xlane.f32.xlu0 %v306_v10  ;;  %5650 = vmatprep.subr.bf16.mxu0 %v11905_v20  ;;  %v11927_v35 = vld [vmem:[#allocation8 + $0x364] ss:$72 sps:$4 sm:$0xff]   ;;  %v11931_v37 = vld [vmem:[#allocation8 + $0x360] ss:$72 sps:$4 sm:$0xff]   ;;  %v11933_v39 = vld [vmem:[#allocation8 + $0x3f4] ss:$72 sps:$4 sm:$0xff]  }
  0xa9   : > { %v11929_v36 = vld [vmem:[#allocation8 + $0xc64] ss:$72 sps:$4 sm:$0xff]   ;;  %v11932_v38 = vld [vmem:[#allocation8 + $0xc60] ss:$72 sps:$4 sm:$0xff]   ;;  %v11935_v40 = vld [vmem:[#allocation8 + $0xcf4] ss:$72 sps:$4 sm:$0xff]  }
  0xaa   : > { %5610 = vmatpush1.bf16.msra.mxu1 %v11907_v21  ;;  %v11937_v41 = vld [vmem:[#allocation8 + $0x3f0] ss:$72 sps:$4 sm:$0xff]   ;;  %v11939_v43 = vld [vmem:[#allocation8 + $0x484] ss:$72 sps:$4 sm:$0xff]   ;;  %v11943_v45 = vld [vmem:[#allocation8 + $0x480] ss:$72 sps:$4 sm:$0xff]  }
  0xab   : > { %5651 = vmatpush1.bf16.msra.mxu0 %v11908_v22  ;;  %5611 = vmatprep.subr.bf16.mxu1 %v11909_v23  ;;  %v11938_v42 = vld [vmem:[#allocation8 + $0xcf0] ss:$72 sps:$4 sm:$0xff]   ;;  %v11941_v44 = vld [vmem:[#allocation8 + $0xd84] ss:$72 sps:$4 sm:$0xff]   ;;  %v11944_v46 = vld [vmem:[#allocation8 + $0xd80] ss:$72 sps:$4 sm:$0xff]  }
  0xac   : > { %5652 = vmatprep.subr.bf16.mxu0 %v11911_v24  ;;  %v11945_v47 = vld [vmem:[#allocation8 + $0x514] ss:$72 sps:$4 sm:$0xff]   ;;  %v11949_v49 = vld [vmem:[#allocation8 + $0x510] ss:$72 sps:$4 sm:$0xff]   ;;  %v11951_v51 = vld [vmem:[#allocation8 + $0x5a4] ss:$72 sps:$4 sm:$0xff]  }
  0xad   : > { %v11947_v48 = vld [vmem:[#allocation8 + $0xe14] ss:$72 sps:$4 sm:$0xff]   ;;  %v11950_v50 = vld [vmem:[#allocation8 + $0xe10] ss:$72 sps:$4 sm:$0xff]   ;;  %v11953_v52 = vld [vmem:[#allocation8 + $0xea4] ss:$72 sps:$4 sm:$0xff]  }
  0xae   : > { %5612 = vmatpush1.bf16.msra.mxu1 %v11913_v25  ;;  %v13670_v57 = vld [vmem:[%s14145_s7 + $0x8] sm:$0xff]  ;;  %v13672_v61 = vld [vmem:[%s14145_s7 + $0x18] sm:$0xff]  ;;  %v13673_v1 = vld [vmem:[%s14145_s7 + $0x20] sm:$0xff]  ;;  %s10207_s30 = sshll.u32 %s294_s28, 4  ;;  %s10193_s15 = scalar_lea.sflag [#allocation4], %s14139_s26  ;;  %s14717_s30 = int_to_ptr.vmem [resolvable:$true] %s10207_s30 }
  0xaf   : > { %5653 = vmatpush1.bf16.msra.mxu0 %v11914_v26  ;;  %5613 = vmatprep.subr.bf16.mxu1 %v11915_v27  ;;  %v13674_v5 = vld [vmem:[%s14145_s7 + $0x28] sm:$0xff]  ;;  %s13817_s23 = scalar_lea.vmem %s14717_s30, 768  ;;  %p14781_p6 = scmp.ne.s32.totalorder %s14773_s9, 0 }
  0xb0   : > { %5654 = vmatprep.subr.bf16.mxu0 %v11917_v28  ;;  %v11955_v14 = vld [vmem:[#allocation8 + $0x5a0] ss:$72 sps:$4 sm:$0xff]   ;;  %v11957_v16 = vld [vmem:[#allocation8 + $0x634] ss:$72 sps:$4 sm:$0xff]   ;;  %v11961_v18 = vld [vmem:[#allocation8 + $0x630] ss:$72 sps:$4 sm:$0xff]   ;;  %p13818_p10 = scmp.ne.s32.totalorder %s14717_s30, %s13817_s23 }
  0xb1   : > { %v11956_v15 = vld [vmem:[#allocation8 + $0xea0] ss:$72 sps:$4 sm:$0xff]   ;;  %v11959_v17 = vld [vmem:[#allocation8 + $0xf34] ss:$72 sps:$4 sm:$0xff]   ;;  %v11962_v19 = vld [vmem:[#allocation8 + $0xf30] ss:$72 sps:$4 sm:$0xff]  }
  0xb2   : > { %5614 = vmatpush1.bf16.msra.mxu1 %v11919_v29  ;;  %v11963_v20 = vld [vmem:[#allocation8 + $0x6c4] ss:$72 sps:$4 sm:$0xff]   ;;  %v11967_v22 = vld [vmem:[#allocation8 + $0x6c0] ss:$72 sps:$4 sm:$0xff]   ;;  %v11969_v24 = vld [vmem:[#allocation8 + $0x754] ss:$72 sps:$4 sm:$0xff]   ;;  %p13819_p11 = pnand %p13818_p10, %p14781_p6 }
  0xb3   : > { %5655 = vmatpush1.bf16.msra.mxu0 %v11920_v30  ;;  %5615 = vmatprep.subr.bf16.mxu1 %v11921_v31  ;;  %v11965_v21 = vld [vmem:[#allocation8 + $0xfc4] ss:$72 sps:$4 sm:$0xff]   ;;  %v11968_v23 = vld [vmem:[#allocation8 + $0xfc0] ss:$72 sps:$4 sm:$0xff]   ;;  %v11971_v25 = vld [vmem:[#allocation8 + $0x1054] ss:$72 sps:$4 sm:$0xff]   ;;  %v341_v30 = vlaneseq }
  0xb4   : > { %5656 = vmatprep.subr.bf16.mxu0 %v11923_v32  ;;  %v11973_v26 = vld [vmem:[#allocation8 + $0x750] ss:$72 sps:$4 sm:$0xff]   ;;  %v11975_v28 = vld [vmem:[#allocation8 + $0x7e4] ss:$72 sps:$4 sm:$0xff]   ;;  %v11979_v31 = vld [vmem:[#allocation8 + $0x7e0] ss:$72 sps:$4 sm:$0xff]   ;;  %p13820_p12 = pneg %p13819_p11 }
  0xb5   : > { %v11974_v27 = vld [vmem:[#allocation8 + $0x1050] ss:$72 sps:$4 sm:$0xff]   ;;  %v11977_v29 = vld [vmem:[#allocation8 + $0x10e4] ss:$72 sps:$4 sm:$0xff]   ;;  %v11980_v32 = vld [vmem:[#allocation8 + $0x10e0] ss:$72 sps:$4 sm:$0xff]  }
  0xb6   : > { %5616 = vmatpush1.bf16.msra.mxu1 %v11925_v33  ;;  %v11981_v33 = vld [vmem:[#allocation8 + $0x874] ss:$72 sps:$4 sm:$0xff]   ;;  %s13905_s24 = smov [#allocation11]  }
  0xb7   : > { %5657 = vmatpush1.bf16.msra.mxu0 %v11926_v34  ;;  %5617 = vmatprep.subr.bf16.mxu1 %v11927_v35  ;;  %v342_v34 = vshrl.u32 %v341_v30, 7  ;;  %v11983_v35 = vld [vmem:[#allocation8 + $0x1174] ss:$72 sps:$4 sm:$0xff]   ;;  %s13821_s12 = sshll.u32 %s13905_s24, 4  ;;  %s13822_s12 = int_to_ptr.vmem [resolvable:$false] %s13821_s12 }
  0xb8   : > { %5658 = vmatprep.subr.bf16.mxu0 %v11929_v36  ;;  %v11985_v36 = vld [vmem:[#allocation8 + $0x870] ss:$72 sps:$4 sm:$0xff]   ;;  %v12004_v30 = vld [vmem:[#allocation8 + $0x12c] ss:$72 sps:$4 sm:$0xff]   ;;  %s13823_s16 = scalar_lea.vmem %s13822_s12, 1536  ;;  %p13824_p5 = scmp.lt.s32.totalorder %s14717_s30, %s13822_s12 }
  0xb9   : > { %p13825_p7 = scmp.lt.s32.totalorder %s13823_s16, %s13817_s23 }
  0xba   : > { %5618 = vmatpush1.bf16.msra.mxu1 %v11931_v37  ;;  %v11986_v37 = vld [vmem:[#allocation8 + $0x1170] ss:$72 sps:$4 sm:$0xff]  }
  0xbb   : > { %5659 = vmatpush1.bf16.msra.mxu0 %v11932_v38  ;;  %5619 = vmatprep.subr.bf16.mxu1 %v11933_v39  ;;  %v339_v38 = vld [vmem:[#allocation5] sm:$0x3f]  ;;  %v359_v39 = vsub.s32 4, %v342_v34  ;;  %p13826_p4 = por %p13825_p7, %p13824_p5 }
  0xbc   : > { %5660 = vmatprep.subr.bf16.mxu0 %v11935_v40  ;;  %v377_v40 = vld [vmem:[#allocation7] sm:$0x3f] }
  0xbd   : > { %p13827_p1 = pnand %p13826_p4, %p13820_p12 }
  0xbe   : > { %5620 = vmatpush1.bf16.msra.mxu1 %v11937_v41  ;;  %v360_v41 = vrot.slane %v339_v38, %v359_v39 }
  0xbf   : > { %5661 = vmatpush1.bf16.msra.mxu0 %v11938_v42  ;;  %5621 = vmatprep.subr.bf16.mxu1 %v11939_v43  ;;  %v398_v42 = vrot.slane %v377_v40, %v359_v39  ;;  %v11989_v43 = vld [vmem:[#allocation8 + $0x1204] ss:$72 sps:$4 sm:$0xff]   ;;  %v12011_v39 = vld [vmem:[#allocation8 + $0x1440] ss:$72 sps:$4 sm:$0xff]  }
  0xc0   : > { %5662 = vmatprep.subr.bf16.mxu0 %v11941_v44  ;;  %v11992_v44 = vld [vmem:[#allocation8 + $0xc] ss:$72 sps:$4 sm:$0xff]  }
  0xc2   : > { %5622 = vmatpush1.bf16.msra.mxu1 %v11943_v45 }
  0xc3   : > { %5663 = vmatpush1.bf16.msra.mxu0 %v11944_v46  ;;  %5623 = vmatprep.subr.bf16.mxu1 %v11945_v47 }
  0xc4   : > { %5664 = vmatprep.subr.bf16.mxu0 %v11947_v48  ;;  %v347_v48 = vsub.s32 1, %v342_v34 }
  0xc6   : > { %5624 = vmatpush1.bf16.msra.mxu1 %v11949_v49  ;;  %v355_v49 = vsub.s32 3, %v342_v34 }
  0xc7   : > { %5665 = vmatpush1.bf16.msra.mxu0 %v11950_v50  ;;  %5625 = vmatprep.subr.bf16.mxu1 %v11951_v51  ;;  %v343_v50 = vsub.s32 0, %v342_v34  ;;  %v351_v51 = vsub.s32 2, %v342_v34 }
  0xc8   : > { %5666 = vmatprep.subr.bf16.mxu0 %v11953_v52  ;;  %v363_v52 = vsub.s32 5, %v342_v34  ;;  %v12010_v34 = vld [vmem:[#allocation8 + $0x1bc] ss:$72 sps:$4 sm:$0xff]  }
  0xca   : > { %5626 = vmatpush1.bf16.msra.mxu1 %v11955_v14 }
  0xcb   : > { %5667 = vmatpush1.bf16.msra.mxu0 %v11956_v15  ;;  %5627 = vmatprep.subr.bf16.mxu1 %v11957_v16 }
  0xcc   : > { %5668 = vmatprep.subr.bf16.mxu0 %v11959_v17 }
  0xce   : > { %5628 = vmatpush1.bf16.msra.mxu1 %v11961_v18 }
  0xcf   : > { %5669 = vmatpush1.bf16.msra.mxu0 %v11962_v19  ;;  %5629 = vmatprep.subr.bf16.mxu1 %v11963_v20  ;;  %v11990_v20 = vld [vmem:[#allocation8 + $0x8] ss:$72 sps:$4 sm:$0xff]  }
  0xd0   : > { %5670 = vmatprep.subr.bf16.mxu0 %v11965_v21 }
  0xd2   : > { %5630 = vmatpush1.bf16.msra.mxu1 %v11967_v22 }
  0xd3   : > { %5671 = vmatpush1.bf16.msra.mxu0 %v11968_v23  ;;  %5631 = vmatprep.subr.bf16.mxu1 %v11969_v24  ;;  %v11995_v24 = vld [vmem:[#allocation8 + $0x1294] ss:$72 sps:$4 sm:$0xff]  }
  0xd4   : > { %5672 = vmatprep.subr.bf16.mxu0 %v11971_v25  ;;  %v11993_v25 = vld [vmem:[#allocation8 + $0x1290] ss:$72 sps:$4 sm:$0xff]  }
  0xd6   : > { %5632 = vmatpush1.bf16.msra.mxu1 %v11973_v26  ;;  %v11996_v26 = vld [vmem:[#allocation8 + $0x98] ss:$72 sps:$4 sm:$0xff]  }
  0xd7   : > { %5673 = vmatpush1.bf16.msra.mxu0 %v11974_v27  ;;  %5633 = vmatprep.subr.bf16.mxu1 %v11975_v28  ;;  %v11998_v27 = vld [vmem:[#allocation8 + $0x9c] ss:$72 sps:$4 sm:$0xff]  }
  0xd8   : > { %5674 = vmatprep.subr.bf16.mxu0 %v11977_v29  ;;  %v12001_v29 = vld [vmem:[#allocation8 + $0x1324] ss:$72 sps:$4 sm:$0xff]  }
  0xda   : > { %5634 = vmatpush1.bf16.msra.mxu1 %v11979_v31  ;;  %v11999_v31 = vld [vmem:[#allocation8 + $0x1320] ss:$72 sps:$4 sm:$0xff]  }
  0xdb   : > { %5675 = vmatpush1.bf16.msra.mxu0 %v11980_v32  ;;  %5635 = vmatprep.subr.bf16.mxu1 %v11981_v33  ;;  %v12002_v32 = vld [vmem:[#allocation8 + $0x128] ss:$72 sps:$4 sm:$0xff]   ;;  %v12007_v33 = vld [vmem:[#allocation8 + $0x13b4] ss:$72 sps:$4 sm:$0xff]  }
  0xdc   : > { %5676 = vmatprep.subr.bf16.mxu0 %v11983_v35  ;;  %v12005_v35 = vld [vmem:[#allocation8 + $0x13b0] ss:$72 sps:$4 sm:$0xff]  }
  0xde   : > { %5636 = vmatpush1.bf16.msra.mxu1 %v11985_v36  ;;  %v12008_v36 = vld [vmem:[#allocation8 + $0x1b8] ss:$72 sps:$4 sm:$0xff]  }
  0xdf   : > { %5677 = vmatpush1.bf16.msra.mxu0 %v11986_v37  ;;  %5728 = vmatprep.subr.bf16.mxu1 %v11992_v44  ;;  %v12013_v37 = vld [vmem:[#allocation8 + $0x1444] ss:$72 sps:$4 sm:$0xff]   ;;  %v12020_v44 = vld [vmem:[#allocation8 + $0x2d8] ss:$72 sps:$4 sm:$0xff]  }
  0xe0   : > { %5687 = vmatprep.subr.bf16.mxu0 %v11989_v43  ;;  %v12017_v43 = vld [vmem:[#allocation8 + $0x14d0] ss:$72 sps:$4 sm:$0xff]  }
 0x135   : > { %v308_v53 = vpop.xlane.xlu0 %307 }
 0x136   : > { %v310_v54 = vmul.f32 0.0013020834, %v308_v53  ;;  %v348_v53 = vrot.slane %v339_v38, %v347_v48 }
 0x138   : > { %v14166_v56 = vsub.f32 %v13669_v55, %v310_v54  ;;  %v14169_v58 = vsub.f32 %v13670_v57, %v310_v54  ;;  %v14172_v60 = vsub.f32 %v13671_v59, %v310_v54  ;;  %v14175_v62 = vsub.f32 %v13672_v61, %v310_v54 }
 0x139   : > { %v14182_v2 = vsub.f32 %v13673_v1, %v310_v54  ;;  %v14187_v6 = vsub.f32 %v13674_v5, %v310_v54  ;;  %v356_v54 = vrot.slane %v339_v38, %v355_v49  ;;  %v344_v55 = vrot.slane %v339_v38, %v343_v50 }
 0x13a   : > { %v317_v63 = vmul.f32 %v14166_v56, %v14166_v56  ;;  %v318_v0 = vmul.f32 %v14169_v58, %v14169_v58  ;;  %v319_v3 = vmul.f32 %v14172_v60, %v14172_v60  ;;  %v320_v7 = vmul.f32 %v14175_v62, %v14175_v62 }
 0x13b   : > { %v321_v9 = vmul.f32 %v14182_v2, %v14182_v2  ;;  %v322_v11 = vmul.f32 %v14187_v6, %v14187_v6  ;;  %v352_v57 = vrot.slane %v339_v38, %v351_v51  ;;  %v364_v59 = vrot.slane %v339_v38, %v363_v52  ;;  %v12016_v38 = vld [vmem:[#allocation8 + $0x24c] ss:$72 sps:$4 sm:$0xff]  }
 0x13c   : > { %v323_v4 = vadd.f32 %v318_v0, %v317_v63  ;;  %v386_v63 = vrot.slane %v377_v40, %v347_v48  ;;  %v394_v0 = vrot.slane %v377_v40, %v355_v49  ;;  %v382_v1 = vrot.slane %v377_v40, %v343_v50  ;;  %v12026_v48 = vld [vmem:[#allocation8 + $0x368] ss:$72 sps:$4 sm:$0xff]   ;;  %v12031_v49 = vld [vmem:[#allocation8 + $0x15f4] ss:$72 sps:$4 sm:$0xff]  }
 0x13d   : > { %v12034_v50 = vld [vmem:[#allocation8 + $0x3fc] ss:$72 sps:$4 sm:$0xff]  }
 0x13e   : > { %v324_v8 = vadd.f32 %v323_v4, %v319_v3  ;;  %v390_v3 = vrot.slane %v377_v40, %v351_v51  ;;  %v12029_v51 = vld [vmem:[#allocation8 + $0x15f0] ss:$72 sps:$4 sm:$0xff]  }
 0x140   : > { %v325_v10 = vadd.f32 %v324_v8, %v320_v7 }
 0x142   : > { %v326_v12 = vadd.f32 %v325_v10, %v321_v9  ;;  %v402_v10 = vrot.slane %v377_v40, %v363_v52  ;;  %v12014_v40 = vld [vmem:[#allocation8 + $0x248] ss:$72 sps:$4 sm:$0xff]   ;;  %v12032_v52 = vld [vmem:[#allocation8 + $0x3f8] ss:$72 sps:$4 sm:$0xff]  }
 0x144   : > { %v327_v13 = vadd.f32 %v326_v12, %v322_v11 }
 0x146   : > { %328 = vadd.xlane.f32.xlu0 %v327_v13 }
 0x1d3   : > { %v329_v45 = vpop.xlane.xlu0 %328 }
 0x1d4   : > { %v330_v46 = vmul.f32 0.0013020834, %v329_v45  ;;  %v12025_v45 = vld [vmem:[#allocation8 + $0x1564] ss:$72 sps:$4 sm:$0xff]  }
 0x1d6   : > { %v331_v47 = vadd.f32 1e-05, %v330_v46  ;;  %v12028_v46 = vld [vmem:[#allocation8 + $0x36c] ss:$72 sps:$4 sm:$0xff]  }
 0x1d8   : > { %13619 = vrsqrt.f32 %v331_v47  ;;  %v12023_v47 = vld [vmem:[#allocation8 + $0x1560] ss:$72 sps:$4 sm:$0xff]  }
 0x1e2   : > { %v13620_v61 = vpop.eup %13619 }
 0x1e3   : > { %v334_v4 = vmul.f32 %v13620_v61, %v14169_v58  ;;  %v336_v5 = vmul.f32 %v13620_v61, %v14175_v62  ;;  %v333_v7 = vmul.f32 %v13620_v61, %v14166_v56  ;;  %v335_v8 = vmul.f32 %v13620_v61, %v14172_v60  ;;  %v11987_v58 = vld [vmem:[#allocation8 + $0x1200] ss:$72 sps:$4 sm:$0xff]  }
 0x1e4   : > { %v338_v9 = vmul.f32 %v13620_v61, %v14187_v6  ;;  %v337_v11 = vmul.f32 %v13620_v61, %v14182_v2  ;;  %v12046_v61 = vld [vmem:[#allocation8 + $0x51c] ss:$72 sps:$4 sm:$0xff]  }
 0x1e5   : > { %v372_v12 = vmul.f32 %v348_v53, %v334_v4  ;;  %v374_v13 = vmul.f32 %v356_v54, %v336_v5  ;;  %v371_v14 = vmul.f32 %v344_v55, %v333_v7  ;;  %v373_v15 = vmul.f32 %v352_v57, %v335_v8  ;;  %v12037_v53 = vld [vmem:[#allocation8 + $0x1684] ss:$72 sps:$4 sm:$0xff]   ;;  %v12035_v55 = vld [vmem:[#allocation8 + $0x1680] ss:$72 sps:$4 sm:$0xff]   ;;  %v12055_v7 = vld [vmem:[#allocation8 + $0x1834] ss:$72 sps:$4 sm:$0xff]  }
 0x1e6   : > { %v376_v16 = vmul.f32 %v364_v59, %v338_v9  ;;  %v375_v17 = vmul.f32 %v360_v41, %v337_v11  ;;  %v12019_v41 = vld [vmem:[#allocation8 + $0x14d4] ss:$72 sps:$4 sm:$0xff]   ;;  %v12038_v57 = vld [vmem:[#allocation8 + $0x488] ss:$72 sps:$4 sm:$0xff]   ;;  %v12061_v11 = vld [vmem:[#allocation8 + $0x18c4] ss:$72 sps:$4 sm:$0xff]  }
 0x1e7   : > { %v410_v18 = vadd.f32 %v386_v63, %v372_v12  ;;  %v412_v19 = vadd.f32 %v394_v0, %v374_v13  ;;  %v409_v62 = vadd.f32 %v382_v1, %v371_v14  ;;  %v411_v21 = vadd.f32 %v390_v3, %v373_v15  ;;  %v12040_v54 = vld [vmem:[#allocation8 + $0x48c] ss:$72 sps:$4 sm:$0xff]   ;;  %v12041_v63 = vld [vmem:[#allocation8 + $0x1710] ss:$72 sps:$4 sm:$0xff]   ;;  %v12047_v4 = vld [vmem:[#allocation8 + $0x17a0] ss:$72 sps:$4 sm:$0xff]  }
 0x1e8   : > { %v414_v56 = vadd.f32 %v402_v10, %v376_v16  ;;  %v14201_v22 = vadd.f32 %v398_v42, %v375_v17  ;;  %v12022_v42 = vld [vmem:[#allocation8 + $0x2dc] ss:$72 sps:$4 sm:$0xff]   ;;  %v12044_v0 = vld [vmem:[#allocation8 + $0x518] ss:$72 sps:$4 sm:$0xff]   ;;  %v12052_v3 = vld [vmem:[#allocation8 + $0x5ac] ss:$72 sps:$4 sm:$0xff]  }
 0x1e9   : > { %v14203_v60 = vpack.c.bf16 %v410_v18, %v410_v18  ;;  %v14205_v6 = vpack.c.bf16 %v412_v19, %v412_v19  ;;  %v14207_v2 = vpack.c.bf16 %v409_v62, %v409_v62  ;;  %v14209_v23 = vpack.c.bf16 %v411_v21, %v411_v21  ;;  %v12043_v59 = vld [vmem:[#allocation8 + $0x1714] ss:$72 sps:$4 sm:$0xff]   ;;  %v12049_v1 = vld [vmem:[#allocation8 + $0x17a4] ss:$72 sps:$4 sm:$0xff]   ;;  %v12050_v5 = vld [vmem:[#allocation8 + $0x5a8] ss:$72 sps:$4 sm:$0xff]  }
 0x1ea   : > { %v14215_v28 = vpack.c.bf16 %v414_v56, %v414_v56  ;;  %v12058_v8 = vld [vmem:[#allocation8 + $0x63c] ss:$72 sps:$4 sm:$0xff]   ;;  %v12053_v9 = vld [vmem:[#allocation8 + $0x1830] ss:$72 sps:$4 sm:$0xff]   ;;  %v12064_v12 = vld [vmem:[#allocation8 + $0x6cc] ss:$72 sps:$4 sm:$0xff]  }
 0x1eb   : > { %5637 = vmatprep.mubr.bf16.mxu1 %v14203_v60  ;;  %5678 = vmatprep.mubr.bf16.mxu0 %v14205_v6  ;;  %v12056_v10 = vld [vmem:[#allocation8 + $0x638] ss:$72 sps:$4 sm:$0xff]   ;;  %v12062_v14 = vld [vmem:[#allocation8 + $0x6c8] ss:$72 sps:$4 sm:$0xff]   ;;  %v12067_v15 = vld [vmem:[#allocation8 + $0x1954] ss:$72 sps:$4 sm:$0xff]  }
 0x1ec   : > { %5638 = vmatmul.mubr.bf16.vlgmr.msra.gmra.mrb[0].mxu1 %v14207_v2  ;;  %5679 = vmatmul.mubr.bf16.vlgmr.msra.gmra.mrb[0].mxu0 %v14209_v23  ;;  %v12059_v13 = vld [vmem:[#allocation8 + $0x18c0] ss:$72 sps:$4 sm:$0xff]   ;;  %v12070_v16 = vld [vmem:[#allocation8 + $0x75c] ss:$72 sps:$4 sm:$0xff]   ;;  %v12065_v17 = vld [vmem:[#allocation8 + $0x1950] ss:$72 sps:$4 sm:$0xff]  }
 0x1ed   : > { %5688 = vmatpush1.bf16.msra.mxu0 %v11987_v58  ;;  %5729 = vmatpush1.bf16.msra.mxu1 %v11990_v20  ;;  %v12068_v18 = vld [vmem:[#allocation8 + $0x758] ss:$72 sps:$4 sm:$0xff]   ;;  %v12073_v19 = vld [vmem:[#allocation8 + $0x19e4] ss:$72 sps:$4 sm:$0xff]   ;;  %v12074_v62 = vld [vmem:[#allocation8 + $0x7e8] ss:$72 sps:$4 sm:$0xff]  }
 0x1ee   : > { %5719 = vmatprep.mubr.bf16.mxu0 %v14215_v28  ;;  %5760 = vmatprep.mubr.bf16.mxu1 %v14203_v60  ;;  %v12076_v58 = vld [vmem:[#allocation8 + $0x7ec] ss:$72 sps:$4 sm:$0xff]   ;;  %v12071_v20 = vld [vmem:[#allocation8 + $0x19e0] ss:$72 sps:$4 sm:$0xff]   ;;  %v12082_v56 = vld [vmem:[#allocation8 + $0x87c] ss:$72 sps:$4 sm:$0xff]  }
 0x1ef   : > { %5689 = vmatprep.subr.bf16.mxu0 %v11995_v24  ;;  %5730 = vmatprep.subr.bf16.mxu1 %v11998_v27  ;;  %v12079_v21 = vld [vmem:[#allocation8 + $0x1a74] ss:$72 sps:$4 sm:$0xff]   ;;  %v12077_v24 = vld [vmem:[#allocation8 + $0x1a70] ss:$72 sps:$4 sm:$0xff]  }
 0x1f0   : > { %v12088_v27 = vld [vmem:[#allocation8 + $0x14] ss:$72 sps:$4 sm:$0xff]  }
 0x1f1   : > { %5690 = vmatpush1.bf16.msra.mxu0 %v11993_v25  ;;  %5731 = vmatpush1.bf16.msra.mxu1 %v11996_v26  ;;  %v12080_v25 = vld [vmem:[#allocation8 + $0x878] ss:$72 sps:$4 sm:$0xff]   ;;  %v12085_v26 = vld [vmem:[#allocation8 + $0x90c] ss:$72 sps:$4 sm:$0xff]  }
 0x1f2   : > { %5691 = vmatprep.subr.bf16.mxu0 %v12001_v29  ;;  %5732 = vmatprep.subr.bf16.mxu1 %v12004_v30  ;;  %v12083_v29 = vld [vmem:[#allocation8 + $0x908] ss:$72 sps:$4 sm:$0xff]  }
 0x1f3   : > { %v12086_v30 = vld [vmem:[#allocation8 + $0x10] ss:$72 sps:$4 sm:$0xff]  }
 0x1f5   : > { %5692 = vmatpush1.bf16.msra.mxu0 %v11999_v31  ;;  %5733 = vmatpush1.bf16.msra.mxu1 %v12002_v32  ;;  %v12091_v31 = vld [vmem:[#allocation8 + $0x99c] ss:$72 sps:$4 sm:$0xff]  }
 0x1f6   : > { %5693 = vmatprep.subr.bf16.mxu0 %v12007_v33  ;;  %5734 = vmatprep.subr.bf16.mxu1 %v12010_v34  ;;  %v12094_v32 = vld [vmem:[#allocation8 + $0xa4] ss:$72 sps:$4 sm:$0xff]   ;;  %v14221_v33 = vpack.c.bf16 %v14201_v22, %v14201_v22  ;;  %v12089_v34 = vld [vmem:[#allocation8 + $0x998] ss:$72 sps:$4 sm:$0xff]   ;;  %v12095_v22 = vld [vmem:[#allocation8 + $0xa28] ss:$72 sps:$4 sm:$0xff]  }
 0x1f9   : > { %5694 = vmatpush1.bf16.msra.mxu0 %v12005_v35  ;;  %5735 = vmatpush1.bf16.msra.mxu1 %v12008_v36  ;;  %v12092_v35 = vld [vmem:[#allocation8 + $0xa0] ss:$72 sps:$4 sm:$0xff]   ;;  %v12097_v36 = vld [vmem:[#allocation8 + $0xa2c] ss:$72 sps:$4 sm:$0xff]  }
 0x1fa   : > { %5695 = vmatprep.subr.bf16.mxu0 %v12013_v37  ;;  %5736 = vmatprep.subr.bf16.mxu1 %v12016_v38  ;;  %v12100_v37 = vld [vmem:[#allocation8 + $0x134] ss:$72 sps:$4 sm:$0xff]   ;;  %v12098_v38 = vld [vmem:[#allocation8 + $0x130] ss:$72 sps:$4 sm:$0xff]  }
 0x1fd   : > { %5696 = vmatpush1.bf16.msra.mxu0 %v12011_v39  ;;  %5737 = vmatpush1.bf16.msra.mxu1 %v12014_v40  ;;  %v12103_v39 = vld [vmem:[#allocation8 + $0xabc] ss:$72 sps:$4 sm:$0xff]   ;;  %v12101_v40 = vld [vmem:[#allocation8 + $0xab8] ss:$72 sps:$4 sm:$0xff]  }
 0x1fe   : > { %5697 = vmatprep.subr.bf16.mxu0 %v12019_v41  ;;  %5738 = vmatprep.subr.bf16.mxu1 %v12022_v42  ;;  %v12106_v41 = vld [vmem:[#allocation8 + $0x1c4] ss:$72 sps:$4 sm:$0xff]   ;;  %v12104_v42 = vld [vmem:[#allocation8 + $0x1c0] ss:$72 sps:$4 sm:$0xff]  }
 0x201   : > { %5698 = vmatpush1.bf16.msra.mxu0 %v12017_v43  ;;  %5739 = vmatpush1.bf16.msra.mxu1 %v12020_v44  ;;  %v12109_v43 = vld [vmem:[#allocation8 + $0xb4c] ss:$72 sps:$4 sm:$0xff]   ;;  %v12107_v44 = vld [vmem:[#allocation8 + $0xb48] ss:$72 sps:$4 sm:$0xff]  }
 0x202   : > { %5699 = vmatprep.subr.bf16.mxu0 %v12025_v45  ;;  %5740 = vmatprep.subr.bf16.mxu1 %v12028_v46  ;;  %v12112_v45 = vld [vmem:[#allocation8 + $0x254] ss:$72 sps:$4 sm:$0xff]   ;;  %v12110_v46 = vld [vmem:[#allocation8 + $0x250] ss:$72 sps:$4 sm:$0xff]  }
 0x205   : > { %5700 = vmatpush1.bf16.msra.mxu0 %v12023_v47  ;;  %5741 = vmatpush1.bf16.msra.mxu1 %v12026_v48  ;;  %v12115_v47 = vld [vmem:[#allocation8 + $0xbdc] ss:$72 sps:$4 sm:$0xff]   ;;  %v12113_v48 = vld [vmem:[#allocation8 + $0xbd8] ss:$72 sps:$4 sm:$0xff]  }
 0x206   : > { %5701 = vmatprep.subr.bf16.mxu0 %v12031_v49  ;;  %5742 = vmatprep.subr.bf16.mxu1 %v12034_v50  ;;  %v12118_v49 = vld [vmem:[#allocation8 + $0x2e4] ss:$72 sps:$4 sm:$0xff]   ;;  %v12116_v50 = vld [vmem:[#allocation8 + $0x2e0] ss:$72 sps:$4 sm:$0xff]  }
 0x209   : > { %5702 = vmatpush1.bf16.msra.mxu0 %v12029_v51  ;;  %5743 = vmatpush1.bf16.msra.mxu1 %v12032_v52  ;;  %v12121_v51 = vld [vmem:[#allocation8 + $0xc6c] ss:$72 sps:$4 sm:$0xff]  }
 0x20a   : > { %5703 = vmatprep.subr.bf16.mxu0 %v12037_v53  ;;  %5744 = vmatprep.subr.bf16.mxu1 %v12040_v54  ;;  %v12124_v52 = vld [vmem:[#allocation8 + $0x374] ss:$72 sps:$4 sm:$0xff]   ;;  %v12119_v53 = vld [vmem:[#allocation8 + $0xc68] ss:$72 sps:$4 sm:$0xff]  }
 0x20b   : > { %v12122_v54 = vld [vmem:[#allocation8 + $0x370] ss:$72 sps:$4 sm:$0xff]  }
 0x20d   : > { %5704 = vmatpush1.bf16.msra.mxu0 %v12035_v55  ;;  %5745 = vmatpush1.bf16.msra.mxu1 %v12038_v57  ;;  %v12127_v55 = vld [vmem:[#allocation8 + $0xcfc] ss:$72 sps:$4 sm:$0xff]   ;;  %v12125_v57 = vld [vmem:[#allocation8 + $0xcf8] ss:$72 sps:$4 sm:$0xff]  }
 0x20e   : > { %5705 = vmatprep.subr.bf16.mxu0 %v12043_v59  ;;  %5746 = vmatprep.subr.bf16.mxu1 %v12046_v61  ;;  %v12130_v59 = vld [vmem:[#allocation8 + $0x404] ss:$72 sps:$4 sm:$0xff]   ;;  %v12128_v61 = vld [vmem:[#allocation8 + $0x400] ss:$72 sps:$4 sm:$0xff]  }
 0x211   : > { %5706 = vmatpush1.bf16.msra.mxu0 %v12041_v63  ;;  %5747 = vmatpush1.bf16.msra.mxu1 %v12044_v0  ;;  %v12133_v63 = vld [vmem:[#allocation8 + $0xd8c] ss:$72 sps:$4 sm:$0xff]   ;;  %v12131_v0 = vld [vmem:[#allocation8 + $0xd88] ss:$72 sps:$4 sm:$0xff]  }
 0x212   : > { %5707 = vmatprep.subr.bf16.mxu0 %v12049_v1  ;;  %5748 = vmatprep.subr.bf16.mxu1 %v12052_v3  ;;  %v12136_v1 = vld [vmem:[#allocation8 + $0x494] ss:$72 sps:$4 sm:$0xff]   ;;  %v12134_v3 = vld [vmem:[#allocation8 + $0x490] ss:$72 sps:$4 sm:$0xff]  }
 0x215   : > { %5708 = vmatpush1.bf16.msra.mxu0 %v12047_v4  ;;  %5749 = vmatpush1.bf16.msra.mxu1 %v12050_v5  ;;  %v12139_v4 = vld [vmem:[#allocation8 + $0xe1c] ss:$72 sps:$4 sm:$0xff]   ;;  %v12137_v5 = vld [vmem:[#allocation8 + $0xe18] ss:$72 sps:$4 sm:$0xff]  }
 0x216   : > { %5709 = vmatprep.subr.bf16.mxu0 %v12055_v7  ;;  %5750 = vmatprep.subr.bf16.mxu1 %v12058_v8  ;;  %v12142_v7 = vld [vmem:[#allocation8 + $0x524] ss:$72 sps:$4 sm:$0xff]   ;;  %v12140_v8 = vld [vmem:[#allocation8 + $0x520] ss:$72 sps:$4 sm:$0xff]  }
 0x219   : > { %5710 = vmatpush1.bf16.msra.mxu0 %v12053_v9  ;;  %5751 = vmatpush1.bf16.msra.mxu1 %v12056_v10  ;;  %v12145_v9 = vld [vmem:[#allocation8 + $0xeac] ss:$72 sps:$4 sm:$0xff]   ;;  %v12143_v10 = vld [vmem:[#allocation8 + $0xea8] ss:$72 sps:$4 sm:$0xff]  }
 0x21a   : > { %5711 = vmatprep.subr.bf16.mxu0 %v12061_v11  ;;  %5752 = vmatprep.subr.bf16.mxu1 %v12064_v12  ;;  %v12148_v11 = vld [vmem:[#allocation8 + $0x5b4] ss:$72 sps:$4 sm:$0xff]   ;;  %v12146_v12 = vld [vmem:[#allocation8 + $0x5b0] ss:$72 sps:$4 sm:$0xff]  }
 0x21d   : > { %5712 = vmatpush1.bf16.msra.mxu0 %v12059_v13  ;;  %5753 = vmatpush1.bf16.msra.mxu1 %v12062_v14  ;;  %v12151_v13 = vld [vmem:[#allocation8 + $0xf3c] ss:$72 sps:$4 sm:$0xff]   ;;  %v12149_v14 = vld [vmem:[#allocation8 + $0xf38] ss:$72 sps:$4 sm:$0xff]  }
 0x21e   : > { %5713 = vmatprep.subr.bf16.mxu0 %v12067_v15  ;;  %5754 = vmatprep.subr.bf16.mxu1 %v12070_v16  ;;  %v12154_v15 = vld [vmem:[#allocation8 + $0x644] ss:$72 sps:$4 sm:$0xff]   ;;  %v12152_v16 = vld [vmem:[#allocation8 + $0x640] ss:$72 sps:$4 sm:$0xff]  }
 0x221   : > { %5714 = vmatpush1.bf16.msra.mxu0 %v12065_v17  ;;  %5755 = vmatpush1.bf16.msra.mxu1 %v12068_v18  ;;  %v12157_v17 = vld [vmem:[#allocation8 + $0xfcc] ss:$72 sps:$4 sm:$0xff]   ;;  %v12155_v18 = vld [vmem:[#allocation8 + $0xfc8] ss:$72 sps:$4 sm:$0xff]  }
 0x222   : > { %5715 = vmatprep.subr.bf16.mxu0 %v12073_v19  ;;  %5756 = vmatprep.subr.bf16.mxu1 %v12076_v58  ;;  %v12160_v19 = vld [vmem:[#allocation8 + $0x6d4] ss:$72 sps:$4 sm:$0xff]   ;;  %v12158_v58 = vld [vmem:[#allocation8 + $0x6d0] ss:$72 sps:$4 sm:$0xff]  }
 0x225   : > { %5716 = vmatpush1.bf16.msra.mxu0 %v12071_v20  ;;  %5757 = vmatpush1.bf16.msra.mxu1 %v12074_v62  ;;  %v12163_v20 = vld [vmem:[#allocation8 + $0x105c] ss:$72 sps:$4 sm:$0xff]   ;;  %v12161_v62 = vld [vmem:[#allocation8 + $0x1058] ss:$72 sps:$4 sm:$0xff]  }
 0x226   : > { %5717 = vmatprep.subr.bf16.mxu0 %v12079_v21  ;;  %5758 = vmatprep.subr.bf16.mxu1 %v12082_v56  ;;  %v12166_v21 = vld [vmem:[#allocation8 + $0x764] ss:$72 sps:$4 sm:$0xff]   ;;  %v12164_v56 = vld [vmem:[#allocation8 + $0x760] ss:$72 sps:$4 sm:$0xff]  }
 0x229   : > { %5718 = vmatpush1.bf16.msra.mxu0 %v12077_v24  ;;  %5759 = vmatpush1.bf16.msra.mxu1 %v12080_v25  ;;  %v12169_v24 = vld [vmem:[#allocation8 + $0x10ec] ss:$72 sps:$4 sm:$0xff]   ;;  %v12167_v25 = vld [vmem:[#allocation8 + $0x10e8] ss:$72 sps:$4 sm:$0xff]  }
 0x22a   : > { %5769 = vmatprep.subr.bf16.mxu1 %v12085_v26  ;;  %5851 = vmatprep.subr.bf16.mxu0 %v12088_v27  ;;  %v12172_v26 = vld [vmem:[#allocation8 + $0x7f4] ss:$72 sps:$4 sm:$0xff]   ;;  %v12170_v27 = vld [vmem:[#allocation8 + $0x7f0] ss:$72 sps:$4 sm:$0xff]  }
 0x22c   : > { %5720 = vmatmul.mubr.bf16.vlgmr.msra.gmra.mrb[0].mxu0 %v14221_v33  ;;  %5761 = vmatmul.mubr.bf16.vlgmr.msra.gmra.mrb[4].mxu1 %v14207_v2 }
 0x22d   : > { %5770 = vmatpush1.bf16.msra.mxu1 %v12083_v29  ;;  %5801 = vmatprep.mubr.bf16.mxu1 %v14205_v6  ;;  %v12175_v29 = vld [vmem:[#allocation8 + $0x117c] ss:$72 sps:$4 sm:$0xff]  }
 0x22e   : > { %5852 = vmatpush1.bf16.msra.mxu0 %v12086_v30  ;;  %5883 = vmatprep.mubr.bf16.mxu0 %v14203_v60  ;;  %v12173_v30 = vld [vmem:[#allocation8 + $0x1178] ss:$72 sps:$4 sm:$0xff]  }
 0x22f   : > { %5771 = vmatprep.subr.bf16.mxu1 %v12091_v31  ;;  %5853 = vmatprep.subr.bf16.mxu0 %v12094_v32  ;;  %v12178_v31 = vld [vmem:[#allocation8 + $0x884] ss:$72 sps:$4 sm:$0xff]   ;;  %v12176_v32 = vld [vmem:[#allocation8 + $0x880] ss:$72 sps:$4 sm:$0xff]  }
 0x231   : > { %5772 = vmatpush1.bf16.msra.mxu1 %v12089_v34  ;;  %v12181_v34 = vld [vmem:[#allocation8 + $0x120c] ss:$72 sps:$4 sm:$0xff]  }
 0x232   : > { %5854 = vmatpush1.bf16.msra.mxu0 %v12092_v35  ;;  %5773 = vmatprep.subr.bf16.mxu1 %v12097_v36  ;;  %v12179_v35 = vld [vmem:[#allocation8 + $0x1208] ss:$72 sps:$4 sm:$0xff]   ;;  %v12184_v36 = vld [vmem:[#allocation8 + $0x914] ss:$72 sps:$4 sm:$0xff]  }
 0x233   : > { %5855 = vmatprep.subr.bf16.mxu0 %v12100_v37  ;;  %v12182_v37 = vld [vmem:[#allocation8 + $0x910] ss:$72 sps:$4 sm:$0xff]  }
 0x235   : > { %5774 = vmatpush1.bf16.msra.mxu1 %v12095_v22  ;;  %v12187_v22 = vld [vmem:[#allocation8 + $0x129c] ss:$72 sps:$4 sm:$0xff]  }
 0x236   : > { %5856 = vmatpush1.bf16.msra.mxu0 %v12098_v38  ;;  %5775 = vmatprep.subr.bf16.mxu1 %v12103_v39  ;;  %v12185_v38 = vld [vmem:[#allocation8 + $0x1298] ss:$72 sps:$4 sm:$0xff]   ;;  %v12190_v39 = vld [vmem:[#allocation8 + $0x9a4] ss:$72 sps:$4 sm:$0xff]  }
 0x237   : > { %5857 = vmatprep.subr.bf16.mxu0 %v12106_v41  ;;  %v12193_v41 = vld [vmem:[#allocation8 + $0x132c] ss:$72 sps:$4 sm:$0xff]  }
 0x239   : > { %5776 = vmatpush1.bf16.msra.mxu1 %v12101_v40  ;;  %v12188_v40 = vld [vmem:[#allocation8 + $0x9a0] ss:$72 sps:$4 sm:$0xff]  }
 0x23a   : > { %5858 = vmatpush1.bf16.msra.mxu0 %v12104_v42  ;;  %5777 = vmatprep.subr.bf16.mxu1 %v12109_v43  ;;  %v12196_v42 = vld [vmem:[#allocation8 + $0xa34] ss:$72 sps:$4 sm:$0xff]   ;;  %v12191_v43 = vld [vmem:[#allocation8 + $0x1328] ss:$72 sps:$4 sm:$0xff]  }
 0x23b   : > { %5859 = vmatprep.subr.bf16.mxu0 %v12112_v45  ;;  %v12199_v45 = vld [vmem:[#allocation8 + $0x13bc] ss:$72 sps:$4 sm:$0xff]  }
 0x23d   : > { %5778 = vmatpush1.bf16.msra.mxu1 %v12107_v44  ;;  %v12194_v44 = vld [vmem:[#allocation8 + $0xa30] ss:$72 sps:$4 sm:$0xff]  }
 0x23e   : > { %5860 = vmatpush1.bf16.msra.mxu0 %v12110_v46  ;;  %5779 = vmatprep.subr.bf16.mxu1 %v12115_v47  ;;  %v12197_v46 = vld [vmem:[#allocation8 + $0x13b8] ss:$72 sps:$4 sm:$0xff]   ;;  %v12202_v47 = vld [vmem:[#allocation8 + $0xac4] ss:$72 sps:$4 sm:$0xff]  }
 0x23f   : > { %5861 = vmatprep.subr.bf16.mxu0 %v12118_v49  ;;  %v12205_v49 = vld [vmem:[#allocation8 + $0x144c] ss:$72 sps:$4 sm:$0xff]  }
 0x241   : > { %5780 = vmatpush1.bf16.msra.mxu1 %v12113_v48  ;;  %v12200_v48 = vld [vmem:[#allocation8 + $0xac0] ss:$72 sps:$4 sm:$0xff]  }
 0x242   : > { %5862 = vmatpush1.bf16.msra.mxu0 %v12116_v50  ;;  %5781 = vmatprep.subr.bf16.mxu1 %v12121_v51  ;;  %v12203_v50 = vld [vmem:[#allocation8 + $0x1448] ss:$72 sps:$4 sm:$0xff]   ;;  %v12208_v51 = vld [vmem:[#allocation8 + $0xb54] ss:$72 sps:$4 sm:$0xff]  }
 0x243   : > { %5863 = vmatprep.subr.bf16.mxu0 %v12124_v52  ;;  %v12206_v52 = vld [vmem:[#allocation8 + $0xb50] ss:$72 sps:$4 sm:$0xff]  }
 0x245   : > { %5782 = vmatpush1.bf16.msra.mxu1 %v12119_v53  ;;  %v12211_v53 = vld [vmem:[#allocation8 + $0x14dc] ss:$72 sps:$4 sm:$0xff]  }
 0x246   : > { %5864 = vmatpush1.bf16.msra.mxu0 %v12122_v54  ;;  %5783 = vmatprep.subr.bf16.mxu1 %v12127_v55  ;;  %v12209_v54 = vld [vmem:[#allocation8 + $0x14d8] ss:$72 sps:$4 sm:$0xff]   ;;  %v12214_v55 = vld [vmem:[#allocation8 + $0xbe4] ss:$72 sps:$4 sm:$0xff]  }
 0x247   : > { %5865 = vmatprep.subr.bf16.mxu0 %v12130_v59  ;;  %v12217_v59 = vld [vmem:[#allocation8 + $0x156c] ss:$72 sps:$4 sm:$0xff]  }
 0x249   : > { %5784 = vmatpush1.bf16.msra.mxu1 %v12125_v57  ;;  %v12212_v57 = vld [vmem:[#allocation8 + $0xbe0] ss:$72 sps:$4 sm:$0xff]  }
 0x24a   : > { %5866 = vmatpush1.bf16.msra.mxu0 %v12128_v61  ;;  %5785 = vmatprep.subr.bf16.mxu1 %v12133_v63  ;;  %v12220_v61 = vld [vmem:[#allocation8 + $0xc74] ss:$72 sps:$4 sm:$0xff]   ;;  %v12215_v63 = vld [vmem:[#allocation8 + $0x1568] ss:$72 sps:$4 sm:$0xff]  }
 0x24b   : > { %5867 = vmatprep.subr.bf16.mxu0 %v12136_v1  ;;  %v12223_v1 = vld [vmem:[#allocation8 + $0x15fc] ss:$72 sps:$4 sm:$0xff]  }
 0x24d   : > { %5786 = vmatpush1.bf16.msra.mxu1 %v12131_v0  ;;  %v12218_v0 = vld [vmem:[#allocation8 + $0xc70] ss:$72 sps:$4 sm:$0xff]  }
 0x24e   : > { %5868 = vmatpush1.bf16.msra.mxu0 %v12134_v3  ;;  %5787 = vmatprep.subr.bf16.mxu1 %v12139_v4  ;;  %v12226_v3 = vld [vmem:[#allocation8 + $0xd04] ss:$72 sps:$4 sm:$0xff]   ;;  %v12221_v4 = vld [vmem:[#allocation8 + $0x15f8] ss:$72 sps:$4 sm:$0xff]  }
 0x24f   : > { %5869 = vmatprep.subr.bf16.mxu0 %v12142_v7  ;;  %v12229_v7 = vld [vmem:[#allocation8 + $0x168c] ss:$72 sps:$4 sm:$0xff]  }
 0x251   : > { %5788 = vmatpush1.bf16.msra.mxu1 %v12137_v5  ;;  %v12224_v5 = vld [vmem:[#allocation8 + $0xd00] ss:$72 sps:$4 sm:$0xff]  }
 0x252   : > { %5870 = vmatpush1.bf16.msra.mxu0 %v12140_v8  ;;  %5789 = vmatprep.subr.bf16.mxu1 %v12145_v9  ;;  %v12227_v8 = vld [vmem:[#allocation8 + $0x1688] ss:$72 sps:$4 sm:$0xff]   ;;  %v12232_v9 = vld [vmem:[#allocation8 + $0xd94] ss:$72 sps:$4 sm:$0xff]  }
 0x253   : > { %5871 = vmatprep.subr.bf16.mxu0 %v12148_v11  ;;  %v12235_v11 = vld [vmem:[#allocation8 + $0x171c] ss:$72 sps:$4 sm:$0xff]  }
 0x255   : > { %5790 = vmatpush1.bf16.msra.mxu1 %v12143_v10  ;;  %v12230_v10 = vld [vmem:[#allocation8 + $0xd90] ss:$72 sps:$4 sm:$0xff]  }
 0x256   : > { %5872 = vmatpush1.bf16.msra.mxu0 %v12146_v12  ;;  %5791 = vmatprep.subr.bf16.mxu1 %v12151_v13  ;;  %v12233_v12 = vld [vmem:[#allocation8 + $0x1718] ss:$72 sps:$4 sm:$0xff]   ;;  %v12238_v13 = vld [vmem:[#allocation8 + $0xe24] ss:$72 sps:$4 sm:$0xff]  }
 0x257   : > { %5873 = vmatprep.subr.bf16.mxu0 %v12154_v15  ;;  %v12241_v15 = vld [vmem:[#allocation8 + $0x17ac] ss:$72 sps:$4 sm:$0xff]  }
 0x259   : > { %5792 = vmatpush1.bf16.msra.mxu1 %v12149_v14  ;;  %v12236_v14 = vld [vmem:[#allocation8 + $0xe20] ss:$72 sps:$4 sm:$0xff]  }
 0x25a   : > { %5874 = vmatpush1.bf16.msra.mxu0 %v12152_v16  ;;  %5793 = vmatprep.subr.bf16.mxu1 %v12157_v17  ;;  %v12239_v16 = vld [vmem:[#allocation8 + $0x17a8] ss:$72 sps:$4 sm:$0xff]   ;;  %v12244_v17 = vld [vmem:[#allocation8 + $0xeb4] ss:$72 sps:$4 sm:$0xff]  }
 0x25b   : > { %5875 = vmatprep.subr.bf16.mxu0 %v12160_v19  ;;  %v12247_v19 = vld [vmem:[#allocation8 + $0x183c] ss:$72 sps:$4 sm:$0xff]  }
 0x25d   : > { %5794 = vmatpush1.bf16.msra.mxu1 %v12155_v18  ;;  %v12242_v18 = vld [vmem:[#allocation8 + $0xeb0] ss:$72 sps:$4 sm:$0xff]  }
 0x25e   : > { %5876 = vmatpush1.bf16.msra.mxu0 %v12158_v58  ;;  %5795 = vmatprep.subr.bf16.mxu1 %v12163_v20  ;;  %v12245_v58 = vld [vmem:[#allocation8 + $0x1838] ss:$72 sps:$4 sm:$0xff]   ;;  %v12250_v20 = vld [vmem:[#allocation8 + $0xf44] ss:$72 sps:$4 sm:$0xff]  }
 0x25f   : > { %5877 = vmatprep.subr.bf16.mxu0 %v12166_v21  ;;  %v12253_v21 = vld [vmem:[#allocation8 + $0x18cc] ss:$72 sps:$4 sm:$0xff]  }
 0x261   : > { %5796 = vmatpush1.bf16.msra.mxu1 %v12161_v62  ;;  %v12248_v62 = vld [vmem:[#allocation8 + $0xf40] ss:$72 sps:$4 sm:$0xff]  }
 0x262   : > { %5878 = vmatpush1.bf16.msra.mxu0 %v12164_v56  ;;  %5797 = vmatprep.subr.bf16.mxu1 %v12169_v24  ;;  %v12251_v56 = vld [vmem:[#allocation8 + $0x18c8] ss:$72 sps:$4 sm:$0xff]   ;;  %v12256_v24 = vld [vmem:[#allocation8 + $0xfd4] ss:$72 sps:$4 sm:$0xff]  }
 0x263   : > { %5879 = vmatprep.subr.bf16.mxu0 %v12172_v26  ;;  %v12259_v26 = vld [vmem:[#allocation8 + $0x195c] ss:$72 sps:$4 sm:$0xff]  }
 0x265   : > { %5798 = vmatpush1.bf16.msra.mxu1 %v12167_v25  ;;  %v12254_v25 = vld [vmem:[#allocation8 + $0xfd0] ss:$72 sps:$4 sm:$0xff]  }
 0x266   : > { %5880 = vmatpush1.bf16.msra.mxu0 %v12170_v27  ;;  %5799 = vmatprep.subr.bf16.mxu1 %v12175_v29  ;;  %v12262_v27 = vld [vmem:[#allocation8 + $0x1064] ss:$72 sps:$4 sm:$0xff]   ;;  %v12257_v29 = vld [vmem:[#allocation8 + $0x1958] ss:$72 sps:$4 sm:$0xff]  }
 0x267   : > { %5881 = vmatprep.subr.bf16.mxu0 %v12178_v31  ;;  %v12265_v31 = vld [vmem:[#allocation8 + $0x19ec] ss:$72 sps:$4 sm:$0xff]  }
 0x269   : > { %5800 = vmatpush1.bf16.msra.mxu1 %v12173_v30  ;;  %v12260_v30 = vld [vmem:[#allocation8 + $0x1060] ss:$72 sps:$4 sm:$0xff]  }
 0x26a   : > { %5882 = vmatpush1.bf16.msra.mxu0 %v12176_v32  ;;  %5810 = vmatprep.subr.bf16.mxu1 %v12181_v34  ;;  %v12268_v32 = vld [vmem:[#allocation8 + $0x10f4] ss:$72 sps:$4 sm:$0xff]   ;;  %v12263_v34 = vld [vmem:[#allocation8 + $0x19e8] ss:$72 sps:$4 sm:$0xff]  }
 0x26b   : > { %5892 = vmatprep.subr.bf16.mxu0 %v12184_v36  ;;  %v12271_v36 = vld [vmem:[#allocation8 + $0x1a7c] ss:$72 sps:$4 sm:$0xff]  }
 0x26c   : > { %5802 = vmatmul.mubr.bf16.vlgmr.msra.gmra.mrb[4].mxu1 %v14209_v23 }
 0x26d   : > { %5884 = vmatmul.mubr.bf16.vlgmr.msra.gmra.mrb[4].mxu0 %v14207_v2  ;;  %5811 = vmatpush1.bf16.msra.mxu1 %v12179_v35  ;;  %v12266_v35 = vld [vmem:[#allocation8 + $0x10f0] ss:$72 sps:$4 sm:$0xff]  }
 0x26e   : > { %5842 = vmatprep.mubr.bf16.mxu1 %v14215_v28  ;;  %5893 = vmatpush1.bf16.msra.mxu0 %v12182_v37  ;;  %v12274_v37 = vld [vmem:[#allocation8 + $0x1184] ss:$72 sps:$4 sm:$0xff]  }
 0x26f   : > { %5924 = vmatprep.mubr.bf16.mxu0 %v14205_v6  ;;  %5812 = vmatprep.subr.bf16.mxu1 %v12187_v22  ;;  %v12269_v22 = vld [vmem:[#allocation8 + $0x1a78] ss:$72 sps:$4 sm:$0xff]  }
 0x270   : > { %5894 = vmatprep.subr.bf16.mxu0 %v12190_v39  ;;  %v12280_v39 = vld [vmem:[#allocation8 + $0x1c] ss:$72 sps:$4 sm:$0xff]  }
 0x271   : > { %5813 = vmatpush1.bf16.msra.mxu1 %v12185_v38  ;;  %v12272_v38 = vld [vmem:[#allocation8 + $0x1180] ss:$72 sps:$4 sm:$0xff]  }
 0x272   : > { %5895 = vmatpush1.bf16.msra.mxu0 %v12188_v40  ;;  %5814 = vmatprep.subr.bf16.mxu1 %v12193_v41  ;;  %v12277_v40 = vld [vmem:[#allocation8 + $0x1214] ss:$72 sps:$4 sm:$0xff]   ;;  %v12278_v41 = vld [vmem:[#allocation8 + $0x18] ss:$72 sps:$4 sm:$0xff]  }
 0x273   : > { %5896 = vmatprep.subr.bf16.mxu0 %v12196_v42  ;;  %v12275_v42 = vld [vmem:[#allocation8 + $0x1210] ss:$72 sps:$4 sm:$0xff]  }
 0x275   : > { %5815 = vmatpush1.bf16.msra.mxu1 %v12191_v43  ;;  %v12283_v43 = vld [vmem:[#allocation8 + $0x12a4] ss:$72 sps:$4 sm:$0xff]  }
 0x276   : > { %5897 = vmatpush1.bf16.msra.mxu0 %v12194_v44  ;;  %5816 = vmatprep.subr.bf16.mxu1 %v12199_v45  ;;  %v12286_v44 = vld [vmem:[#allocation8 + $0xac] ss:$72 sps:$4 sm:$0xff]   ;;  %v12284_v45 = vld [vmem:[#allocation8 + $0xa8] ss:$72 sps:$4 sm:$0xff]  }
 0x277   : > { %5898 = vmatprep.subr.bf16.mxu0 %v12202_v47  ;;  %v12292_v47 = vld [vmem:[#allocation8 + $0x13c] ss:$72 sps:$4 sm:$0xff]  }
 0x279   : > { %5817 = vmatpush1.bf16.msra.mxu1 %v12197_v46  ;;  %v12281_v46 = vld [vmem:[#allocation8 + $0x12a0] ss:$72 sps:$4 sm:$0xff]  }
 0x27a   : > { %5899 = vmatpush1.bf16.msra.mxu0 %v12200_v48  ;;  %5818 = vmatprep.subr.bf16.mxu1 %v12205_v49  ;;  %v12289_v48 = vld [vmem:[#allocation8 + $0x1334] ss:$72 sps:$4 sm:$0xff]   ;;  %v12290_v49 = vld [vmem:[#allocation8 + $0x138] ss:$72 sps:$4 sm:$0xff]  }
 0x27b   : > { %5900 = vmatprep.subr.bf16.mxu0 %v12208_v51  ;;  %v12298_v51 = vld [vmem:[#allocation8 + $0x1cc] ss:$72 sps:$4 sm:$0xff]  }
 0x27d   : > { %5819 = vmatpush1.bf16.msra.mxu1 %v12203_v50  ;;  %v12287_v50 = vld [vmem:[#allocation8 + $0x1330] ss:$72 sps:$4 sm:$0xff]  }
 0x27e   : > { %5901 = vmatpush1.bf16.msra.mxu0 %v12206_v52  ;;  %5820 = vmatprep.subr.bf16.mxu1 %v12211_v53  ;;  %v12295_v52 = vld [vmem:[#allocation8 + $0x13c4] ss:$72 sps:$4 sm:$0xff]   ;;  %v12296_v53 = vld [vmem:[#allocation8 + $0x1c8] ss:$72 sps:$4 sm:$0xff]  }
 0x27f   : > { %5902 = vmatprep.subr.bf16.mxu0 %v12214_v55  ;;  %v12304_v55 = vld [vmem:[#allocation8 + $0x25c] ss:$72 sps:$4 sm:$0xff]  }
 0x281   : > { %5821 = vmatpush1.bf16.msra.mxu1 %v12209_v54  ;;  %v12293_v54 = vld [vmem:[#allocation8 + $0x13c0] ss:$72 sps:$4 sm:$0xff]  }
 0x282   : > { %5903 = vmatpush1.bf16.msra.mxu0 %v12212_v57  ;;  %5822 = vmatprep.subr.bf16.mxu1 %v12217_v59  ;;  %v12301_v57 = vld [vmem:[#allocation8 + $0x1454] ss:$72 sps:$4 sm:$0xff]   ;;  %v12302_v59 = vld [vmem:[#allocation8 + $0x258] ss:$72 sps:$4 sm:$0xff]  }
 0x283   : > { %5904 = vmatprep.subr.bf16.mxu0 %v12220_v61  ;;  %v12299_v61 = vld [vmem:[#allocation8 + $0x1450] ss:$72 sps:$4 sm:$0xff]  }
 0x285   : > { %5823 = vmatpush1.bf16.msra.mxu1 %v12215_v63  ;;  %v12310_v63 = vld [vmem:[#allocation8 + $0x2ec] ss:$72 sps:$4 sm:$0xff]  }
 0x286   : > { %5905 = vmatpush1.bf16.msra.mxu0 %v12218_v0  ;;  %5824 = vmatprep.subr.bf16.mxu1 %v12223_v1  ;;  %v12307_v0 = vld [vmem:[#allocation8 + $0x14e4] ss:$72 sps:$4 sm:$0xff]   ;;  %v12308_v1 = vld [vmem:[#allocation8 + $0x2e8] ss:$72 sps:$4 sm:$0xff]  }
 0x287   : > { %5906 = vmatprep.subr.bf16.mxu0 %v12226_v3  ;;  %v12305_v3 = vld [vmem:[#allocation8 + $0x14e0] ss:$72 sps:$4 sm:$0xff]  }
 0x289   : > { %5825 = vmatpush1.bf16.msra.mxu1 %v12221_v4  ;;  %v12316_v4 = vld [vmem:[#allocation8 + $0x37c] ss:$72 sps:$4 sm:$0xff]  }
 0x28a   : > { %5907 = vmatpush1.bf16.msra.mxu0 %v12224_v5  ;;  %5826 = vmatprep.subr.bf16.mxu1 %v12229_v7  ;;  %v12313_v7 = vld [vmem:[#allocation8 + $0x1574] ss:$72 sps:$4 sm:$0xff]  }
 0x28b   : > { %5908 = vmatprep.subr.bf16.mxu0 %v12232_v9 }
 0x28d   : > { %5827 = vmatpush1.bf16.msra.mxu1 %v12227_v8 }
 0x28e   : > { %5909 = vmatpush1.bf16.msra.mxu0 %v12230_v10  ;;  %5828 = vmatprep.subr.bf16.mxu1 %v12235_v11  ;;  %v12314_v10 = vld [vmem:[#allocation8 + $0x378] ss:$72 sps:$4 sm:$0xff]  }
 0x28f   : > { %5910 = vmatprep.subr.bf16.mxu0 %v12238_v13  ;;  %v12322_v13 = vld [vmem:[#allocation8 + $0x40c] ss:$72 sps:$4 sm:$0xff]  }
 0x291   : > { %5829 = vmatpush1.bf16.msra.mxu1 %v12233_v12  ;;  %v12311_v12 = vld [vmem:[#allocation8 + $0x1570] ss:$72 sps:$4 sm:$0xff]  }
 0x292   : > { %5911 = vmatpush1.bf16.msra.mxu0 %v12236_v14  ;;  %5830 = vmatprep.subr.bf16.mxu1 %v12241_v15  ;;  %v12319_v14 = vld [vmem:[#allocation8 + $0x1604] ss:$72 sps:$4 sm:$0xff]   ;;  %v12320_v15 = vld [vmem:[#allocation8 + $0x408] ss:$72 sps:$4 sm:$0xff]  }
 0x293   : > { %5912 = vmatprep.subr.bf16.mxu0 %v12244_v17  ;;  %v12328_v17 = vld [vmem:[#allocation8 + $0x49c] ss:$72 sps:$4 sm:$0xff]  }
 0x295   : > { %5831 = vmatpush1.bf16.msra.mxu1 %v12239_v16  ;;  %v12317_v16 = vld [vmem:[#allocation8 + $0x1600] ss:$72 sps:$4 sm:$0xff]  }
 0x296   : > { %5913 = vmatpush1.bf16.msra.mxu0 %v12242_v18  ;;  %5832 = vmatprep.subr.bf16.mxu1 %v12247_v19  ;;  %v12325_v18 = vld [vmem:[#allocation8 + $0x1694] ss:$72 sps:$4 sm:$0xff]   ;;  %v12326_v19 = vld [vmem:[#allocation8 + $0x498] ss:$72 sps:$4 sm:$0xff]  }
 0x297   : > { %5914 = vmatprep.subr.bf16.mxu0 %v12250_v20  ;;  %v12334_v20 = vld [vmem:[#allocation8 + $0x52c] ss:$72 sps:$4 sm:$0xff]  }
 0x299   : > { %5833 = vmatpush1.bf16.msra.mxu1 %v12245_v58  ;;  %v12323_v58 = vld [vmem:[#allocation8 + $0x1690] ss:$72 sps:$4 sm:$0xff]  }
 0x29a   : > { %5915 = vmatpush1.bf16.msra.mxu0 %v12248_v62  ;;  %5834 = vmatprep.subr.bf16.mxu1 %v12253_v21  ;;  %v12331_v62 = vld [vmem:[#allocation8 + $0x1724] ss:$72 sps:$4 sm:$0xff]   ;;  %v12332_v21 = vld [vmem:[#allocation8 + $0x528] ss:$72 sps:$4 sm:$0xff]  }
 0x29b   : > { %5916 = vmatprep.subr.bf16.mxu0 %v12256_v24  ;;  %v12340_v24 = vld [vmem:[#allocation8 + $0x5bc] ss:$72 sps:$4 sm:$0xff]  }
 0x29d   : > { %5835 = vmatpush1.bf16.msra.mxu1 %v12251_v56  ;;  %v12329_v56 = vld [vmem:[#allocation8 + $0x1720] ss:$72 sps:$4 sm:$0xff]  }
 0x29e   : > { %5917 = vmatpush1.bf16.msra.mxu0 %v12254_v25  ;;  %5836 = vmatprep.subr.bf16.mxu1 %v12259_v26  ;;  %v12337_v25 = vld [vmem:[#allocation8 + $0x17b4] ss:$72 sps:$4 sm:$0xff]   ;;  %v12338_v26 = vld [vmem:[#allocation8 + $0x5b8] ss:$72 sps:$4 sm:$0xff]  }
 0x29f   : > { %5918 = vmatprep.subr.bf16.mxu0 %v12262_v27  ;;  %v12335_v27 = vld [vmem:[#allocation8 + $0x17b0] ss:$72 sps:$4 sm:$0xff]  }
 0x2a1   : > { %5837 = vmatpush1.bf16.msra.mxu1 %v12257_v29  ;;  %v12346_v29 = vld [vmem:[#allocation8 + $0x64c] ss:$72 sps:$4 sm:$0xff]  }
 0x2a2   : > { %5919 = vmatpush1.bf16.msra.mxu0 %v12260_v30  ;;  %5838 = vmatprep.subr.bf16.mxu1 %v12265_v31  ;;  %v12343_v30 = vld [vmem:[#allocation8 + $0x1844] ss:$72 sps:$4 sm:$0xff]   ;;  %v12344_v31 = vld [vmem:[#allocation8 + $0x648] ss:$72 sps:$4 sm:$0xff]  }
 0x2a3   : > { %5920 = vmatprep.subr.bf16.mxu0 %v12268_v32  ;;  %v12341_v32 = vld [vmem:[#allocation8 + $0x1840] ss:$72 sps:$4 sm:$0xff]  }
 0x2a5   : > { %5839 = vmatpush1.bf16.msra.mxu1 %v12263_v34  ;;  %v12352_v34 = vld [vmem:[#allocation8 + $0x6dc] ss:$72 sps:$4 sm:$0xff]  }
 0x2a6   : > { %5921 = vmatpush1.bf16.msra.mxu0 %v12266_v35  ;;  %5840 = vmatprep.subr.bf16.mxu1 %v12271_v36  ;;  %v12349_v35 = vld [vmem:[#allocation8 + $0x18d4] ss:$72 sps:$4 sm:$0xff]   ;;  %v12350_v36 = vld [vmem:[#allocation8 + $0x6d8] ss:$72 sps:$4 sm:$0xff]  }
 0x2a7   : > { %5922 = vmatprep.subr.bf16.mxu0 %v12274_v37  ;;  %v12347_v37 = vld [vmem:[#allocation8 + $0x18d0] ss:$72 sps:$4 sm:$0xff]  }
 0x2a9   : > { %5841 = vmatpush1.bf16.msra.mxu1 %v12269_v22  ;;  %v12358_v22 = vld [vmem:[#allocation8 + $0x76c] ss:$72 sps:$4 sm:$0xff]  }
 0x2aa   : > { %5923 = vmatpush1.bf16.msra.mxu0 %v12272_v38  ;;  %5974 = vmatprep.subr.bf16.mxu1 %v12280_v39  ;;  %v12355_v38 = vld [vmem:[#allocation8 + $0x1964] ss:$72 sps:$4 sm:$0xff]   ;;  %v12356_v39 = vld [vmem:[#allocation8 + $0x768] ss:$72 sps:$4 sm:$0xff]  }
 0x2ab   : > { %5933 = vmatprep.subr.bf16.mxu0 %v12277_v40  ;;  %v12353_v40 = vld [vmem:[#allocation8 + $0x1960] ss:$72 sps:$4 sm:$0xff]  }
 0x2ac   : > { %5843 = vmatmul.mubr.bf16.vlgmr.msra.gmra.mrb[4].mxu1 %v14221_v33 }
 0x2ad   : > { %5925 = vmatmul.mubr.bf16.vlgmr.msra.gmra.mrb[4].mxu0 %v14209_v23  ;;  %5975 = vmatpush1.bf16.msra.mxu1 %v12278_v41  ;;  %v12364_v41 = vld [vmem:[#allocation8 + $0x7fc] ss:$72 sps:$4 sm:$0xff]  }
 0x2ae   : > { %5934 = vmatpush1.bf16.msra.mxu0 %v12275_v42  ;;  %5965 = vmatprep.mubr.bf16.mxu0 %v14215_v28  ;;  %v12361_v42 = vld [vmem:[#allocation8 + $0x19f4] ss:$72 sps:$4 sm:$0xff]  }
 0x2af   : > { %6006 = vmatprep.mubr.bf16.mxu1 %v14203_v60  ;;  %5935 = vmatprep.subr.bf16.mxu0 %v12283_v43  ;;  %v12362_v43 = vld [vmem:[#allocation8 + $0x7f8] ss:$72 sps:$4 sm:$0xff]  }
 0x2b0   : > { %5976 = vmatprep.subr.bf16.mxu1 %v12286_v44  ;;  %v12359_v44 = vld [vmem:[#allocation8 + $0x19f0] ss:$72 sps:$4 sm:$0xff]  }
 0x2b1   : > { %5977 = vmatpush1.bf16.msra.mxu1 %v12284_v45  ;;  %v12370_v45 = vld [vmem:[#allocation8 + $0x88c] ss:$72 sps:$4 sm:$0xff]  }
 0x2b2   : > { %5936 = vmatpush1.bf16.msra.mxu0 %v12281_v46  ;;  %5978 = vmatprep.subr.bf16.mxu1 %v12292_v47  ;;  %v12367_v46 = vld [vmem:[#allocation8 + $0x1a84] ss:$72 sps:$4 sm:$0xff]   ;;  %v12368_v47 = vld [vmem:[#allocation8 + $0x888] ss:$72 sps:$4 sm:$0xff]  }
 0x2b3   : > { %5937 = vmatprep.subr.bf16.mxu0 %v12289_v48  ;;  %v12365_v48 = vld [vmem:[#allocation8 + $0x1a80] ss:$72 sps:$4 sm:$0xff]  }
 0x2b5   : > { %5979 = vmatpush1.bf16.msra.mxu1 %v12290_v49  ;;  %v12373_v49 = vld [vmem:[#allocation8 + $0x91c] ss:$72 sps:$4 sm:$0xff]  }
 0x2b6   : > { %5938 = vmatpush1.bf16.msra.mxu0 %v12287_v50  ;;  %5980 = vmatprep.subr.bf16.mxu1 %v12298_v51  ;;  %v12376_v50 = vld [vmem:[#allocation8 + $0x24] ss:$72 sps:$4 sm:$0xff]   ;;  %v12371_v51 = vld [vmem:[#allocation8 + $0x918] ss:$72 sps:$4 sm:$0xff]  }
 0x2b7   : > { %5939 = vmatprep.subr.bf16.mxu0 %v12295_v52  ;;  %v12374_v52 = vld [vmem:[#allocation8 + $0x20] ss:$72 sps:$4 sm:$0xff]  }
 0x2b9   : > { %5981 = vmatpush1.bf16.msra.mxu1 %v12296_v53  ;;  %v12379_v53 = vld [vmem:[#allocation8 + $0x9ac] ss:$72 sps:$4 sm:$0xff]  }
 0x2ba   : > { %5940 = vmatpush1.bf16.msra.mxu0 %v12293_v54  ;;  %5982 = vmatprep.subr.bf16.mxu1 %v12304_v55  ;;  %v12382_v54 = vld [vmem:[#allocation8 + $0xb4] ss:$72 sps:$4 sm:$0xff]   ;;  %v12377_v55 = vld [vmem:[#allocation8 + $0x9a8] ss:$72 sps:$4 sm:$0xff]  }
 0x2bb   : > { %5941 = vmatprep.subr.bf16.mxu0 %v12301_v57  ;;  %v12380_v57 = vld [vmem:[#allocation8 + $0xb0] ss:$72 sps:$4 sm:$0xff]  }
 0x2bd   : > { %5983 = vmatpush1.bf16.msra.mxu1 %v12302_v59  ;;  %v12385_v59 = vld [vmem:[#allocation8 + $0xa3c] ss:$72 sps:$4 sm:$0xff]  }
 0x2be   : > { %5942 = vmatpush1.bf16.msra.mxu0 %v12299_v61  ;;  %5984 = vmatprep.subr.bf16.mxu1 %v12310_v63  ;;  %v12388_v61 = vld [vmem:[#allocation8 + $0x144] ss:$72 sps:$4 sm:$0xff]   ;;  %v12383_v63 = vld [vmem:[#allocation8 + $0xa38] ss:$72 sps:$4 sm:$0xff]  }
 0x2bf   : > { %v14235_v5 = vpop.f32.mrb[0].mxu1  ;;  %5943 = vmatprep.subr.bf16.mxu0 %v12307_v0  ;;  %v12386_v0 = vld [vmem:[#allocation8 + $0x140] ss:$72 sps:$4 sm:$0xff]  }
 0x2c0   : > { %v14237_v8 = vpop.f32.mrb[1].mxu1 }
 0x2c1   : > { %5985 = vmatpush1.bf16.msra.mxu1 %v12308_v1  ;;  %v5643_v9 = vpop.f32.mrb[2].mxu1  ;;  %v12391_v1 = vld [vmem:[#allocation8 + $0xacc] ss:$72 sps:$4 sm:$0xff]  }
 0x2c2   : > { %5944 = vmatpush1.bf16.msra.mxu0 %v12305_v3  ;;  %v5644_v11 = vpop.f32.mrb[3].mxu1  ;;  %5986 = vmatprep.subr.bf16.mxu1 %v12316_v4  ;;  %v12394_v3 = vld [vmem:[#allocation8 + $0x1d4] ss:$72 sps:$4 sm:$0xff]   ;;  %v12389_v4 = vld [vmem:[#allocation8 + $0xac8] ss:$72 sps:$4 sm:$0xff]  }
 0x2c3   : > { %5945 = vmatprep.subr.bf16.mxu0 %v12313_v7  ;;  %v12392_v7 = vld [vmem:[#allocation8 + $0x1d0] ss:$72 sps:$4 sm:$0xff]   ;;  %v12397_v9 = vld [vmem:[#allocation8 + $0xb5c] ss:$72 sps:$4 sm:$0xff]  }
 0x2c4   : > { %v12395_v11 = vld [vmem:[#allocation8 + $0xb58] ss:$72 sps:$4 sm:$0xff]  }
 0x2c5   : > { %5987 = vmatpush1.bf16.msra.mxu1 %v12314_v10  ;;  %v12400_v10 = vld [vmem:[#allocation8 + $0x264] ss:$72 sps:$4 sm:$0xff]  }
 0x2c6   : > { %5946 = vmatpush1.bf16.msra.mxu0 %v12311_v12  ;;  %5988 = vmatprep.subr.bf16.mxu1 %v12322_v13  ;;  %v12398_v12 = vld [vmem:[#allocation8 + $0x260] ss:$72 sps:$4 sm:$0xff]   ;;  %v12403_v13 = vld [vmem:[#allocation8 + $0xbec] ss:$72 sps:$4 sm:$0xff]  }
 0x2c7   : > { %5947 = vmatprep.subr.bf16.mxu0 %v12319_v14  ;;  %v12406_v14 = vld [vmem:[#allocation8 + $0x2f4] ss:$72 sps:$4 sm:$0xff]  }
 0x2c9   : > { %5989 = vmatpush1.bf16.msra.mxu1 %v12320_v15  ;;  %v12401_v15 = vld [vmem:[#allocation8 + $0xbe8] ss:$72 sps:$4 sm:$0xff]  }
 0x2ca   : > { %5948 = vmatpush1.bf16.msra.mxu0 %v12317_v16  ;;  %5990 = vmatprep.subr.bf16.mxu1 %v12328_v17  ;;  %v12404_v16 = vld [vmem:[#allocation8 + $0x2f0] ss:$72 sps:$4 sm:$0xff]   ;;  %v12409_v17 = vld [vmem:[#allocation8 + $0xc7c] ss:$72 sps:$4 sm:$0xff]  }
 0x2cb   : > { %5949 = vmatprep.subr.bf16.mxu0 %v12325_v18 }
 0x2cd   : > { %5991 = vmatpush1.bf16.msra.mxu1 %v12326_v19  ;;  %v12412_v19 = vld [vmem:[#allocation8 + $0x384] ss:$72 sps:$4 sm:$0xff]  }
 0x2ce   : > { %5950 = vmatpush1.bf16.msra.mxu0 %v12323_v58  ;;  %5992 = vmatprep.subr.bf16.mxu1 %v12334_v20 }
 0x2cf   : > { %5951 = vmatprep.subr.bf16.mxu0 %v12331_v62 }
 0x2d1   : > { %5993 = vmatpush1.bf16.msra.mxu1 %v12332_v21 }
 0x2d2   : > { %5952 = vmatpush1.bf16.msra.mxu0 %v12329_v56  ;;  %5994 = vmatprep.subr.bf16.mxu1 %v12340_v24  ;;  %v12407_v56 = vld [vmem:[#allocation8 + $0xc78] ss:$72 sps:$4 sm:$0xff]  }
 0x2d3   : > { %5953 = vmatprep.subr.bf16.mxu0 %v12337_v25  ;;  %v12410_v25 = vld [vmem:[#allocation8 + $0x380] ss:$72 sps:$4 sm:$0xff]  }
 0x2d5   : > { %5995 = vmatpush1.bf16.msra.mxu1 %v12338_v26  ;;  %v12415_v26 = vld [vmem:[#allocation8 + $0xd0c] ss:$72 sps:$4 sm:$0xff]  }
 0x2d6   : > { %5954 = vmatpush1.bf16.msra.mxu0 %v12335_v27  ;;  %5996 = vmatprep.subr.bf16.mxu1 %v12346_v29  ;;  %v12418_v27 = vld [vmem:[#allocation8 + $0x414] ss:$72 sps:$4 sm:$0xff]   ;;  %v12413_v29 = vld [vmem:[#allocation8 + $0xd08] ss:$72 sps:$4 sm:$0xff]  }
 0x2d7   : > { %5955 = vmatprep.subr.bf16.mxu0 %v12343_v30  ;;  %v12421_v30 = vld [vmem:[#allocation8 + $0xd9c] ss:$72 sps:$4 sm:$0xff]  }
 0x2d9   : > { %5997 = vmatpush1.bf16.msra.mxu1 %v12344_v31  ;;  %v12424_v31 = vld [vmem:[#allocation8 + $0x4a4] ss:$72 sps:$4 sm:$0xff]  }
 0x2da   : > { %5956 = vmatpush1.bf16.msra.mxu0 %v12341_v32  ;;  %5998 = vmatprep.subr.bf16.mxu1 %v12352_v34  ;;  %v12422_v32 = vld [vmem:[#allocation8 + $0x4a0] ss:$72 sps:$4 sm:$0xff]   ;;  %v12427_v34 = vld [vmem:[#allocation8 + $0xe2c] ss:$72 sps:$4 sm:$0xff]  }
 0x2db   : > { %5957 = vmatprep.subr.bf16.mxu0 %v12349_v35  ;;  %v12430_v35 = vld [vmem:[#allocation8 + $0x534] ss:$72 sps:$4 sm:$0xff]  }
 0x2dd   : > { %5999 = vmatpush1.bf16.msra.mxu1 %v12350_v36  ;;  %v12425_v36 = vld [vmem:[#allocation8 + $0xe28] ss:$72 sps:$4 sm:$0xff]  }
 0x2de   : > { %5958 = vmatpush1.bf16.msra.mxu0 %v12347_v37  ;;  %6000 = vmatprep.subr.bf16.mxu1 %v12358_v22  ;;  %v12428_v37 = vld [vmem:[#allocation8 + $0x530] ss:$72 sps:$4 sm:$0xff]   ;;  %v12433_v22 = vld [vmem:[#allocation8 + $0xebc] ss:$72 sps:$4 sm:$0xff]  }
 0x2df   : > { %5959 = vmatprep.subr.bf16.mxu0 %v12355_v38  ;;  %v12436_v38 = vld [vmem:[#allocation8 + $0x5c4] ss:$72 sps:$4 sm:$0xff]  }
 0x2e1   : > { %6001 = vmatpush1.bf16.msra.mxu1 %v12356_v39  ;;  %v12431_v39 = vld [vmem:[#allocation8 + $0xeb8] ss:$72 sps:$4 sm:$0xff]  }
 0x2e2   : > { %5960 = vmatpush1.bf16.msra.mxu0 %v12353_v40  ;;  %6002 = vmatprep.subr.bf16.mxu1 %v12364_v41  ;;  %v12434_v40 = vld [vmem:[#allocation8 + $0x5c0] ss:$72 sps:$4 sm:$0xff]   ;;  %v12439_v41 = vld [vmem:[#allocation8 + $0xf4c] ss:$72 sps:$4 sm:$0xff]  }
 0x2e3   : > { %5961 = vmatprep.subr.bf16.mxu0 %v12361_v42  ;;  %v12442_v42 = vld [vmem:[#allocation8 + $0x654] ss:$72 sps:$4 sm:$0xff]  }
 0x2e5   : > { %6003 = vmatpush1.bf16.msra.mxu1 %v12362_v43  ;;  %v12437_v43 = vld [vmem:[#allocation8 + $0xf48] ss:$72 sps:$4 sm:$0xff]  }
 0x2e6   : > { %5962 = vmatpush1.bf16.msra.mxu0 %v12359_v44  ;;  %6004 = vmatprep.subr.bf16.mxu1 %v12370_v45  ;;  %v12440_v44 = vld [vmem:[#allocation8 + $0x650] ss:$72 sps:$4 sm:$0xff]   ;;  %v12445_v45 = vld [vmem:[#allocation8 + $0xfdc] ss:$72 sps:$4 sm:$0xff]  }
 0x2e7   : > { %5963 = vmatprep.subr.bf16.mxu0 %v12367_v46  ;;  %v12448_v46 = vld [vmem:[#allocation8 + $0x6e4] ss:$72 sps:$4 sm:$0xff]  }
 0x2e9   : > { %6005 = vmatpush1.bf16.msra.mxu1 %v12368_v47  ;;  %v12443_v47 = vld [vmem:[#allocation8 + $0xfd8] ss:$72 sps:$4 sm:$0xff]  }
 0x2ea   : > { %5964 = vmatpush1.bf16.msra.mxu0 %v12365_v48  ;;  %6015 = vmatprep.subr.bf16.mxu1 %v12373_v49  ;;  %v12446_v48 = vld [vmem:[#allocation8 + $0x6e0] ss:$72 sps:$4 sm:$0xff]   ;;  %v12451_v49 = vld [vmem:[#allocation8 + $0x106c] ss:$72 sps:$4 sm:$0xff]  }
 0x2eb   : > { %6097 = vmatprep.subr.bf16.mxu0 %v12376_v50  ;;  %v12454_v50 = vld [vmem:[#allocation8 + $0x774] ss:$72 sps:$4 sm:$0xff]  }
 0x2ec   : > { %6007 = vmatmul.mubr.bf16.vlgmr.msra.gmra.mrb[8].mxu1 %v14207_v2 }
 0x2ed   : > { %5966 = vmatmul.mubr.bf16.vlgmr.msra.gmra.mrb[4].mxu0 %v14221_v33  ;;  %6016 = vmatpush1.bf16.msra.mxu1 %v12371_v51  ;;  %v12449_v51 = vld [vmem:[#allocation8 + $0x1068] ss:$72 sps:$4 sm:$0xff]  }
 0x2ee   : > { %6047 = vmatprep.mubr.bf16.mxu1 %v14205_v6  ;;  %6098 = vmatpush1.bf16.msra.mxu0 %v12374_v52  ;;  %v12452_v52 = vld [vmem:[#allocation8 + $0x770] ss:$72 sps:$4 sm:$0xff]  }
 0x2ef   : > { %6129 = vmatprep.mubr.bf16.mxu0 %v14203_v60  ;;  %6017 = vmatprep.subr.bf16.mxu1 %v12379_v53  ;;  %v12457_v53 = vld [vmem:[#allocation8 + $0x10fc] ss:$72 sps:$4 sm:$0xff]  }
 0x2f0   : > { %6099 = vmatprep.subr.bf16.mxu0 %v12382_v54  ;;  %v12460_v54 = vld [vmem:[#allocation8 + $0x804] ss:$72 sps:$4 sm:$0xff]  }
 0x2f1   : > { %6018 = vmatpush1.bf16.msra.mxu1 %v12377_v55  ;;  %v12455_v55 = vld [vmem:[#allocation8 + $0x10f8] ss:$72 sps:$4 sm:$0xff]  }
 0x2f2   : > { %6100 = vmatpush1.bf16.msra.mxu0 %v12380_v57  ;;  %6019 = vmatprep.subr.bf16.mxu1 %v12385_v59  ;;  %v12458_v57 = vld [vmem:[#allocation8 + $0x800] ss:$72 sps:$4 sm:$0xff]   ;;  %v12463_v59 = vld [vmem:[#allocation8 + $0x118c] ss:$72 sps:$4 sm:$0xff]  }
 0x2f3   : > { %6101 = vmatprep.subr.bf16.mxu0 %v12388_v61  ;;  %v12466_v61 = vld [vmem:[#allocation8 + $0x894] ss:$72 sps:$4 sm:$0xff]  }
 0x2f5   : > { %6020 = vmatpush1.bf16.msra.mxu1 %v12383_v63  ;;  %v12461_v63 = vld [vmem:[#allocation8 + $0x1188] ss:$72 sps:$4 sm:$0xff]  }
 0x2f6   : > { %6102 = vmatpush1.bf16.msra.mxu0 %v12386_v0  ;;  %6021 = vmatprep.subr.bf16.mxu1 %v12391_v1  ;;  %v12464_v0 = vld [vmem:[#allocation8 + $0x890] ss:$72 sps:$4 sm:$0xff]   ;;  %v12469_v1 = vld [vmem:[#allocation8 + $0x121c] ss:$72 sps:$4 sm:$0xff]  }
 0x2f7   : > { %6103 = vmatprep.subr.bf16.mxu0 %v12394_v3  ;;  %v12472_v3 = vld [vmem:[#allocation8 + $0x924] ss:$72 sps:$4 sm:$0xff]  }
 0x2f9   : > { %6022 = vmatpush1.bf16.msra.mxu1 %v12389_v4  ;;  %v12467_v4 = vld [vmem:[#allocation8 + $0x1218] ss:$72 sps:$4 sm:$0xff]  }
 0x2fa   : > { %6104 = vmatpush1.bf16.msra.mxu0 %v12392_v7  ;;  %6023 = vmatprep.subr.bf16.mxu1 %v12397_v9  ;;  %v12470_v7 = vld [vmem:[#allocation8 + $0x920] ss:$72 sps:$4 sm:$0xff]   ;;  %v12475_v9 = vld [vmem:[#allocation8 + $0x12ac] ss:$72 sps:$4 sm:$0xff]  }
 0x2fb   : > { %6105 = vmatprep.subr.bf16.mxu0 %v12400_v10  ;;  %v12478_v10 = vld [vmem:[#allocation8 + $0x9b4] ss:$72 sps:$4 sm:$0xff]  }
 0x2fd   : > { %6024 = vmatpush1.bf16.msra.mxu1 %v12395_v11  ;;  %v12473_v11 = vld [vmem:[#allocation8 + $0x12a8] ss:$72 sps:$4 sm:$0xff]  }
 0x2fe   : > { %6106 = vmatpush1.bf16.msra.mxu0 %v12398_v12  ;;  %6025 = vmatprep.subr.bf16.mxu1 %v12403_v13  ;;  %v12476_v12 = vld [vmem:[#allocation8 + $0x9b0] ss:$72 sps:$4 sm:$0xff]   ;;  %v12481_v13 = vld [vmem:[#allocation8 + $0x133c] ss:$72 sps:$4 sm:$0xff]  }
 0x2ff   : > { %v5721_v18 = vpop.f32.mrb[0].mxu0  ;;  %6107 = vmatprep.subr.bf16.mxu0 %v12406_v14  ;;  %v12484_v14 = vld [vmem:[#allocation8 + $0xa44] ss:$72 sps:$4 sm:$0xff]  }
 0x300   : > { %v14244_v58 = vadd.f32 %v5721_v18, %v14235_v5  ;;  %v5723_v20 = vpop.f32.mrb[1].mxu0  ;;  %v12416_v5 = vld [vmem:[#allocation8 + $0x410] ss:$72 sps:$4 sm:$0xff]   ;;  %v12490_v18 = vld [vmem:[#allocation8 + $0xad4] ss:$72 sps:$4 sm:$0xff]  }
 0x301   : > { %v14247_v62 = vadd.f32 %v5723_v20, %v14237_v8  ;;  %v5725_v21 = vpop.f32.mrb[2].mxu0  ;;  %6026 = vmatpush1.bf16.msra.mxu1 %v12401_v15  ;;  %v12419_v8 = vld [vmem:[#allocation8 + $0xd98] ss:$72 sps:$4 sm:$0xff]  }
 0x302   : > { %6108 = vmatpush1.bf16.msra.mxu0 %v12404_v16  ;;  %v5726_v24 = vpop.f32.mrb[3].mxu0  ;;  %6027 = vmatprep.subr.bf16.mxu1 %v12409_v17  ;;  %v12479_v15 = vld [vmem:[#allocation8 + $0x1338] ss:$72 sps:$4 sm:$0xff]   ;;  %v12487_v17 = vld [vmem:[#allocation8 + $0x13cc] ss:$72 sps:$4 sm:$0xff]  }
 0x303   : > { %6109 = vmatprep.subr.bf16.mxu0 %v12412_v19  ;;  %v12482_v16 = vld [vmem:[#allocation8 + $0xa40] ss:$72 sps:$4 sm:$0xff]   ;;  %v12488_v20 = vld [vmem:[#allocation8 + $0xad0] ss:$72 sps:$4 sm:$0xff]   ;;  %v12493_v21 = vld [vmem:[#allocation8 + $0x145c] ss:$72 sps:$4 sm:$0xff]  }
 0x304   : > { %v12485_v19 = vld [vmem:[#allocation8 + $0x13c8] ss:$72 sps:$4 sm:$0xff]   ;;  %v12491_v24 = vld [vmem:[#allocation8 + $0x1458] ss:$72 sps:$4 sm:$0xff]  }
 0x305   : > { %6028 = vmatpush1.bf16.msra.mxu1 %v12407_v56  ;;  %v12496_v56 = vld [vmem:[#allocation8 + $0xb64] ss:$72 sps:$4 sm:$0xff]  }
 0x306   : > { %6110 = vmatpush1.bf16.msra.mxu0 %v12410_v25  ;;  %6029 = vmatprep.subr.bf16.mxu1 %v12415_v26  ;;  %v12494_v25 = vld [vmem:[#allocation8 + $0xb60] ss:$72 sps:$4 sm:$0xff]   ;;  %v12499_v26 = vld [vmem:[#allocation8 + $0x14ec] ss:$72 sps:$4 sm:$0xff]  }
 0x307   : > { %6111 = vmatprep.subr.bf16.mxu0 %v12418_v27  ;;  %v12502_v27 = vld [vmem:[#allocation8 + $0xbf4] ss:$72 sps:$4 sm:$0xff]  }
 0x309   : > { %6030 = vmatpush1.bf16.msra.mxu1 %v12413_v29  ;;  %v12497_v29 = vld [vmem:[#allocation8 + $0x14e8] ss:$72 sps:$4 sm:$0xff]  }
 0x30a   : > { %6112 = vmatpush1.bf16.msra.mxu0 %v12416_v5  ;;  %6031 = vmatprep.subr.bf16.mxu1 %v12421_v30  ;;  %v12500_v5 = vld [vmem:[#allocation8 + $0xbf0] ss:$72 sps:$4 sm:$0xff]   ;;  %v12505_v30 = vld [vmem:[#allocation8 + $0x157c] ss:$72 sps:$4 sm:$0xff]  }
 0x30b   : > { %6113 = vmatprep.subr.bf16.mxu0 %v12424_v31  ;;  %v12508_v31 = vld [vmem:[#allocation8 + $0xc84] ss:$72 sps:$4 sm:$0xff]  }
 0x30d   : > { %6032 = vmatpush1.bf16.msra.mxu1 %v12419_v8  ;;  %v12503_v8 = vld [vmem:[#allocation8 + $0x1578] ss:$72 sps:$4 sm:$0xff]  }
 0x30e   : > { %6114 = vmatpush1.bf16.msra.mxu0 %v12422_v32  ;;  %6033 = vmatprep.subr.bf16.mxu1 %v12427_v34  ;;  %v12506_v32 = vld [vmem:[#allocation8 + $0xc80] ss:$72 sps:$4 sm:$0xff]   ;;  %v12511_v34 = vld [vmem:[#allocation8 + $0x160c] ss:$72 sps:$4 sm:$0xff]  }
 0x30f   : > { %6115 = vmatprep.subr.bf16.mxu0 %v12430_v35  ;;  %v12514_v35 = vld [vmem:[#allocation8 + $0xd14] ss:$72 sps:$4 sm:$0xff]  }
 0x311   : > { %6034 = vmatpush1.bf16.msra.mxu1 %v12425_v36  ;;  %v12509_v36 = vld [vmem:[#allocation8 + $0x1608] ss:$72 sps:$4 sm:$0xff]  }
 0x312   : > { %6116 = vmatpush1.bf16.msra.mxu0 %v12428_v37  ;;  %6035 = vmatprep.subr.bf16.mxu1 %v12433_v22  ;;  %v12512_v37 = vld [vmem:[#allocation8 + $0xd10] ss:$72 sps:$4 sm:$0xff]   ;;  %v12517_v22 = vld [vmem:[#allocation8 + $0x169c] ss:$72 sps:$4 sm:$0xff]  }
 0x313   : > { %6117 = vmatprep.subr.bf16.mxu0 %v12436_v38  ;;  %v12520_v38 = vld [vmem:[#allocation8 + $0xda4] ss:$72 sps:$4 sm:$0xff]  }
 0x315   : > { %6036 = vmatpush1.bf16.msra.mxu1 %v12431_v39  ;;  %v12515_v39 = vld [vmem:[#allocation8 + $0x1698] ss:$72 sps:$4 sm:$0xff]  }
 0x316   : > { %6118 = vmatpush1.bf16.msra.mxu0 %v12434_v40  ;;  %6037 = vmatprep.subr.bf16.mxu1 %v12439_v41  ;;  %v12518_v40 = vld [vmem:[#allocation8 + $0xda0] ss:$72 sps:$4 sm:$0xff]   ;;  %v12523_v41 = vld [vmem:[#allocation8 + $0x172c] ss:$72 sps:$4 sm:$0xff]  }
 0x317   : > { %6119 = vmatprep.subr.bf16.mxu0 %v12442_v42  ;;  %v12526_v42 = vld [vmem:[#allocation8 + $0xe34] ss:$72 sps:$4 sm:$0xff]  }
 0x319   : > { %6038 = vmatpush1.bf16.msra.mxu1 %v12437_v43  ;;  %v12521_v43 = vld [vmem:[#allocation8 + $0x1728] ss:$72 sps:$4 sm:$0xff]  }
 0x31a   : > { %6120 = vmatpush1.bf16.msra.mxu0 %v12440_v44  ;;  %6039 = vmatprep.subr.bf16.mxu1 %v12445_v45  ;;  %v12524_v44 = vld [vmem:[#allocation8 + $0xe30] ss:$72 sps:$4 sm:$0xff]   ;;  %v12529_v45 = vld [vmem:[#allocation8 + $0x17bc] ss:$72 sps:$4 sm:$0xff]  }
 0x31b   : > { %6121 = vmatprep.subr.bf16.mxu0 %v12448_v46  ;;  %v12532_v46 = vld [vmem:[#allocation8 + $0xec4] ss:$72 sps:$4 sm:$0xff]  }
 0x31d   : > { %6040 = vmatpush1.bf16.msra.mxu1 %v12443_v47  ;;  %v12527_v47 = vld [vmem:[#allocation8 + $0x17b8] ss:$72 sps:$4 sm:$0xff]  }
 0x31e   : > { %6122 = vmatpush1.bf16.msra.mxu0 %v12446_v48  ;;  %6041 = vmatprep.subr.bf16.mxu1 %v12451_v49  ;;  %v12530_v48 = vld [vmem:[#allocation8 + $0xec0] ss:$72 sps:$4 sm:$0xff]   ;;  %v12535_v49 = vld [vmem:[#allocation8 + $0x184c] ss:$72 sps:$4 sm:$0xff]  }
 0x31f   : > { %6123 = vmatprep.subr.bf16.mxu0 %v12454_v50  ;;  %v12538_v50 = vld [vmem:[#allocation8 + $0xf54] ss:$72 sps:$4 sm:$0xff]  }
 0x321   : > { %6042 = vmatpush1.bf16.msra.mxu1 %v12449_v51  ;;  %v12533_v51 = vld [vmem:[#allocation8 + $0x1848] ss:$72 sps:$4 sm:$0xff]  }
 0x322   : > { %6124 = vmatpush1.bf16.msra.mxu0 %v12452_v52  ;;  %6043 = vmatprep.subr.bf16.mxu1 %v12457_v53  ;;  %v12536_v52 = vld [vmem:[#allocation8 + $0xf50] ss:$72 sps:$4 sm:$0xff]   ;;  %v12541_v53 = vld [vmem:[#allocation8 + $0x18dc] ss:$72 sps:$4 sm:$0xff]  }
 0x323   : > { %6125 = vmatprep.subr.bf16.mxu0 %v12460_v54  ;;  %v12544_v54 = vld [vmem:[#allocation8 + $0xfe4] ss:$72 sps:$4 sm:$0xff]  }
 0x325   : > { %6044 = vmatpush1.bf16.msra.mxu1 %v12455_v55  ;;  %v12539_v55 = vld [vmem:[#allocation8 + $0x18d8] ss:$72 sps:$4 sm:$0xff]  }
 0x326   : > { %6126 = vmatpush1.bf16.msra.mxu0 %v12458_v57  ;;  %6045 = vmatprep.subr.bf16.mxu1 %v12463_v59  ;;  %v12542_v57 = vld [vmem:[#allocation8 + $0xfe0] ss:$72 sps:$4 sm:$0xff]   ;;  %v12547_v59 = vld [vmem:[#allocation8 + $0x196c] ss:$72 sps:$4 sm:$0xff]  }
 0x327   : > { %6127 = vmatprep.subr.bf16.mxu0 %v12466_v61  ;;  %v12550_v61 = vld [vmem:[#allocation8 + $0x1074] ss:$72 sps:$4 sm:$0xff]  }
 0x329   : > { %6046 = vmatpush1.bf16.msra.mxu1 %v12461_v63  ;;  %v12545_v63 = vld [vmem:[#allocation8 + $0x1968] ss:$72 sps:$4 sm:$0xff]  }
 0x32a   : > { %6128 = vmatpush1.bf16.msra.mxu0 %v12464_v0  ;;  %6056 = vmatprep.subr.bf16.mxu1 %v12469_v1  ;;  %v12548_v0 = vld [vmem:[#allocation8 + $0x1070] ss:$72 sps:$4 sm:$0xff]   ;;  %v12553_v1 = vld [vmem:[#allocation8 + $0x19fc] ss:$72 sps:$4 sm:$0xff]  }
 0x32b   : > { %6138 = vmatprep.subr.bf16.mxu0 %v12472_v3  ;;  %v12556_v3 = vld [vmem:[#allocation8 + $0x1104] ss:$72 sps:$4 sm:$0xff]  }
 0x32c   : > { %6048 = vmatmul.mubr.bf16.vlgmr.msra.gmra.mrb[8].mxu1 %v14209_v23 }
 0x32d   : > { %6130 = vmatmul.mubr.bf16.vlgmr.msra.gmra.mrb[8].mxu0 %v14207_v2  ;;  %6057 = vmatpush1.bf16.msra.mxu1 %v12467_v4  ;;  %v12551_v4 = vld [vmem:[#allocation8 + $0x19f8] ss:$72 sps:$4 sm:$0xff]  }
 0x32e   : > { %6088 = vmatprep.mubr.bf16.mxu1 %v14215_v28  ;;  %6139 = vmatpush1.bf16.msra.mxu0 %v12470_v7  ;;  %v12554_v7 = vld [vmem:[#allocation8 + $0x1100] ss:$72 sps:$4 sm:$0xff]  }
 0x32f   : > { %6170 = vmatprep.mubr.bf16.mxu0 %v14205_v6  ;;  %6058 = vmatprep.subr.bf16.mxu1 %v12475_v9  ;;  %v12559_v9 = vld [vmem:[#allocation8 + $0x1a8c] ss:$72 sps:$4 sm:$0xff]  }
 0x330   : > { %6140 = vmatprep.subr.bf16.mxu0 %v12478_v10  ;;  %v12562_v10 = vld [vmem:[#allocation8 + $0x1194] ss:$72 sps:$4 sm:$0xff]  }
 0x331   : > { %6059 = vmatpush1.bf16.msra.mxu1 %v12473_v11  ;;  %v12557_v11 = vld [vmem:[#allocation8 + $0x1a88] ss:$72 sps:$4 sm:$0xff]  }
 0x332   : > { %6141 = vmatpush1.bf16.msra.mxu0 %v12476_v12  ;;  %6060 = vmatprep.subr.bf16.mxu1 %v12481_v13  ;;  %v12560_v12 = vld [vmem:[#allocation8 + $0x1190] ss:$72 sps:$4 sm:$0xff]   ;;  %v12568_v13 = vld [vmem:[#allocation8 + $0x2c] ss:$72 sps:$4 sm:$0xff]  }
 0x333   : > { %6142 = vmatprep.subr.bf16.mxu0 %v12484_v14  ;;  %v12565_v14 = vld [vmem:[#allocation8 + $0x1224] ss:$72 sps:$4 sm:$0xff]  }
 0x335   : > { %6061 = vmatpush1.bf16.msra.mxu1 %v12479_v15  ;;  %v12566_v15 = vld [vmem:[#allocation8 + $0x28] ss:$72 sps:$4 sm:$0xff]  }
 0x336   : > { %6143 = vmatpush1.bf16.msra.mxu0 %v12482_v16  ;;  %6062 = vmatprep.subr.bf16.mxu1 %v12487_v17  ;;  %v12563_v16 = vld [vmem:[#allocation8 + $0x1220] ss:$72 sps:$4 sm:$0xff]   ;;  %v12571_v17 = vld [vmem:[#allocation8 + $0x12b4] ss:$72 sps:$4 sm:$0xff]  }
 0x337   : > { %6144 = vmatprep.subr.bf16.mxu0 %v12490_v18  ;;  %v12574_v18 = vld [vmem:[#allocation8 + $0xbc] ss:$72 sps:$4 sm:$0xff]  }
 0x339   : > { %6063 = vmatpush1.bf16.msra.mxu1 %v12485_v19  ;;  %v12572_v19 = vld [vmem:[#allocation8 + $0xb8] ss:$72 sps:$4 sm:$0xff]  }
 0x33a   : > { %6145 = vmatpush1.bf16.msra.mxu0 %v12488_v20  ;;  %6064 = vmatprep.subr.bf16.mxu1 %v12493_v21  ;;  %v12569_v20 = vld [vmem:[#allocation8 + $0x12b0] ss:$72 sps:$4 sm:$0xff]   ;;  %v12580_v21 = vld [vmem:[#allocation8 + $0x14c] ss:$72 sps:$4 sm:$0xff]  }
 0x33b   : > { %6146 = vmatprep.subr.bf16.mxu0 %v12496_v56  ;;  %v12577_v56 = vld [vmem:[#allocation8 + $0x1344] ss:$72 sps:$4 sm:$0xff]  }
 0x33d   : > { %6065 = vmatpush1.bf16.msra.mxu1 %v12491_v24  ;;  %v12578_v24 = vld [vmem:[#allocation8 + $0x148] ss:$72 sps:$4 sm:$0xff]  }
 0x33e   : > { %6147 = vmatpush1.bf16.msra.mxu0 %v12494_v25  ;;  %6066 = vmatprep.subr.bf16.mxu1 %v12499_v26  ;;  %v12575_v25 = vld [vmem:[#allocation8 + $0x1340] ss:$72 sps:$4 sm:$0xff]   ;;  %v12586_v26 = vld [vmem:[#allocation8 + $0x1dc] ss:$72 sps:$4 sm:$0xff]  }
 0x33f   : > { %6148 = vmatprep.subr.bf16.mxu0 %v12502_v27  ;;  %v12583_v27 = vld [vmem:[#allocation8 + $0x13d4] ss:$72 sps:$4 sm:$0xff]  }
 0x341   : > { %6067 = vmatpush1.bf16.msra.mxu1 %v12497_v29  ;;  %v12584_v29 = vld [vmem:[#allocation8 + $0x1d8] ss:$72 sps:$4 sm:$0xff]  }
 0x342   : > { %6149 = vmatpush1.bf16.msra.mxu0 %v12500_v5  ;;  %6068 = vmatprep.subr.bf16.mxu1 %v12505_v30  ;;  %v12581_v5 = vld [vmem:[#allocation8 + $0x13d0] ss:$72 sps:$4 sm:$0xff]   ;;  %v12592_v30 = vld [vmem:[#allocation8 + $0x26c] ss:$72 sps:$4 sm:$0xff]  }
 0x343   : > { %6150 = vmatprep.subr.bf16.mxu0 %v12508_v31  ;;  %v12589_v31 = vld [vmem:[#allocation8 + $0x1464] ss:$72 sps:$4 sm:$0xff]  }
 0x345   : > { %6069 = vmatpush1.bf16.msra.mxu1 %v12503_v8  ;;  %v12590_v8 = vld [vmem:[#allocation8 + $0x268] ss:$72 sps:$4 sm:$0xff]  }
 0x346   : > { %6151 = vmatpush1.bf16.msra.mxu0 %v12506_v32  ;;  %6070 = vmatprep.subr.bf16.mxu1 %v12511_v34  ;;  %v12587_v32 = vld [vmem:[#allocation8 + $0x1460] ss:$72 sps:$4 sm:$0xff]   ;;  %v12598_v34 = vld [vmem:[#allocation8 + $0x2fc] ss:$72 sps:$4 sm:$0xff]  }
 0x347   : > { %6152 = vmatprep.subr.bf16.mxu0 %v12514_v35  ;;  %v12595_v35 = vld [vmem:[#allocation8 + $0x14f4] ss:$72 sps:$4 sm:$0xff]  }
 0x349   : > { %6071 = vmatpush1.bf16.msra.mxu1 %v12509_v36  ;;  %v12596_v36 = vld [vmem:[#allocation8 + $0x2f8] ss:$72 sps:$4 sm:$0xff]  }
 0x34a   : > { %6153 = vmatpush1.bf16.msra.mxu0 %v12512_v37  ;;  %6072 = vmatprep.subr.bf16.mxu1 %v12517_v22  ;;  %v12593_v37 = vld [vmem:[#allocation8 + $0x14f0] ss:$72 sps:$4 sm:$0xff]   ;;  %v12604_v22 = vld [vmem:[#allocation8 + $0x38c] ss:$72 sps:$4 sm:$0xff]  }
 0x34b   : > { %6154 = vmatprep.subr.bf16.mxu0 %v12520_v38 }
 0x34d   : > { %6073 = vmatpush1.bf16.msra.mxu1 %v12515_v39  ;;  %v12601_v39 = vld [vmem:[#allocation8 + $0x1584] ss:$72 sps:$4 sm:$0xff]  }
 0x34e   : > { %6155 = vmatpush1.bf16.msra.mxu0 %v12518_v40  ;;  %6074 = vmatprep.subr.bf16.mxu1 %v12523_v41 }
 0x34f   : > { %6156 = vmatprep.subr.bf16.mxu0 %v12526_v42  ;;  %v12602_v42 = vld [vmem:[#allocation8 + $0x388] ss:$72 sps:$4 sm:$0xff]  }
 0x351   : > { %6075 = vmatpush1.bf16.msra.mxu1 %v12521_v43 }
 0x352   : > { %6157 = vmatpush1.bf16.msra.mxu0 %v12524_v44  ;;  %6076 = vmatprep.subr.bf16.mxu1 %v12529_v45  ;;  %v12599_v44 = vld [vmem:[#allocation8 + $0x1580] ss:$72 sps:$4 sm:$0xff]   ;;  %v12610_v45 = vld [vmem:[#allocation8 + $0x41c] ss:$72 sps:$4 sm:$0xff]  }
 0x353   : > { %6158 = vmatprep.subr.bf16.mxu0 %v12532_v46  ;;  %v12607_v46 = vld [vmem:[#allocation8 + $0x1614] ss:$72 sps:$4 sm:$0xff]  }
 0x355   : > { %6077 = vmatpush1.bf16.msra.mxu1 %v12527_v47  ;;  %v12608_v47 = vld [vmem:[#allocation8 + $0x418] ss:$72 sps:$4 sm:$0xff]  }
 0x356   : > { %6159 = vmatpush1.bf16.msra.mxu0 %v12530_v48  ;;  %6078 = vmatprep.subr.bf16.mxu1 %v12535_v49  ;;  %v12605_v48 = vld [vmem:[#allocation8 + $0x1610] ss:$72 sps:$4 sm:$0xff]   ;;  %v12616_v49 = vld [vmem:[#allocation8 + $0x4ac] ss:$72 sps:$4 sm:$0xff]  }
 0x357   : > { %6160 = vmatprep.subr.bf16.mxu0 %v12538_v50  ;;  %v12613_v50 = vld [vmem:[#allocation8 + $0x16a4] ss:$72 sps:$4 sm:$0xff]  }
 0x359   : > { %6079 = vmatpush1.bf16.msra.mxu1 %v12533_v51  ;;  %v12614_v51 = vld [vmem:[#allocation8 + $0x4a8] ss:$72 sps:$4 sm:$0xff]  }
 0x35a   : > { %6161 = vmatpush1.bf16.msra.mxu0 %v12536_v52  ;;  %6080 = vmatprep.subr.bf16.mxu1 %v12541_v53  ;;  %v12611_v52 = vld [vmem:[#allocation8 + $0x16a0] ss:$72 sps:$4 sm:$0xff]   ;;  %v12622_v53 = vld [vmem:[#allocation8 + $0x53c] ss:$72 sps:$4 sm:$0xff]  }
 0x35b   : > { %6162 = vmatprep.subr.bf16.mxu0 %v12544_v54  ;;  %v12619_v54 = vld [vmem:[#allocation8 + $0x1734] ss:$72 sps:$4 sm:$0xff]  }
 0x35d   : > { %6081 = vmatpush1.bf16.msra.mxu1 %v12539_v55  ;;  %v12620_v55 = vld [vmem:[#allocation8 + $0x538] ss:$72 sps:$4 sm:$0xff]  }
 0x35e   : > { %6163 = vmatpush1.bf16.msra.mxu0 %v12542_v57  ;;  %6082 = vmatprep.subr.bf16.mxu1 %v12547_v59  ;;  %v12617_v57 = vld [vmem:[#allocation8 + $0x1730] ss:$72 sps:$4 sm:$0xff]   ;;  %v12628_v59 = vld [vmem:[#allocation8 + $0x5cc] ss:$72 sps:$4 sm:$0xff]  }
 0x35f   : > { %6164 = vmatprep.subr.bf16.mxu0 %v12550_v61  ;;  %v12625_v61 = vld [vmem:[#allocation8 + $0x17c4] ss:$72 sps:$4 sm:$0xff]  }
 0x361   : > { %6083 = vmatpush1.bf16.msra.mxu1 %v12545_v63  ;;  %v12626_v63 = vld [vmem:[#allocation8 + $0x5c8] ss:$72 sps:$4 sm:$0xff]  }
 0x362   : > { %6165 = vmatpush1.bf16.msra.mxu0 %v12548_v0  ;;  %6084 = vmatprep.subr.bf16.mxu1 %v12553_v1  ;;  %v12623_v0 = vld [vmem:[#allocation8 + $0x17c0] ss:$72 sps:$4 sm:$0xff]   ;;  %v12634_v1 = vld [vmem:[#allocation8 + $0x65c] ss:$72 sps:$4 sm:$0xff]  }
 0x363   : > { %6166 = vmatprep.subr.bf16.mxu0 %v12556_v3  ;;  %v12631_v3 = vld [vmem:[#allocation8 + $0x1854] ss:$72 sps:$4 sm:$0xff]  }
 0x365   : > { %6085 = vmatpush1.bf16.msra.mxu1 %v12551_v4  ;;  %v12632_v4 = vld [vmem:[#allocation8 + $0x658] ss:$72 sps:$4 sm:$0xff]  }
 0x366   : > { %6167 = vmatpush1.bf16.msra.mxu0 %v12554_v7  ;;  %6086 = vmatprep.subr.bf16.mxu1 %v12559_v9  ;;  %v12629_v7 = vld [vmem:[#allocation8 + $0x1850] ss:$72 sps:$4 sm:$0xff]   ;;  %v12640_v9 = vld [vmem:[#allocation8 + $0x6ec] ss:$72 sps:$4 sm:$0xff]  }
 0x367   : > { %6168 = vmatprep.subr.bf16.mxu0 %v12562_v10  ;;  %v12637_v10 = vld [vmem:[#allocation8 + $0x18e4] ss:$72 sps:$4 sm:$0xff]  }
 0x369   : > { %6087 = vmatpush1.bf16.msra.mxu1 %v12557_v11  ;;  %v12638_v11 = vld [vmem:[#allocation8 + $0x6e8] ss:$72 sps:$4 sm:$0xff]  }
 0x36a   : > { %6169 = vmatpush1.bf16.msra.mxu0 %v12560_v12  ;;  %6220 = vmatprep.subr.bf16.mxu1 %v12568_v13  ;;  %v12635_v12 = vld [vmem:[#allocation8 + $0x18e0] ss:$72 sps:$4 sm:$0xff]   ;;  %v12646_v13 = vld [vmem:[#allocation8 + $0x77c] ss:$72 sps:$4 sm:$0xff]  }
 0x36b   : > { %6179 = vmatprep.subr.bf16.mxu0 %v12565_v14  ;;  %v12643_v14 = vld [vmem:[#allocation8 + $0x1974] ss:$72 sps:$4 sm:$0xff]  }
 0x36c   : > { %6089 = vmatmul.mubr.bf16.vlgmr.msra.gmra.mrb[8].mxu1 %v14221_v33 }
 0x36d   : > { %6171 = vmatmul.mubr.bf16.vlgmr.msra.gmra.mrb[8].mxu0 %v14209_v23  ;;  %6221 = vmatpush1.bf16.msra.mxu1 %v12566_v15  ;;  %v12644_v15 = vld [vmem:[#allocation8 + $0x778] ss:$72 sps:$4 sm:$0xff]  }
 0x36e   : > { %6180 = vmatpush1.bf16.msra.mxu0 %v12563_v16  ;;  %6211 = vmatprep.mubr.bf16.mxu0 %v14215_v28  ;;  %v12641_v16 = vld [vmem:[#allocation8 + $0x1970] ss:$72 sps:$4 sm:$0xff]  }
 0x36f   : > { %6252 = vmatprep.mubr.bf16.mxu1 %v14203_v60  ;;  %6181 = vmatprep.subr.bf16.mxu0 %v12571_v17  ;;  %v12652_v17 = vld [vmem:[#allocation8 + $0x80c] ss:$72 sps:$4 sm:$0xff]  }
 0x370   : > { %6222 = vmatprep.subr.bf16.mxu1 %v12574_v18  ;;  %v12649_v18 = vld [vmem:[#allocation8 + $0x1a04] ss:$72 sps:$4 sm:$0xff]  }
 0x371   : > { %6223 = vmatpush1.bf16.msra.mxu1 %v12572_v19  ;;  %v12650_v19 = vld [vmem:[#allocation8 + $0x808] ss:$72 sps:$4 sm:$0xff]  }
 0x372   : > { %6182 = vmatpush1.bf16.msra.mxu0 %v12569_v20  ;;  %6224 = vmatprep.subr.bf16.mxu1 %v12580_v21  ;;  %v12647_v20 = vld [vmem:[#allocation8 + $0x1a00] ss:$72 sps:$4 sm:$0xff]   ;;  %v12658_v21 = vld [vmem:[#allocation8 + $0x89c] ss:$72 sps:$4 sm:$0xff]  }
 0x373   : > { %6183 = vmatprep.subr.bf16.mxu0 %v12577_v56  ;;  %v12655_v56 = vld [vmem:[#allocation8 + $0x1a94] ss:$72 sps:$4 sm:$0xff]  }
 0x375   : > { %6225 = vmatpush1.bf16.msra.mxu1 %v12578_v24  ;;  %v12656_v24 = vld [vmem:[#allocation8 + $0x898] ss:$72 sps:$4 sm:$0xff]  }
 0x376   : > { %6184 = vmatpush1.bf16.msra.mxu0 %v12575_v25  ;;  %6226 = vmatprep.subr.bf16.mxu1 %v12586_v26  ;;  %v12653_v25 = vld [vmem:[#allocation8 + $0x1a90] ss:$72 sps:$4 sm:$0xff]   ;;  %v12661_v26 = vld [vmem:[#allocation8 + $0x92c] ss:$72 sps:$4 sm:$0xff]  }
 0x377   : > { %6185 = vmatprep.subr.bf16.mxu0 %v12583_v27  ;;  %v12664_v27 = vld [vmem:[#allocation8 + $0x34] ss:$72 sps:$4 sm:$0xff]  }
 0x379   : > { %6227 = vmatpush1.bf16.msra.mxu1 %v12584_v29  ;;  %v12659_v29 = vld [vmem:[#allocation8 + $0x928] ss:$72 sps:$4 sm:$0xff]  }
 0x37a   : > { %6186 = vmatpush1.bf16.msra.mxu0 %v12581_v5  ;;  %6228 = vmatprep.subr.bf16.mxu1 %v12592_v30  ;;  %v12662_v5 = vld [vmem:[#allocation8 + $0x30] ss:$72 sps:$4 sm:$0xff]   ;;  %v12667_v30 = vld [vmem:[#allocation8 + $0x9bc] ss:$72 sps:$4 sm:$0xff]  }
 0x37b   : > { %6187 = vmatprep.subr.bf16.mxu0 %v12589_v31  ;;  %v12670_v31 = vld [vmem:[#allocation8 + $0xc4] ss:$72 sps:$4 sm:$0xff]  }
 0x37d   : > { %6229 = vmatpush1.bf16.msra.mxu1 %v12590_v8  ;;  %v12665_v8 = vld [vmem:[#allocation8 + $0x9b8] ss:$72 sps:$4 sm:$0xff]  }
 0x37e   : > { %6188 = vmatpush1.bf16.msra.mxu0 %v12587_v32  ;;  %6230 = vmatprep.subr.bf16.mxu1 %v12598_v34  ;;  %v12668_v32 = vld [vmem:[#allocation8 + $0xc0] ss:$72 sps:$4 sm:$0xff]   ;;  %v12673_v34 = vld [vmem:[#allocation8 + $0xa4c] ss:$72 sps:$4 sm:$0xff]  }
 0x37f   : > { %v14257_v38 = vpop.f32.mrb[4].mxu1  ;;  %6189 = vmatprep.subr.bf16.mxu0 %v12595_v35  ;;  %v12676_v35 = vld [vmem:[#allocation8 + $0x154] ss:$72 sps:$4 sm:$0xff]  }
 0x380   : > { %v14259_v40 = vpop.f32.mrb[5].mxu1 }
 0x381   : > { %v5848_v41 = vpop.f32.mrb[6].mxu1  ;;  %6231 = vmatpush1.bf16.msra.mxu1 %v12596_v36  ;;  %v12671_v36 = vld [vmem:[#allocation8 + $0xa48] ss:$72 sps:$4 sm:$0xff]  }
 0x382   : > { %6190 = vmatpush1.bf16.msra.mxu0 %v12593_v37  ;;  %v5849_v43 = vpop.f32.mrb[7].mxu1  ;;  %6232 = vmatprep.subr.bf16.mxu1 %v12604_v22  ;;  %v12674_v37 = vld [vmem:[#allocation8 + $0x150] ss:$72 sps:$4 sm:$0xff]   ;;  %v12679_v22 = vld [vmem:[#allocation8 + $0xadc] ss:$72 sps:$4 sm:$0xff]  }
 0x383   : > { %6191 = vmatprep.subr.bf16.mxu0 %v12601_v39  ;;  %v12682_v39 = vld [vmem:[#allocation8 + $0x1e4] ss:$72 sps:$4 sm:$0xff]   ;;  %v12677_v41 = vld [vmem:[#allocation8 + $0xad8] ss:$72 sps:$4 sm:$0xff]  }
 0x384   : > { %v12685_v43 = vld [vmem:[#allocation8 + $0xb6c] ss:$72 sps:$4 sm:$0xff]  }
 0x385   : > { %6233 = vmatpush1.bf16.msra.mxu1 %v12602_v42  ;;  %v12680_v42 = vld [vmem:[#allocation8 + $0x1e0] ss:$72 sps:$4 sm:$0xff]  }
 0x386   : > { %6192 = vmatpush1.bf16.msra.mxu0 %v12599_v44  ;;  %6234 = vmatprep.subr.bf16.mxu1 %v12610_v45  ;;  %v12688_v44 = vld [vmem:[#allocation8 + $0x274] ss:$72 sps:$4 sm:$0xff]   ;;  %v12683_v45 = vld [vmem:[#allocation8 + $0xb68] ss:$72 sps:$4 sm:$0xff]  }
 0x387   : > { %6193 = vmatprep.subr.bf16.mxu0 %v12607_v46  ;;  %v12686_v46 = vld [vmem:[#allocation8 + $0x270] ss:$72 sps:$4 sm:$0xff]  }
 0x389   : > { %6235 = vmatpush1.bf16.msra.mxu1 %v12608_v47  ;;  %v12691_v47 = vld [vmem:[#allocation8 + $0xbfc] ss:$72 sps:$4 sm:$0xff]  }
 0x38a   : > { %6194 = vmatpush1.bf16.msra.mxu0 %v12605_v48  ;;  %6236 = vmatprep.subr.bf16.mxu1 %v12616_v49  ;;  %v12694_v48 = vld [vmem:[#allocation8 + $0x304] ss:$72 sps:$4 sm:$0xff]   ;;  %v12689_v49 = vld [vmem:[#allocation8 + $0xbf8] ss:$72 sps:$4 sm:$0xff]  }
 0x38b   : > { %6195 = vmatprep.subr.bf16.mxu0 %v12613_v50  ;;  %v12692_v50 = vld [vmem:[#allocation8 + $0x300] ss:$72 sps:$4 sm:$0xff]  }
 0x38d   : > { %6237 = vmatpush1.bf16.msra.mxu1 %v12614_v51  ;;  %v12697_v51 = vld [vmem:[#allocation8 + $0xc8c] ss:$72 sps:$4 sm:$0xff]  }
 0x38e   : > { %6196 = vmatpush1.bf16.msra.mxu0 %v12611_v52  ;;  %6238 = vmatprep.subr.bf16.mxu1 %v12622_v53  ;;  %v12700_v52 = vld [vmem:[#allocation8 + $0x394] ss:$72 sps:$4 sm:$0xff]  }
 0x38f   : > { %6197 = vmatprep.subr.bf16.mxu0 %v12619_v54 }
 0x391   : > { %6239 = vmatpush1.bf16.msra.mxu1 %v12620_v55  ;;  %v12695_v55 = vld [vmem:[#allocation8 + $0xc88] ss:$72 sps:$4 sm:$0xff]  }
 0x392   : > { %6198 = vmatpush1.bf16.msra.mxu0 %v12617_v57  ;;  %6240 = vmatprep.subr.bf16.mxu1 %v12628_v59  ;;  %v12698_v59 = vld [vmem:[#allocation8 + $0x390] ss:$72 sps:$4 sm:$0xff]  }
 0x393   : > { %6199 = vmatprep.subr.bf16.mxu0 %v12625_v61  ;;  %v12703_v61 = vld [vmem:[#allocation8 + $0xd1c] ss:$72 sps:$4 sm:$0xff]  }
 0x395   : > { %6241 = vmatpush1.bf16.msra.mxu1 %v12626_v63 }
 0x396   : > { %6200 = vmatpush1.bf16.msra.mxu0 %v12623_v0  ;;  %6242 = vmatprep.subr.bf16.mxu1 %v12634_v1  ;;  %v12706_v0 = vld [vmem:[#allocation8 + $0x424] ss:$72 sps:$4 sm:$0xff]   ;;  %v12701_v1 = vld [vmem:[#allocation8 + $0xd18] ss:$72 sps:$4 sm:$0xff]  }
 0x397   : > { %6201 = vmatprep.subr.bf16.mxu0 %v12631_v3  ;;  %v12704_v3 = vld [vmem:[#allocation8 + $0x420] ss:$72 sps:$4 sm:$0xff]  }
 0x399   : > { %6243 = vmatpush1.bf16.msra.mxu1 %v12632_v4  ;;  %v12709_v4 = vld [vmem:[#allocation8 + $0xdac] ss:$72 sps:$4 sm:$0xff]  }
 0x39a   : > { %6202 = vmatpush1.bf16.msra.mxu0 %v12629_v7  ;;  %6244 = vmatprep.subr.bf16.mxu1 %v12640_v9  ;;  %v12712_v7 = vld [vmem:[#allocation8 + $0x4b4] ss:$72 sps:$4 sm:$0xff]   ;;  %v12707_v9 = vld [vmem:[#allocation8 + $0xda8] ss:$72 sps:$4 sm:$0xff]  }
 0x39b   : > { %6203 = vmatprep.subr.bf16.mxu0 %v12637_v10  ;;  %v12710_v10 = vld [vmem:[#allocation8 + $0x4b0] ss:$72 sps:$4 sm:$0xff]  }
 0x39d   : > { %6245 = vmatpush1.bf16.msra.mxu1 %v12638_v11  ;;  %v12715_v11 = vld [vmem:[#allocation8 + $0xe3c] ss:$72 sps:$4 sm:$0xff]  }
 0x39e   : > { %6204 = vmatpush1.bf16.msra.mxu0 %v12635_v12  ;;  %6246 = vmatprep.subr.bf16.mxu1 %v12646_v13  ;;  %v12718_v12 = vld [vmem:[#allocation8 + $0x544] ss:$72 sps:$4 sm:$0xff]   ;;  %v12713_v13 = vld [vmem:[#allocation8 + $0xe38] ss:$72 sps:$4 sm:$0xff]  }
 0x39f   : > { %6205 = vmatprep.subr.bf16.mxu0 %v12643_v14  ;;  %v12716_v14 = vld [vmem:[#allocation8 + $0x540] ss:$72 sps:$4 sm:$0xff]  }
 0x3a1   : > { %6247 = vmatpush1.bf16.msra.mxu1 %v12644_v15  ;;  %v12721_v15 = vld [vmem:[#allocation8 + $0xecc] ss:$72 sps:$4 sm:$0xff]  }
 0x3a2   : > { %6206 = vmatpush1.bf16.msra.mxu0 %v12641_v16  ;;  %6248 = vmatprep.subr.bf16.mxu1 %v12652_v17  ;;  %v12724_v16 = vld [vmem:[#allocation8 + $0x5d4] ss:$72 sps:$4 sm:$0xff]   ;;  %v12719_v17 = vld [vmem:[#allocation8 + $0xec8] ss:$72 sps:$4 sm:$0xff]  }
 0x3a3   : > { %6207 = vmatprep.subr.bf16.mxu0 %v12649_v18  ;;  %v12722_v18 = vld [vmem:[#allocation8 + $0x5d0] ss:$72 sps:$4 sm:$0xff]  }
 0x3a5   : > { %6249 = vmatpush1.bf16.msra.mxu1 %v12650_v19  ;;  %v12727_v19 = vld [vmem:[#allocation8 + $0xf5c] ss:$72 sps:$4 sm:$0xff]  }
 0x3a6   : > { %6208 = vmatpush1.bf16.msra.mxu0 %v12647_v20  ;;  %6250 = vmatprep.subr.bf16.mxu1 %v12658_v21  ;;  %v12730_v20 = vld [vmem:[#allocation8 + $0x664] ss:$72 sps:$4 sm:$0xff]   ;;  %v12725_v21 = vld [vmem:[#allocation8 + $0xf58] ss:$72 sps:$4 sm:$0xff]  }
 0x3a7   : > { %6209 = vmatprep.subr.bf16.mxu0 %v12655_v56  ;;  %v12728_v56 = vld [vmem:[#allocation8 + $0x660] ss:$72 sps:$4 sm:$0xff]  }
 0x3a9   : > { %6251 = vmatpush1.bf16.msra.mxu1 %v12656_v24  ;;  %v12733_v24 = vld [vmem:[#allocation8 + $0xfec] ss:$72 sps:$4 sm:$0xff]  }
 0x3aa   : > { %6210 = vmatpush1.bf16.msra.mxu0 %v12653_v25  ;;  %6261 = vmatprep.subr.bf16.mxu1 %v12661_v26  ;;  %v12736_v25 = vld [vmem:[#allocation8 + $0x6f4] ss:$72 sps:$4 sm:$0xff]   ;;  %v12731_v26 = vld [vmem:[#allocation8 + $0xfe8] ss:$72 sps:$4 sm:$0xff]  }
 0x3ab   : > { %6343 = vmatprep.subr.bf16.mxu0 %v12664_v27  ;;  %v12734_v27 = vld [vmem:[#allocation8 + $0x6f0] ss:$72 sps:$4 sm:$0xff]  }
 0x3ac   : > { %6253 = vmatmul.mubr.bf16.vlgmr.msra.gmra.mrb[12].mxu1 %v14207_v2 }
 0x3ad   : > { %6212 = vmatmul.mubr.bf16.vlgmr.msra.gmra.mrb[8].mxu0 %v14221_v33  ;;  %6262 = vmatpush1.bf16.msra.mxu1 %v12659_v29  ;;  %v12739_v29 = vld [vmem:[#allocation8 + $0x107c] ss:$72 sps:$4 sm:$0xff]  }
 0x3ae   : > { %6293 = vmatprep.mubr.bf16.mxu1 %v14205_v6  ;;  %6344 = vmatpush1.bf16.msra.mxu0 %v12662_v5  ;;  %v12742_v5 = vld [vmem:[#allocation8 + $0x784] ss:$72 sps:$4 sm:$0xff]  }
 0x3af   : > { %6375 = vmatprep.mubr.bf16.mxu0 %v14203_v60  ;;  %6263 = vmatprep.subr.bf16.mxu1 %v12667_v30  ;;  %v12737_v30 = vld [vmem:[#allocation8 + $0x1078] ss:$72 sps:$4 sm:$0xff]  }
 0x3b0   : > { %6345 = vmatprep.subr.bf16.mxu0 %v12670_v31  ;;  %v12740_v31 = vld [vmem:[#allocation8 + $0x780] ss:$72 sps:$4 sm:$0xff]  }
 0x3b1   : > { %6264 = vmatpush1.bf16.msra.mxu1 %v12665_v8  ;;  %v12745_v8 = vld [vmem:[#allocation8 + $0x110c] ss:$72 sps:$4 sm:$0xff]  }
 0x3b2   : > { %6346 = vmatpush1.bf16.msra.mxu0 %v12668_v32  ;;  %6265 = vmatprep.subr.bf16.mxu1 %v12673_v34  ;;  %v12748_v32 = vld [vmem:[#allocation8 + $0x814] ss:$72 sps:$4 sm:$0xff]   ;;  %v12743_v34 = vld [vmem:[#allocation8 + $0x1108] ss:$72 sps:$4 sm:$0xff]  }
 0x3b3   : > { %6347 = vmatprep.subr.bf16.mxu0 %v12676_v35  ;;  %v12746_v35 = vld [vmem:[#allocation8 + $0x810] ss:$72 sps:$4 sm:$0xff]  }
 0x3b5   : > { %6266 = vmatpush1.bf16.msra.mxu1 %v12671_v36  ;;  %v12751_v36 = vld [vmem:[#allocation8 + $0x119c] ss:$72 sps:$4 sm:$0xff]  }
 0x3b6   : > { %6348 = vmatpush1.bf16.msra.mxu0 %v12674_v37  ;;  %6267 = vmatprep.subr.bf16.mxu1 %v12679_v22  ;;  %v12754_v37 = vld [vmem:[#allocation8 + $0x8a4] ss:$72 sps:$4 sm:$0xff]   ;;  %v12749_v22 = vld [vmem:[#allocation8 + $0x1198] ss:$72 sps:$4 sm:$0xff]  }
 0x3b7   : > { %6349 = vmatprep.subr.bf16.mxu0 %v12682_v39  ;;  %v12752_v39 = vld [vmem:[#allocation8 + $0x8a0] ss:$72 sps:$4 sm:$0xff]  }
 0x3b9   : > { %6268 = vmatpush1.bf16.msra.mxu1 %v12677_v41  ;;  %v12757_v41 = vld [vmem:[#allocation8 + $0x122c] ss:$72 sps:$4 sm:$0xff]  }
 0x3ba   : > { %6350 = vmatpush1.bf16.msra.mxu0 %v12680_v42  ;;  %6269 = vmatprep.subr.bf16.mxu1 %v12685_v43  ;;  %v12760_v42 = vld [vmem:[#allocation8 + $0x934] ss:$72 sps:$4 sm:$0xff]   ;;  %v12755_v43 = vld [vmem:[#allocation8 + $0x1228] ss:$72 sps:$4 sm:$0xff]  }
 0x3bb   : > { %6351 = vmatprep.subr.bf16.mxu0 %v12688_v44  ;;  %v12758_v44 = vld [vmem:[#allocation8 + $0x930] ss:$72 sps:$4 sm:$0xff]  }
 0x3bd   : > { %6270 = vmatpush1.bf16.msra.mxu1 %v12683_v45  ;;  %v12763_v45 = vld [vmem:[#allocation8 + $0x12bc] ss:$72 sps:$4 sm:$0xff]  }
 0x3be   : > { %6352 = vmatpush1.bf16.msra.mxu0 %v12686_v46  ;;  %6271 = vmatprep.subr.bf16.mxu1 %v12691_v47  ;;  %v12766_v46 = vld [vmem:[#allocation8 + $0x9c4] ss:$72 sps:$4 sm:$0xff]   ;;  %v12761_v47 = vld [vmem:[#allocation8 + $0x12b8] ss:$72 sps:$4 sm:$0xff]  }
 0x3bf   : > { %6353 = vmatprep.subr.bf16.mxu0 %v12694_v48  ;;  %v12764_v48 = vld [vmem:[#allocation8 + $0x9c0] ss:$72 sps:$4 sm:$0xff]  }
 0x3c0   : > { %v14265_v53 = vpop.f32.mrb[4].mxu0 }
 0x3c1   : > { %v14267_v54 = vpop.f32.mrb[5].mxu0  ;;  %6272 = vmatpush1.bf16.msra.mxu1 %v12689_v49  ;;  %v12769_v49 = vld [vmem:[#allocation8 + $0x134c] ss:$72 sps:$4 sm:$0xff]  }
 0x3c2   : > { %v5971_v57 = vpop.f32.mrb[6].mxu0  ;;  %6354 = vmatpush1.bf16.msra.mxu0 %v12692_v50  ;;  %6273 = vmatprep.subr.bf16.mxu1 %v12697_v51  ;;  %v12772_v50 = vld [vmem:[#allocation8 + $0xa54] ss:$72 sps:$4 sm:$0xff]   ;;  %v12767_v51 = vld [vmem:[#allocation8 + $0x1348] ss:$72 sps:$4 sm:$0xff]  }
 0x3c3   : > { %v5972_v63 = vpop.f32.mrb[7].mxu0  ;;  %6355 = vmatprep.subr.bf16.mxu0 %v12700_v52  ;;  %v12770_v52 = vld [vmem:[#allocation8 + $0xa50] ss:$72 sps:$4 sm:$0xff]   ;;  %v12778_v57 = vld [vmem:[#allocation8 + $0xae4] ss:$72 sps:$4 sm:$0xff]  }
 0x3c4   : > { %v12781_v63 = vld [vmem:[#allocation8 + $0x146c] ss:$72 sps:$4 sm:$0xff]  }
 0x3c5   : > { %6274 = vmatpush1.bf16.msra.mxu1 %v12695_v55  ;;  %v12775_v55 = vld [vmem:[#allocation8 + $0x13dc] ss:$72 sps:$4 sm:$0xff]  }
 0x3c6   : > { %6356 = vmatpush1.bf16.msra.mxu0 %v12698_v59  ;;  %6275 = vmatprep.subr.bf16.mxu1 %v12703_v61  ;;  %v12773_v59 = vld [vmem:[#allocation8 + $0x13d8] ss:$72 sps:$4 sm:$0xff]  }
 0x3c7   : > { %6357 = vmatprep.subr.bf16.mxu0 %v12706_v0  ;;  %v12776_v61 = vld [vmem:[#allocation8 + $0xae0] ss:$72 sps:$4 sm:$0xff]   ;;  %v12784_v0 = vld [vmem:[#allocation8 + $0xb74] ss:$72 sps:$4 sm:$0xff]  }
 0x3c9   : > { %6276 = vmatpush1.bf16.msra.mxu1 %v12701_v1  ;;  %v12779_v1 = vld [vmem:[#allocation8 + $0x1468] ss:$72 sps:$4 sm:$0xff]  }
 0x3ca   : > { %6358 = vmatpush1.bf16.msra.mxu0 %v12704_v3  ;;  %6277 = vmatprep.subr.bf16.mxu1 %v12709_v4  ;;  %v12782_v3 = vld [vmem:[#allocation8 + $0xb70] ss:$72 sps:$4 sm:$0xff]   ;;  %v12787_v4 = vld [vmem:[#allocation8 + $0x14fc] ss:$72 sps:$4 sm:$0xff]  }
 0x3cb   : > { %6359 = vmatprep.subr.bf16.mxu0 %v12712_v7  ;;  %v12790_v7 = vld [vmem:[#allocation8 + $0xc04] ss:$72 sps:$4 sm:$0xff]  }
 0x3cd   : > { %6278 = vmatpush1.bf16.msra.mxu1 %v12707_v9  ;;  %v12785_v9 = vld [vmem:[#allocation8 + $0x14f8] ss:$72 sps:$4 sm:$0xff]  }
 0x3ce   : > { %6360 = vmatpush1.bf16.msra.mxu0 %v12710_v10  ;;  %6279 = vmatprep.subr.bf16.mxu1 %v12715_v11  ;;  %v12788_v10 = vld [vmem:[#allocation8 + $0xc00] ss:$72 sps:$4 sm:$0xff]   ;;  %v12793_v11 = vld [vmem:[#allocation8 + $0x158c] ss:$72 sps:$4 sm:$0xff]  }
 0x3cf   : > { %6361 = vmatprep.subr.bf16.mxu0 %v12718_v12  ;;  %v12796_v12 = vld [vmem:[#allocation8 + $0xc94] ss:$72 sps:$4 sm:$0xff]  }
 0x3d1   : > { %6280 = vmatpush1.bf16.msra.mxu1 %v12713_v13  ;;  %v12791_v13 = vld [vmem:[#allocation8 + $0x1588] ss:$72 sps:$4 sm:$0xff]  }
 0x3d2   : > { %6362 = vmatpush1.bf16.msra.mxu0 %v12716_v14  ;;  %6281 = vmatprep.subr.bf16.mxu1 %v12721_v15  ;;  %v12794_v14 = vld [vmem:[#allocation8 + $0xc90] ss:$72 sps:$4 sm:$0xff]   ;;  %v12799_v15 = vld [vmem:[#allocation8 + $0x161c] ss:$72 sps:$4 sm:$0xff]  }
 0x3d3   : > { %6363 = vmatprep.subr.bf16.mxu0 %v12724_v16  ;;  %v12802_v16 = vld [vmem:[#allocation8 + $0xd24] ss:$72 sps:$4 sm:$0xff]  }
 0x3d5   : > { %6282 = vmatpush1.bf16.msra.mxu1 %v12719_v17  ;;  %v12797_v17 = vld [vmem:[#allocation8 + $0x1618] ss:$72 sps:$4 sm:$0xff]  }
 0x3d6   : > { %6364 = vmatpush1.bf16.msra.mxu0 %v12722_v18  ;;  %6283 = vmatprep.subr.bf16.mxu1 %v12727_v19  ;;  %v12800_v18 = vld [vmem:[#allocation8 + $0xd20] ss:$72 sps:$4 sm:$0xff]   ;;  %v12805_v19 = vld [vmem:[#allocation8 + $0x16ac] ss:$72 sps:$4 sm:$0xff]  }
 0x3d7   : > { %6365 = vmatprep.subr.bf16.mxu0 %v12730_v20  ;;  %v12808_v20 = vld [vmem:[#allocation8 + $0xdb4] ss:$72 sps:$4 sm:$0xff]  }
 0x3d9   : > { %6284 = vmatpush1.bf16.msra.mxu1 %v12725_v21  ;;  %v12803_v21 = vld [vmem:[#allocation8 + $0x16a8] ss:$72 sps:$4 sm:$0xff]  }
 0x3da   : > { %6366 = vmatpush1.bf16.msra.mxu0 %v12728_v56  ;;  %6285 = vmatprep.subr.bf16.mxu1 %v12733_v24  ;;  %v12806_v56 = vld [vmem:[#allocation8 + $0xdb0] ss:$72 sps:$4 sm:$0xff]   ;;  %v12811_v24 = vld [vmem:[#allocation8 + $0x173c] ss:$72 sps:$4 sm:$0xff]  }
 0x3db   : > { %6367 = vmatprep.subr.bf16.mxu0 %v12736_v25  ;;  %v12814_v25 = vld [vmem:[#allocation8 + $0xe44] ss:$72 sps:$4 sm:$0xff]  }
 0x3dd   : > { %6286 = vmatpush1.bf16.msra.mxu1 %v12731_v26  ;;  %v12809_v26 = vld [vmem:[#allocation8 + $0x1738] ss:$72 sps:$4 sm:$0xff]  }
 0x3de   : > { %6368 = vmatpush1.bf16.msra.mxu0 %v12734_v27  ;;  %6287 = vmatprep.subr.bf16.mxu1 %v12739_v29  ;;  %v12812_v27 = vld [vmem:[#allocation8 + $0xe40] ss:$72 sps:$4 sm:$0xff]   ;;  %v12817_v29 = vld [vmem:[#allocation8 + $0x17cc] ss:$72 sps:$4 sm:$0xff]  }
 0x3df   : > { %6369 = vmatprep.subr.bf16.mxu0 %v12742_v5  ;;  %v12820_v5 = vld [vmem:[#allocation8 + $0xed4] ss:$72 sps:$4 sm:$0xff]  }
 0x3e1   : > { %6288 = vmatpush1.bf16.msra.mxu1 %v12737_v30  ;;  %v12815_v30 = vld [vmem:[#allocation8 + $0x17c8] ss:$72 sps:$4 sm:$0xff]  }
 0x3e2   : > { %6370 = vmatpush1.bf16.msra.mxu0 %v12740_v31  ;;  %6289 = vmatprep.subr.bf16.mxu1 %v12745_v8  ;;  %v12818_v31 = vld [vmem:[#allocation8 + $0xed0] ss:$72 sps:$4 sm:$0xff]   ;;  %v12823_v8 = vld [vmem:[#allocation8 + $0x185c] ss:$72 sps:$4 sm:$0xff]  }
 0x3e3   : > { %6371 = vmatprep.subr.bf16.mxu0 %v12748_v32  ;;  %v12826_v32 = vld [vmem:[#allocation8 + $0xf64] ss:$72 sps:$4 sm:$0xff]  }
 0x3e5   : > { %6290 = vmatpush1.bf16.msra.mxu1 %v12743_v34  ;;  %v12821_v34 = vld [vmem:[#allocation8 + $0x1858] ss:$72 sps:$4 sm:$0xff]  }
 0x3e6   : > { %6372 = vmatpush1.bf16.msra.mxu0 %v12746_v35  ;;  %6291 = vmatprep.subr.bf16.mxu1 %v12751_v36  ;;  %v12824_v35 = vld [vmem:[#allocation8 + $0xf60] ss:$72 sps:$4 sm:$0xff]   ;;  %v12829_v36 = vld [vmem:[#allocation8 + $0x18ec] ss:$72 sps:$4 sm:$0xff]  }
 0x3e7   : > { %6373 = vmatprep.subr.bf16.mxu0 %v12754_v37  ;;  %v12832_v37 = vld [vmem:[#allocation8 + $0xff4] ss:$72 sps:$4 sm:$0xff]  }
 0x3e9   : > { %6292 = vmatpush1.bf16.msra.mxu1 %v12749_v22  ;;  %v12827_v22 = vld [vmem:[#allocation8 + $0x18e8] ss:$72 sps:$4 sm:$0xff]  }
 0x3ea   : > { %6374 = vmatpush1.bf16.msra.mxu0 %v12752_v39  ;;  %6302 = vmatprep.subr.bf16.mxu1 %v12757_v41  ;;  %v12830_v39 = vld [vmem:[#allocation8 + $0xff0] ss:$72 sps:$4 sm:$0xff]   ;;  %v12835_v41 = vld [vmem:[#allocation8 + $0x197c] ss:$72 sps:$4 sm:$0xff]  }
 0x3eb   : > { %6384 = vmatprep.subr.bf16.mxu0 %v12760_v42  ;;  %v12838_v42 = vld [vmem:[#allocation8 + $0x1084] ss:$72 sps:$4 sm:$0xff]  }
 0x3ec   : > { %6294 = vmatmul.mubr.bf16.vlgmr.msra.gmra.mrb[12].mxu1 %v14209_v23 }
 0x3ed   : > { %6376 = vmatmul.mubr.bf16.vlgmr.msra.gmra.mrb[12].mxu0 %v14207_v2  ;;  %6303 = vmatpush1.bf16.msra.mxu1 %v12755_v43  ;;  %v12833_v43 = vld [vmem:[#allocation8 + $0x1978] ss:$72 sps:$4 sm:$0xff]  }
 0x3ee   : > { %6334 = vmatprep.mubr.bf16.mxu1 %v14215_v28  ;;  %6385 = vmatpush1.bf16.msra.mxu0 %v12758_v44  ;;  %v12836_v44 = vld [vmem:[#allocation8 + $0x1080] ss:$72 sps:$4 sm:$0xff]  }
 0x3ef   : > { %6416 = vmatprep.mubr.bf16.mxu0 %v14205_v6  ;;  %6304 = vmatprep.subr.bf16.mxu1 %v12763_v45  ;;  %v12841_v45 = vld [vmem:[#allocation8 + $0x1a0c] ss:$72 sps:$4 sm:$0xff]  }
 0x3f0   : > { %6386 = vmatprep.subr.bf16.mxu0 %v12766_v46  ;;  %v12844_v46 = vld [vmem:[#allocation8 + $0x1114] ss:$72 sps:$4 sm:$0xff]  }
 0x3f1   : > { %6305 = vmatpush1.bf16.msra.mxu1 %v12761_v47  ;;  %v12839_v47 = vld [vmem:[#allocation8 + $0x1a08] ss:$72 sps:$4 sm:$0xff]  }
 0x3f2   : > { %6387 = vmatpush1.bf16.msra.mxu0 %v12764_v48  ;;  %6306 = vmatprep.subr.bf16.mxu1 %v12769_v49  ;;  %v12842_v48 = vld [vmem:[#allocation8 + $0x1110] ss:$72 sps:$4 sm:$0xff]   ;;  %v12847_v49 = vld [vmem:[#allocation8 + $0x1a9c] ss:$72 sps:$4 sm:$0xff]  }
 0x3f3   : > { %6388 = vmatprep.subr.bf16.mxu0 %v12772_v50  ;;  %v12850_v50 = vld [vmem:[#allocation8 + $0x11a4] ss:$72 sps:$4 sm:$0xff]  }
 0x3f5   : > { %6307 = vmatpush1.bf16.msra.mxu1 %v12767_v51  ;;  %v12845_v51 = vld [vmem:[#allocation8 + $0x1a98] ss:$72 sps:$4 sm:$0xff]  }
 0x3f6   : > { %6389 = vmatpush1.bf16.msra.mxu0 %v12770_v52  ;;  %6308 = vmatprep.subr.bf16.mxu1 %v12775_v55  ;;  %v12848_v52 = vld [vmem:[#allocation8 + $0x11a0] ss:$72 sps:$4 sm:$0xff]   ;;  %v12856_v55 = vld [vmem:[#allocation8 + $0x3c] ss:$72 sps:$4 sm:$0xff]  }
 0x3f7   : > { %6390 = vmatprep.subr.bf16.mxu0 %v12778_v57  ;;  %v12853_v57 = vld [vmem:[#allocation8 + $0x1234] ss:$72 sps:$4 sm:$0xff]  }
 0x3f9   : > { %6309 = vmatpush1.bf16.msra.mxu1 %v12773_v59  ;;  %v12854_v59 = vld [vmem:[#allocation8 + $0x38] ss:$72 sps:$4 sm:$0xff]  }
 0x3fa   : > { %6391 = vmatpush1.bf16.msra.mxu0 %v12776_v61  ;;  %6310 = vmatprep.subr.bf16.mxu1 %v12781_v63  ;;  %v12851_v61 = vld [vmem:[#allocation8 + $0x1230] ss:$72 sps:$4 sm:$0xff]   ;;  %v12859_v63 = vld [vmem:[#allocation8 + $0x12c4] ss:$72 sps:$4 sm:$0xff]  }
 0x3fb   : > { %6392 = vmatprep.subr.bf16.mxu0 %v12784_v0  ;;  %v12862_v0 = vld [vmem:[#allocation8 + $0xcc] ss:$72 sps:$4 sm:$0xff]  }
 0x3fd   : > { %6311 = vmatpush1.bf16.msra.mxu1 %v12779_v1  ;;  %v12860_v1 = vld [vmem:[#allocation8 + $0xc8] ss:$72 sps:$4 sm:$0xff]  }
 0x3fe   : > { %6393 = vmatpush1.bf16.msra.mxu0 %v12782_v3  ;;  %6312 = vmatprep.subr.bf16.mxu1 %v12787_v4  ;;  %v12857_v3 = vld [vmem:[#allocation8 + $0x12c0] ss:$72 sps:$4 sm:$0xff]   ;;  %v12868_v4 = vld [vmem:[#allocation8 + $0x15c] ss:$72 sps:$4 sm:$0xff]  }
 0x3ff   : > { %6394 = vmatprep.subr.bf16.mxu0 %v12790_v7  ;;  %v12865_v7 = vld [vmem:[#allocation8 + $0x1354] ss:$72 sps:$4 sm:$0xff]  }
 0x401   : > { %6313 = vmatpush1.bf16.msra.mxu1 %v12785_v9  ;;  %v12866_v9 = vld [vmem:[#allocation8 + $0x158] ss:$72 sps:$4 sm:$0xff]  }
 0x402   : > { %6395 = vmatpush1.bf16.msra.mxu0 %v12788_v10  ;;  %6314 = vmatprep.subr.bf16.mxu1 %v12793_v11  ;;  %v12863_v10 = vld [vmem:[#allocation8 + $0x1350] ss:$72 sps:$4 sm:$0xff]   ;;  %v12874_v11 = vld [vmem:[#allocation8 + $0x1ec] ss:$72 sps:$4 sm:$0xff]  }
 0x403   : > { %6396 = vmatprep.subr.bf16.mxu0 %v12796_v12  ;;  %v12871_v12 = vld [vmem:[#allocation8 + $0x13e4] ss:$72 sps:$4 sm:$0xff]  }
 0x405   : > { %6315 = vmatpush1.bf16.msra.mxu1 %v12791_v13  ;;  %v12872_v13 = vld [vmem:[#allocation8 + $0x1e8] ss:$72 sps:$4 sm:$0xff]  }
 0x406   : > { %6397 = vmatpush1.bf16.msra.mxu0 %v12794_v14  ;;  %6316 = vmatprep.subr.bf16.mxu1 %v12799_v15  ;;  %v12869_v14 = vld [vmem:[#allocation8 + $0x13e0] ss:$72 sps:$4 sm:$0xff]   ;;  %v12880_v15 = vld [vmem:[#allocation8 + $0x27c] ss:$72 sps:$4 sm:$0xff]  }
 0x407   : > { %6398 = vmatprep.subr.bf16.mxu0 %v12802_v16  ;;  %v12877_v16 = vld [vmem:[#allocation8 + $0x1474] ss:$72 sps:$4 sm:$0xff]  }
 0x409   : > { %6317 = vmatpush1.bf16.msra.mxu1 %v12797_v17  ;;  %v12878_v17 = vld [vmem:[#allocation8 + $0x278] ss:$72 sps:$4 sm:$0xff]  }
 0x40a   : > { %6399 = vmatpush1.bf16.msra.mxu0 %v12800_v18  ;;  %6318 = vmatprep.subr.bf16.mxu1 %v12805_v19  ;;  %v12875_v18 = vld [vmem:[#allocation8 + $0x1470] ss:$72 sps:$4 sm:$0xff]   ;;  %v12886_v19 = vld [vmem:[#allocation8 + $0x30c] ss:$72 sps:$4 sm:$0xff]  }
 0x40b   : > { %6400 = vmatprep.subr.bf16.mxu0 %v12808_v20  ;;  %v12883_v20 = vld [vmem:[#allocation8 + $0x1504] ss:$72 sps:$4 sm:$0xff]  }
 0x40d   : > { %6319 = vmatpush1.bf16.msra.mxu1 %v12803_v21  ;;  %v12884_v21 = vld [vmem:[#allocation8 + $0x308] ss:$72 sps:$4 sm:$0xff]  }
 0x40e   : > { %6401 = vmatpush1.bf16.msra.mxu0 %v12806_v56  ;;  %6320 = vmatprep.subr.bf16.mxu1 %v12811_v24  ;;  %v12881_v56 = vld [vmem:[#allocation8 + $0x1500] ss:$72 sps:$4 sm:$0xff]  }
 0x40f   : > { %6402 = vmatprep.subr.bf16.mxu0 %v12814_v25  ;;  %v12889_v25 = vld [vmem:[#allocation8 + $0x1594] ss:$72 sps:$4 sm:$0xff]  }
 0x411   : > { %6321 = vmatpush1.bf16.msra.mxu1 %v12809_v26 }
 0x412   : > { %6403 = vmatpush1.bf16.msra.mxu0 %v12812_v27  ;;  %6322 = vmatprep.subr.bf16.mxu1 %v12817_v29  ;;  %v12892_v29 = vld [vmem:[#allocation8 + $0x39c] ss:$72 sps:$4 sm:$0xff]  }
 0x413   : > { %6404 = vmatprep.subr.bf16.mxu0 %v12820_v5 }
 0x415   : > { %6323 = vmatpush1.bf16.msra.mxu1 %v12815_v30 }
 0x416   : > { %6405 = vmatpush1.bf16.msra.mxu0 %v12818_v31  ;;  %6324 = vmatprep.subr.bf16.mxu1 %v12823_v8  ;;  %v12890_v31 = vld [vmem:[#allocation8 + $0x398] ss:$72 sps:$4 sm:$0xff]  }
 0x417   : > { %6406 = vmatprep.subr.bf16.mxu0 %v12826_v32  ;;  %v12887_v32 = vld [vmem:[#allocation8 + $0x1590] ss:$72 sps:$4 sm:$0xff]  }
 0x419   : > { %6325 = vmatpush1.bf16.msra.mxu1 %v12821_v34  ;;  %v12895_v34 = vld [vmem:[#allocation8 + $0x1624] ss:$72 sps:$4 sm:$0xff]  }
 0x41a   : > { %6407 = vmatpush1.bf16.msra.mxu0 %v12824_v35  ;;  %6326 = vmatprep.subr.bf16.mxu1 %v12829_v36  ;;  %v14287_v35 = vpack.c.bf16 %v14244_v58, %v14244_v58  ;;  %v12898_v36 = vld [vmem:[#allocation8 + $0x42c] ss:$72 sps:$4 sm:$0xff]   ;;  %v14299_v58 = vpack.c.bf16 %v14247_v62, %v14247_v62 }
 0x41b   : > { %6408 = vmatprep.subr.bf16.mxu0 %v12832_v37  ;;  %v14291_v37 = vpack.c.bf16 %v14265_v53, %v14265_v53  ;;  %v14303_v53 = vpack.c.bf16 %v14267_v54, %v14267_v54  ;;  %v12907_v62 = vld [vmem:[#allocation8 + $0x1744] ss:$72 sps:$4 sm:$0xff]  }
 0x41c   : > { %v12916_v54 = vld [vmem:[#allocation8 + $0x5dc] ss:$72 sps:$4 sm:$0xff]  }
 0x41d   : > { %6327 = vmatpush1.bf16.msra.mxu1 %v12827_v22  ;;  %v12896_v22 = vld [vmem:[#allocation8 + $0x428] ss:$72 sps:$4 sm:$0xff]  }
 0x41e   : > { %6409 = vmatpush1.bf16.msra.mxu0 %v12830_v39  ;;  %6328 = vmatprep.subr.bf16.mxu1 %v12835_v41  ;;  %v12893_v39 = vld [vmem:[#allocation8 + $0x1620] ss:$72 sps:$4 sm:$0xff]   ;;  %v12901_v41 = vld [vmem:[#allocation8 + $0x16b4] ss:$72 sps:$4 sm:$0xff]  }
 0x41f   : > { %6410 = vmatprep.subr.bf16.mxu0 %v12838_v42  ;;  %v12904_v42 = vld [vmem:[#allocation8 + $0x4bc] ss:$72 sps:$4 sm:$0xff]  }
 0x421   : > { %6329 = vmatpush1.bf16.msra.mxu1 %v12833_v43  ;;  %v12902_v43 = vld [vmem:[#allocation8 + $0x4b8] ss:$72 sps:$4 sm:$0xff]  }
 0x422   : > { %6411 = vmatpush1.bf16.msra.mxu0 %v12836_v44  ;;  %6330 = vmatprep.subr.bf16.mxu1 %v12841_v45  ;;  %v12899_v44 = vld [vmem:[#allocation8 + $0x16b0] ss:$72 sps:$4 sm:$0xff]   ;;  %v12910_v45 = vld [vmem:[#allocation8 + $0x54c] ss:$72 sps:$4 sm:$0xff]  }
 0x423   : > { %6412 = vmatprep.subr.bf16.mxu0 %v12844_v46  ;;  %v12908_v46 = vld [vmem:[#allocation8 + $0x548] ss:$72 sps:$4 sm:$0xff]  }
 0x425   : > { %6331 = vmatpush1.bf16.msra.mxu1 %v12839_v47  ;;  %v12905_v47 = vld [vmem:[#allocation8 + $0x1740] ss:$72 sps:$4 sm:$0xff]  }
 0x426   : > { %6413 = vmatpush1.bf16.msra.mxu0 %v12842_v48  ;;  %6332 = vmatprep.subr.bf16.mxu1 %v12847_v49  ;;  %v12913_v48 = vld [vmem:[#allocation8 + $0x17d4] ss:$72 sps:$4 sm:$0xff]   ;;  %v12914_v49 = vld [vmem:[#allocation8 + $0x5d8] ss:$72 sps:$4 sm:$0xff]  }
 0x427   : > { %6414 = vmatprep.subr.bf16.mxu0 %v12850_v50  ;;  %v12911_v50 = vld [vmem:[#allocation8 + $0x17d0] ss:$72 sps:$4 sm:$0xff]  }
 0x429   : > { %6333 = vmatpush1.bf16.msra.mxu1 %v12845_v51  ;;  %v12922_v51 = vld [vmem:[#allocation8 + $0x66c] ss:$72 sps:$4 sm:$0xff]  }
 0x42a   : > { %6415 = vmatpush1.bf16.msra.mxu0 %v12848_v52  ;;  %6466 = vmatprep.subr.bf16.mxu1 %v12856_v55  ;;  %v12919_v52 = vld [vmem:[#allocation8 + $0x1864] ss:$72 sps:$4 sm:$0xff]   ;;  %v12920_v55 = vld [vmem:[#allocation8 + $0x668] ss:$72 sps:$4 sm:$0xff]  }
 0x42b   : > { %6425 = vmatprep.subr.bf16.mxu0 %v12853_v57  ;;  %v12917_v57 = vld [vmem:[#allocation8 + $0x1860] ss:$72 sps:$4 sm:$0xff]  }
 0x42c   : > { %6335 = vmatmul.mubr.bf16.vlgmr.msra.gmra.mrb[12].mxu1 %v14221_v33 }
 0x42d   : > { %6417 = vmatmul.mubr.bf16.vlgmr.msra.gmra.mrb[12].mxu0 %v14209_v23  ;;  %6467 = vmatpush1.bf16.msra.mxu1 %v12854_v59  ;;  %v12928_v59 = vld [vmem:[#allocation8 + $0x6fc] ss:$72 sps:$4 sm:$0xff]  }
 0x42e   : > { %6426 = vmatpush1.bf16.msra.mxu0 %v12851_v61  ;;  %6457 = vmatprep.mubr.bf16.mxu0 %v14215_v28  ;;  %v12925_v61 = vld [vmem:[#allocation8 + $0x18f4] ss:$72 sps:$4 sm:$0xff]  }
 0x42f   : > { %6498 = vmatprep.mubr.bf16.mxu1 %v14203_v60  ;;  %6427 = vmatprep.subr.bf16.mxu0 %v12859_v63  ;;  %v12926_v63 = vld [vmem:[#allocation8 + $0x6f8] ss:$72 sps:$4 sm:$0xff]  }
 0x430   : > { %6468 = vmatprep.subr.bf16.mxu1 %v12862_v0  ;;  %v12923_v0 = vld [vmem:[#allocation8 + $0x18f0] ss:$72 sps:$4 sm:$0xff]  }
 0x431   : > { %6469 = vmatpush1.bf16.msra.mxu1 %v12860_v1  ;;  %v12934_v1 = vld [vmem:[#allocation8 + $0x78c] ss:$72 sps:$4 sm:$0xff]  }
 0x432   : > { %6428 = vmatpush1.bf16.msra.mxu0 %v12857_v3  ;;  %6470 = vmatprep.subr.bf16.mxu1 %v12868_v4  ;;  %v12931_v3 = vld [vmem:[#allocation8 + $0x1984] ss:$72 sps:$4 sm:$0xff]   ;;  %v12932_v4 = vld [vmem:[#allocation8 + $0x788] ss:$72 sps:$4 sm:$0xff]  }
 0x433   : > { %6429 = vmatprep.subr.bf16.mxu0 %v12865_v7  ;;  %v12929_v7 = vld [vmem:[#allocation8 + $0x1980] ss:$72 sps:$4 sm:$0xff]  }
 0x435   : > { %6471 = vmatpush1.bf16.msra.mxu1 %v12866_v9  ;;  %v12940_v9 = vld [vmem:[#allocation8 + $0x81c] ss:$72 sps:$4 sm:$0xff]  }
 0x436   : > { %6430 = vmatpush1.bf16.msra.mxu0 %v12863_v10  ;;  %6472 = vmatprep.subr.bf16.mxu1 %v12874_v11  ;;  %v12937_v10 = vld [vmem:[#allocation8 + $0x1a14] ss:$72 sps:$4 sm:$0xff]   ;;  %v12938_v11 = vld [vmem:[#allocation8 + $0x818] ss:$72 sps:$4 sm:$0xff]  }
 0x437   : > { %6431 = vmatprep.subr.bf16.mxu0 %v12871_v12  ;;  %v12935_v12 = vld [vmem:[#allocation8 + $0x1a10] ss:$72 sps:$4 sm:$0xff]  }
 0x439   : > { %6473 = vmatpush1.bf16.msra.mxu1 %v12872_v13  ;;  %v12946_v13 = vld [vmem:[#allocation8 + $0x8ac] ss:$72 sps:$4 sm:$0xff]  }
 0x43a   : > { %6432 = vmatpush1.bf16.msra.mxu0 %v12869_v14  ;;  %6474 = vmatprep.subr.bf16.mxu1 %v12880_v15  ;;  %v12943_v14 = vld [vmem:[#allocation8 + $0x1aa4] ss:$72 sps:$4 sm:$0xff]   ;;  %v12944_v15 = vld [vmem:[#allocation8 + $0x8a8] ss:$72 sps:$4 sm:$0xff]  }
 0x43b   : > { %6433 = vmatprep.subr.bf16.mxu0 %v12877_v16  ;;  %v12941_v16 = vld [vmem:[#allocation8 + $0x1aa0] ss:$72 sps:$4 sm:$0xff]  }
 0x43d   : > { %6475 = vmatpush1.bf16.msra.mxu1 %v12878_v17  ;;  %v12949_v17 = vld [vmem:[#allocation8 + $0x93c] ss:$72 sps:$4 sm:$0xff]  }
 0x43e   : > { %6434 = vmatpush1.bf16.msra.mxu0 %v12875_v18  ;;  %6476 = vmatprep.subr.bf16.mxu1 %v12886_v19  ;;  %v12952_v18 = vld [vmem:[#allocation8 + $0x44] ss:$72 sps:$4 sm:$0xff]   ;;  %v12947_v19 = vld [vmem:[#allocation8 + $0x938] ss:$72 sps:$4 sm:$0xff]  }
 0x43f   : > { %v6090_v24 = vpop.f32.mrb[8].mxu1  ;;  %6435 = vmatprep.subr.bf16.mxu0 %v12883_v20  ;;  %v12950_v20 = vld [vmem:[#allocation8 + $0x40] ss:$72 sps:$4 sm:$0xff]  }
 0x440   : > { %v14277_v26 = vpack.c.bf16 %v6090_v24, %v6090_v24  ;;  %v6092_v27 = vpop.f32.mrb[9].mxu1  ;;  %v12953_v24 = vld [vmem:[#allocation8 + $0x9c8] ss:$72 sps:$4 sm:$0xff]  }
 0x441   : > { %v14279_v5 = vpack.c.bf16 %v6092_v27, %v6092_v27  ;;  %v6094_v30 = vpop.f32.mrb[10].mxu1  ;;  %6477 = vmatpush1.bf16.msra.mxu1 %v12884_v21  ;;  %v12955_v21 = vld [vmem:[#allocation8 + $0x9cc] ss:$72 sps:$4 sm:$0xff]   ;;  %v12961_v27 = vld [vmem:[#allocation8 + $0xa5c] ss:$72 sps:$4 sm:$0xff]  }
 0x442   : > { %6436 = vmatpush1.bf16.msra.mxu0 %v12881_v56  ;;  %6749 = vrot.lane.b32.xlu1 %v14277_v26, %s13902_s25  ;;  %v6095_v8 = vpop.f32.mrb[11].mxu1  ;;  %v12958_v56 = vld [vmem:[#allocation8 + $0xd4] ss:$72 sps:$4 sm:$0xff]   ;;  %v12959_v30 = vld [vmem:[#allocation8 + $0xa58] ss:$72 sps:$4 sm:$0xff]  }
 0x443   : > { %6752 = vrot.lane.b32.xlu0 %v14279_v5, %s13902_s25  ;;  %6437 = vmatprep.subr.bf16.mxu0 %v12889_v25  ;;  %v12956_v25 = vld [vmem:[#allocation8 + $0xd0] ss:$72 sps:$4 sm:$0xff]   ;;  %v12967_v8 = vld [vmem:[#allocation8 + $0xaec] ss:$72 sps:$4 sm:$0xff]  }
 0x444   : > { %6478 = vmatprep.subr.bf16.mxu1 %v12892_v29  ;;  %v12964_v29 = vld [vmem:[#allocation8 + $0x164] ss:$72 sps:$4 sm:$0xff]  }
 0x445   : > { %6479 = vmatpush1.bf16.msra.mxu1 %v12890_v31  ;;  %v12962_v31 = vld [vmem:[#allocation8 + $0x160] ss:$72 sps:$4 sm:$0xff]  }
 0x446   : > { %6438 = vmatpush1.bf16.msra.mxu0 %v12887_v32  ;;  %6731 = vrot.lane.b32.xlu1 %v14287_v35, %s13902_s25  ;;  %v12970_v32 = vld [vmem:[#allocation8 + $0x1f4] ss:$72 sps:$4 sm:$0xff]  }
 0x447   : > { %6743 = vrot.lane.b32.xlu0 %v14291_v37, %s13902_s25  ;;  %6439 = vmatprep.subr.bf16.mxu0 %v12895_v34  ;;  %v12965_v34 = vld [vmem:[#allocation8 + $0xae8] ss:$72 sps:$4 sm:$0xff]  }
 0x448   : > { %6480 = vmatprep.subr.bf16.mxu1 %v12898_v36  ;;  %v12968_v36 = vld [vmem:[#allocation8 + $0x1f0] ss:$72 sps:$4 sm:$0xff]  }
 0x449   : > { %6481 = vmatpush1.bf16.msra.mxu1 %v12896_v22  ;;  %v12973_v22 = vld [vmem:[#allocation8 + $0xb7c] ss:$72 sps:$4 sm:$0xff]  }
 0x44a   : > { %6440 = vmatpush1.bf16.msra.mxu0 %v12893_v39  ;;  %6734 = vrot.lane.b32.xlu1 %v14299_v58, %s13902_s25  ;;  %v12976_v39 = vld [vmem:[#allocation8 + $0x284] ss:$72 sps:$4 sm:$0xff]  }
 0x44b   : > { %6746 = vrot.lane.b32.xlu0 %v14303_v53, %s13902_s25  ;;  %6441 = vmatprep.subr.bf16.mxu0 %v12901_v41  ;;  %v12974_v41 = vld [vmem:[#allocation8 + $0x280] ss:$72 sps:$4 sm:$0xff]  }
 0x44c   : > { %6482 = vmatprep.subr.bf16.mxu1 %v12904_v42  ;;  %v12979_v42 = vld [vmem:[#allocation8 + $0xc0c] ss:$72 sps:$4 sm:$0xff]  }
 0x44d   : > { %6483 = vmatpush1.bf16.msra.mxu1 %v12902_v43  ;;  %v12982_v43 = vld [vmem:[#allocation8 + $0x314] ss:$72 sps:$4 sm:$0xff]  }
 0x44e   : > { %6442 = vmatpush1.bf16.msra.mxu0 %v12899_v44  ;;  %6484 = vmatprep.subr.bf16.mxu1 %v12910_v45  ;;  %v12977_v44 = vld [vmem:[#allocation8 + $0xc08] ss:$72 sps:$4 sm:$0xff]  }
 0x44f   : > { %6443 = vmatprep.subr.bf16.mxu0 %v12907_v62  ;;  %v12980_v45 = vld [vmem:[#allocation8 + $0x310] ss:$72 sps:$4 sm:$0xff]   ;;  %v12985_v62 = vld [vmem:[#allocation8 + $0xc9c] ss:$72 sps:$4 sm:$0xff]  }
 0x451   : > { %6485 = vmatpush1.bf16.msra.mxu1 %v12908_v46  ;;  %v12988_v46 = vld [vmem:[#allocation8 + $0x3a4] ss:$72 sps:$4 sm:$0xff]  }
 0x452   : > { %6444 = vmatpush1.bf16.msra.mxu0 %v12905_v47  ;;  %6486 = vmatprep.subr.bf16.mxu1 %v12916_v54 }
 0x453   : > { %6445 = vmatprep.subr.bf16.mxu0 %v12913_v48 }
 0x455   : > { %6487 = vmatpush1.bf16.msra.mxu1 %v12914_v49  ;;  %v12983_v49 = vld [vmem:[#allocation8 + $0xc98] ss:$72 sps:$4 sm:$0xff]  }
 0x456   : > { %6446 = vmatpush1.bf16.msra.mxu0 %v12911_v50  ;;  %6488 = vmatprep.subr.bf16.mxu1 %v12922_v51  ;;  %v12986_v51 = vld [vmem:[#allocation8 + $0x3a0] ss:$72 sps:$4 sm:$0xff]  }
 0x457   : > { %6447 = vmatprep.subr.bf16.mxu0 %v12919_v52  ;;  %v12991_v52 = vld [vmem:[#allocation8 + $0xd2c] ss:$72 sps:$4 sm:$0xff]  }
 0x459   : > { %6489 = vmatpush1.bf16.msra.mxu1 %v12920_v55 }
 0x45a   : > { %6448 = vmatpush1.bf16.msra.mxu0 %v12917_v57  ;;  %6490 = vmatprep.subr.bf16.mxu1 %v12928_v59  ;;  %v12994_v57 = vld [vmem:[#allocation8 + $0x434] ss:$72 sps:$4 sm:$0xff]   ;;  %v14319_v59 = vpack.c.bf16 %v14257_v38, %v14257_v38 }
 0x45b   : > { %6449 = vmatprep.subr.bf16.mxu0 %v12925_v61  ;;  %v12989_v61 = vld [vmem:[#allocation8 + $0xd28] ss:$72 sps:$4 sm:$0xff]   ;;  %v13003_v38 = vld [vmem:[#allocation8 + $0xe4c] ss:$72 sps:$4 sm:$0xff]  }
 0x45d   : > { %6491 = vmatpush1.bf16.msra.mxu1 %v12926_v63  ;;  %v12992_v63 = vld [vmem:[#allocation8 + $0x430] ss:$72 sps:$4 sm:$0xff]  }
 0x45e   : > { %6450 = vmatpush1.bf16.msra.mxu0 %v12923_v0  ;;  %6492 = vmatprep.subr.bf16.mxu1 %v12934_v1  ;;  %v12997_v0 = vld [vmem:[#allocation8 + $0xdbc] ss:$72 sps:$4 sm:$0xff]  }
 0x45f   : > { %6451 = vmatprep.subr.bf16.mxu0 %v12931_v3  ;;  %v13000_v1 = vld [vmem:[#allocation8 + $0x4c4] ss:$72 sps:$4 sm:$0xff]  }
 0x461   : > { %6493 = vmatpush1.bf16.msra.mxu1 %v12932_v4  ;;  %v12995_v4 = vld [vmem:[#allocation8 + $0xdb8] ss:$72 sps:$4 sm:$0xff]  }
 0x462   : > { %6452 = vmatpush1.bf16.msra.mxu0 %v12929_v7  ;;  %6494 = vmatprep.subr.bf16.mxu1 %v12940_v9  ;;  %v12998_v7 = vld [vmem:[#allocation8 + $0x4c0] ss:$72 sps:$4 sm:$0xff]   ;;  %v13006_v9 = vld [vmem:[#allocation8 + $0x554] ss:$72 sps:$4 sm:$0xff]  }
 0x463   : > { %6453 = vmatprep.subr.bf16.mxu0 %v12937_v10  ;;  %v14329_v10 = vpack.c.bf16 %v14259_v40, %v14259_v40  ;;  %v13018_v40 = vld [vmem:[#allocation8 + $0x674] ss:$72 sps:$4 sm:$0xff]  }
 0x465   : > { %6495 = vmatpush1.bf16.msra.mxu1 %v12938_v11  ;;  %v13001_v11 = vld [vmem:[#allocation8 + $0xe48] ss:$72 sps:$4 sm:$0xff]  }
 0x466   : > { %6454 = vmatpush1.bf16.msra.mxu0 %v12935_v12  ;;  %6496 = vmatprep.subr.bf16.mxu1 %v12946_v13  ;;  %v13004_v12 = vld [vmem:[#allocation8 + $0x550] ss:$72 sps:$4 sm:$0xff]   ;;  %v13009_v13 = vld [vmem:[#allocation8 + $0xedc] ss:$72 sps:$4 sm:$0xff]  }
 0x467   : > { %6455 = vmatprep.subr.bf16.mxu0 %v12943_v14  ;;  %v13012_v14 = vld [vmem:[#allocation8 + $0x5e4] ss:$72 sps:$4 sm:$0xff]  }
 0x469   : > { %6497 = vmatpush1.bf16.msra.mxu1 %v12944_v15  ;;  %v13007_v15 = vld [vmem:[#allocation8 + $0xed8] ss:$72 sps:$4 sm:$0xff]  }
 0x46a   : > { %6456 = vmatpush1.bf16.msra.mxu0 %v12941_v16  ;;  %6507 = vmatprep.subr.bf16.mxu1 %v12949_v17  ;;  %v13010_v16 = vld [vmem:[#allocation8 + $0x5e0] ss:$72 sps:$4 sm:$0xff]   ;;  %v13015_v17 = vld [vmem:[#allocation8 + $0xf6c] ss:$72 sps:$4 sm:$0xff]  }
 0x46b   : > { %6589 = vmatprep.subr.bf16.mxu0 %v12952_v18  ;;  %v13013_v18 = vld [vmem:[#allocation8 + $0xf68] ss:$72 sps:$4 sm:$0xff]  }
 0x46c   : > { %6499 = vmatmul.mubr.bf16.vlgmr.msra.gmra.mrb[16].mxu1 %v14207_v2 }
 0x46d   : > { %6458 = vmatmul.mubr.bf16.vlgmr.msra.gmra.mrb[12].mxu0 %v14221_v33  ;;  %6508 = vmatpush1.bf16.msra.mxu1 %v12947_v19  ;;  %v13016_v19 = vld [vmem:[#allocation8 + $0x670] ss:$72 sps:$4 sm:$0xff]  }
 0x46e   : > { %6539 = vmatprep.mubr.bf16.mxu1 %v14205_v6  ;;  %6590 = vmatpush1.bf16.msra.mxu0 %v12950_v20  ;;  %v13021_v20 = vld [vmem:[#allocation8 + $0xffc] ss:$72 sps:$4 sm:$0xff]  }
 0x46f   : > { %6621 = vmatprep.mubr.bf16.mxu0 %v14203_v60  ;;  %6509 = vmatprep.subr.bf16.mxu1 %v12955_v21  ;;  %v12971_v60 = vld [vmem:[#allocation8 + $0xb78] ss:$72 sps:$4 sm:$0xff]   ;;  %v13024_v21 = vld [vmem:[#allocation8 + $0x704] ss:$72 sps:$4 sm:$0xff]  }
 0x470   : > { %6591 = vmatprep.subr.bf16.mxu0 %v12958_v56  ;;  %v13019_v56 = vld [vmem:[#allocation8 + $0xff8] ss:$72 sps:$4 sm:$0xff]  }
 0x471   : > { %6510 = vmatpush1.bf16.msra.mxu1 %v12953_v24  ;;  %v13022_v24 = vld [vmem:[#allocation8 + $0x700] ss:$72 sps:$4 sm:$0xff]  }
 0x472   : > { %6592 = vmatpush1.bf16.msra.mxu0 %v12956_v25  ;;  %6511 = vmatprep.subr.bf16.mxu1 %v12961_v27  ;;  %v13027_v25 = vld [vmem:[#allocation8 + $0x108c] ss:$72 sps:$4 sm:$0xff]  }
 0x473   : > { %6593 = vmatprep.subr.bf16.mxu0 %v12964_v29  ;;  %v13030_v27 = vld [vmem:[#allocation8 + $0x794] ss:$72 sps:$4 sm:$0xff]   ;;  %v13025_v29 = vld [vmem:[#allocation8 + $0x1088] ss:$72 sps:$4 sm:$0xff]  }
 0x475   : > { %6512 = vmatpush1.bf16.msra.mxu1 %v12959_v30  ;;  %v13028_v30 = vld [vmem:[#allocation8 + $0x790] ss:$72 sps:$4 sm:$0xff]  }
 0x476   : > { %6594 = vmatpush1.bf16.msra.mxu0 %v12962_v31  ;;  %6513 = vmatprep.subr.bf16.mxu1 %v12967_v8  ;;  %v13033_v31 = vld [vmem:[#allocation8 + $0x111c] ss:$72 sps:$4 sm:$0xff]  }
 0x477   : > { %6595 = vmatprep.subr.bf16.mxu0 %v12970_v32  ;;  %v13036_v8 = vld [vmem:[#allocation8 + $0x824] ss:$72 sps:$4 sm:$0xff]   ;;  %v13031_v32 = vld [vmem:[#allocation8 + $0x1118] ss:$72 sps:$4 sm:$0xff]  }
 0x479   : > { %6514 = vmatpush1.bf16.msra.mxu1 %v12965_v34  ;;  %v13034_v34 = vld [vmem:[#allocation8 + $0x820] ss:$72 sps:$4 sm:$0xff]  }
 0x47a   : > { %6596 = vmatpush1.bf16.msra.mxu0 %v12968_v36  ;;  %6515 = vmatprep.subr.bf16.mxu1 %v12973_v22  ;;  %v13039_v36 = vld [vmem:[#allocation8 + $0x11ac] ss:$72 sps:$4 sm:$0xff]  }
 0x47b   : > { %6597 = vmatprep.subr.bf16.mxu0 %v12976_v39  ;;  %v13042_v22 = vld [vmem:[#allocation8 + $0x8b4] ss:$72 sps:$4 sm:$0xff]   ;;  %v13037_v39 = vld [vmem:[#allocation8 + $0x11a8] ss:$72 sps:$4 sm:$0xff]  }
 0x47d   : > { %6516 = vmatpush1.bf16.msra.mxu1 %v12971_v60  ;;  %v13040_v60 = vld [vmem:[#allocation8 + $0x8b0] ss:$72 sps:$4 sm:$0xff]  }
 0x47e   : > { %6598 = vmatpush1.bf16.msra.mxu0 %v12974_v41  ;;  %6517 = vmatprep.subr.bf16.mxu1 %v12979_v42  ;;  %v13045_v41 = vld [vmem:[#allocation8 + $0x123c] ss:$72 sps:$4 sm:$0xff]  }
 0x47f   : > { %6599 = vmatprep.subr.bf16.mxu0 %v12982_v43  ;;  %v13048_v42 = vld [vmem:[#allocation8 + $0x944] ss:$72 sps:$4 sm:$0xff]   ;;  %v13043_v43 = vld [vmem:[#allocation8 + $0x1238] ss:$72 sps:$4 sm:$0xff]  }
 0x480   : > { %v6213_v47 = vpop.f32.mrb[8].mxu0 }
 0x481   : > { %v14313_v54 = vpack.c.bf16 %v6213_v47, %v6213_v47  ;;  %v6215_v48 = vpop.f32.mrb[9].mxu0  ;;  %6518 = vmatpush1.bf16.msra.mxu1 %v12977_v44  ;;  %v13046_v44 = vld [vmem:[#allocation8 + $0x940] ss:$72 sps:$4 sm:$0xff]   ;;  %v13052_v47 = vld [vmem:[#allocation8 + $0x9d0] ss:$72 sps:$4 sm:$0xff]  }
 0x482   : > { %v6217_v50 = vpop.f32.mrb[10].mxu0  ;;  %6600 = vmatpush1.bf16.msra.mxu0 %v12980_v45  ;;  %6519 = vmatprep.subr.bf16.mxu1 %v12985_v62  ;;  %v14323_v3 = vpack.c.bf16 %v6215_v48, %v6215_v48  ;;  %v13051_v45 = vld [vmem:[#allocation8 + $0x12cc] ss:$72 sps:$4 sm:$0xff]   ;;  %v13057_v48 = vld [vmem:[#allocation8 + $0x135c] ss:$72 sps:$4 sm:$0xff]  }
 0x483   : > { %v6218_v55 = vpop.f32.mrb[11].mxu0  ;;  %6755 = vrot.lane.b32.xlu1 %v14313_v54, %s13902_s25  ;;  %6601 = vmatprep.subr.bf16.mxu0 %v12988_v46  ;;  %v13054_v62 = vld [vmem:[#allocation8 + $0x9d4] ss:$72 sps:$4 sm:$0xff]   ;;  %v13049_v46 = vld [vmem:[#allocation8 + $0x12c8] ss:$72 sps:$4 sm:$0xff]  }
 0x484   : > { %v13055_v50 = vld [vmem:[#allocation8 + $0x1358] ss:$72 sps:$4 sm:$0xff]   ;;  %v13061_v55 = vld [vmem:[#allocation8 + $0x13e8] ss:$72 sps:$4 sm:$0xff]  }
 0x485   : > { %6520 = vmatpush1.bf16.msra.mxu1 %v12983_v49  ;;  %v13060_v49 = vld [vmem:[#allocation8 + $0xa64] ss:$72 sps:$4 sm:$0xff]  }
 0x486   : > { %6602 = vmatpush1.bf16.msra.mxu0 %v12986_v51  ;;  %6521 = vmatprep.subr.bf16.mxu1 %v12991_v52  ;;  %v13058_v51 = vld [vmem:[#allocation8 + $0xa60] ss:$72 sps:$4 sm:$0xff]   ;;  %v13063_v52 = vld [vmem:[#allocation8 + $0x13ec] ss:$72 sps:$4 sm:$0xff]  }
 0x487   : > { %6737 = vrot.lane.b32.xlu1 %v14319_v59, %s13902_s25  ;;  %6603 = vmatprep.subr.bf16.mxu0 %v12994_v57  ;;  %v13064_v57 = vld [vmem:[#allocation8 + $0xaf0] ss:$72 sps:$4 sm:$0xff]  }
 0x489   : > { %6522 = vmatpush1.bf16.msra.mxu1 %v12989_v61  ;;  %v13069_v61 = vld [vmem:[#allocation8 + $0x147c] ss:$72 sps:$4 sm:$0xff]  }
 0x48a   : > { %6604 = vmatpush1.bf16.msra.mxu0 %v12992_v63  ;;  %6523 = vmatprep.subr.bf16.mxu1 %v12997_v0  ;;  %v13072_v63 = vld [vmem:[#allocation8 + $0xb84] ss:$72 sps:$4 sm:$0xff]   ;;  %v13070_v0 = vld [vmem:[#allocation8 + $0xb80] ss:$72 sps:$4 sm:$0xff]  }
 0x48b   : > { %6758 = vrot.lane.b32.xlu1 %v14323_v3, %s13902_s25  ;;  %6605 = vmatprep.subr.bf16.mxu0 %v13000_v1  ;;  %v13075_v1 = vld [vmem:[#allocation8 + $0x150c] ss:$72 sps:$4 sm:$0xff]  }
 0x48d   : > { %6524 = vmatpush1.bf16.msra.mxu1 %v12995_v4  ;;  %v13078_v4 = vld [vmem:[#allocation8 + $0xc14] ss:$72 sps:$4 sm:$0xff]  }
 0x48e   : > { %6606 = vmatpush1.bf16.msra.mxu0 %v12998_v7  ;;  %6525 = vmatprep.subr.bf16.mxu1 %v13003_v38  ;;  %v13073_v7 = vld [vmem:[#allocation8 + $0x1508] ss:$72 sps:$4 sm:$0xff]  }
 0x48f   : > { %6740 = vrot.lane.b32.xlu1 %v14329_v10, %s13902_s25  ;;  %6607 = vmatprep.subr.bf16.mxu0 %v13006_v9  ;;  %v13076_v38 = vld [vmem:[#allocation8 + $0xc10] ss:$72 sps:$4 sm:$0xff]   ;;  %v13081_v9 = vld [vmem:[#allocation8 + $0x159c] ss:$72 sps:$4 sm:$0xff]  }
 0x491   : > { %6526 = vmatpush1.bf16.msra.mxu1 %v13001_v11  ;;  %v13084_v11 = vld [vmem:[#allocation8 + $0xca4] ss:$72 sps:$4 sm:$0xff]  }
 0x492   : > { %6608 = vmatpush1.bf16.msra.mxu0 %v13004_v12  ;;  %6527 = vmatprep.subr.bf16.mxu1 %v13009_v13  ;;  %v13079_v12 = vld [vmem:[#allocation8 + $0x1598] ss:$72 sps:$4 sm:$0xff]  }
 0x493   : > { %6609 = vmatprep.subr.bf16.mxu0 %v13012_v14  ;;  %v13082_v13 = vld [vmem:[#allocation8 + $0xca0] ss:$72 sps:$4 sm:$0xff]   ;;  %v13087_v14 = vld [vmem:[#allocation8 + $0x162c] ss:$72 sps:$4 sm:$0xff]  }
 0x495   : > { %6528 = vmatpush1.bf16.msra.mxu1 %v13007_v15  ;;  %v13090_v15 = vld [vmem:[#allocation8 + $0xd34] ss:$72 sps:$4 sm:$0xff]  }
 0x496   : > { %6610 = vmatpush1.bf16.msra.mxu0 %v13010_v16  ;;  %6529 = vmatprep.subr.bf16.mxu1 %v13015_v17  ;;  %v13085_v16 = vld [vmem:[#allocation8 + $0x1628] ss:$72 sps:$4 sm:$0xff]  }
 0x497   : > { %6611 = vmatprep.subr.bf16.mxu0 %v13018_v40  ;;  %v13088_v17 = vld [vmem:[#allocation8 + $0xd30] ss:$72 sps:$4 sm:$0xff]   ;;  %v13093_v40 = vld [vmem:[#allocation8 + $0x16bc] ss:$72 sps:$4 sm:$0xff]  }
 0x499   : > { %6530 = vmatpush1.bf16.msra.mxu1 %v13013_v18  ;;  %v13096_v18 = vld [vmem:[#allocation8 + $0xdc4] ss:$72 sps:$4 sm:$0xff]  }
 0x49a   : > { %6612 = vmatpush1.bf16.msra.mxu0 %v13016_v19  ;;  %6531 = vmatprep.subr.bf16.mxu1 %v13021_v20  ;;  %v13091_v19 = vld [vmem:[#allocation8 + $0x16b8] ss:$72 sps:$4 sm:$0xff]  }
 0x49b   : > { %6613 = vmatprep.subr.bf16.mxu0 %v13024_v21  ;;  %v13094_v20 = vld [vmem:[#allocation8 + $0xdc0] ss:$72 sps:$4 sm:$0xff]   ;;  %v13099_v21 = vld [vmem:[#allocation8 + $0x174c] ss:$72 sps:$4 sm:$0xff]  }
 0x49d   : > { %6532 = vmatpush1.bf16.msra.mxu1 %v13019_v56  ;;  %v13102_v56 = vld [vmem:[#allocation8 + $0xe54] ss:$72 sps:$4 sm:$0xff]  }
 0x49e   : > { %6614 = vmatpush1.bf16.msra.mxu0 %v13022_v24  ;;  %6533 = vmatprep.subr.bf16.mxu1 %v13027_v25  ;;  %v13097_v24 = vld [vmem:[#allocation8 + $0x1748] ss:$72 sps:$4 sm:$0xff]  }
 0x49f   : > { %6615 = vmatprep.subr.bf16.mxu0 %v13030_v27  ;;  %v13100_v25 = vld [vmem:[#allocation8 + $0xe50] ss:$72 sps:$4 sm:$0xff]   ;;  %v13105_v27 = vld [vmem:[#allocation8 + $0x17dc] ss:$72 sps:$4 sm:$0xff]  }
 0x4a1   : > { %6534 = vmatpush1.bf16.msra.mxu1 %v13025_v29  ;;  %v13108_v29 = vld [vmem:[#allocation8 + $0xee4] ss:$72 sps:$4 sm:$0xff]  }
 0x4a2   : > { %6616 = vmatpush1.bf16.msra.mxu0 %v13028_v30  ;;  %6535 = vmatprep.subr.bf16.mxu1 %v13033_v31  ;;  %v13103_v30 = vld [vmem:[#allocation8 + $0x17d8] ss:$72 sps:$4 sm:$0xff]  }
 0x4a3   : > { %6617 = vmatprep.subr.bf16.mxu0 %v13036_v8  ;;  %v13106_v31 = vld [vmem:[#allocation8 + $0xee0] ss:$72 sps:$4 sm:$0xff]   ;;  %v13111_v8 = vld [vmem:[#allocation8 + $0x186c] ss:$72 sps:$4 sm:$0xff]  }
 0x4a5   : > { %6536 = vmatpush1.bf16.msra.mxu1 %v13031_v32  ;;  %v13114_v32 = vld [vmem:[#allocation8 + $0xf74] ss:$72 sps:$4 sm:$0xff]  }
 0x4a6   : > { %6618 = vmatpush1.bf16.msra.mxu0 %v13034_v34  ;;  %6537 = vmatprep.subr.bf16.mxu1 %v13039_v36  ;;  %v13109_v34 = vld [vmem:[#allocation8 + $0x1868] ss:$72 sps:$4 sm:$0xff]  }
 0x4a7   : > { %6619 = vmatprep.subr.bf16.mxu0 %v13042_v22  ;;  %v13112_v36 = vld [vmem:[#allocation8 + $0xf70] ss:$72 sps:$4 sm:$0xff]   ;;  %v13117_v22 = vld [vmem:[#allocation8 + $0x18fc] ss:$72 sps:$4 sm:$0xff]  }
 0x4a9   : > { %6538 = vmatpush1.bf16.msra.mxu1 %v13037_v39  ;;  %v13120_v39 = vld [vmem:[#allocation8 + $0x1004] ss:$72 sps:$4 sm:$0xff]  }
 0x4aa   : > { %6620 = vmatpush1.bf16.msra.mxu0 %v13040_v60  ;;  %6548 = vmatprep.subr.bf16.mxu1 %v13045_v41  ;;  %v13115_v60 = vld [vmem:[#allocation8 + $0x18f8] ss:$72 sps:$4 sm:$0xff]  }
 0x4ab   : > { %6630 = vmatprep.subr.bf16.mxu0 %v13048_v42  ;;  %v13118_v41 = vld [vmem:[#allocation8 + $0x1000] ss:$72 sps:$4 sm:$0xff]   ;;  %v13123_v42 = vld [vmem:[#allocation8 + $0x198c] ss:$72 sps:$4 sm:$0xff]  }
 0x4ac   : > { %6540 = vmatmul.mubr.bf16.vlgmr.msra.gmra.mrb[16].mxu1 %v14209_v23 }
 0x4ad   : > { %6622 = vmatmul.mubr.bf16.vlgmr.msra.gmra.mrb[16].mxu0 %v14207_v2  ;;  %6549 = vmatpush1.bf16.msra.mxu1 %v13043_v43  ;;  %v13066_v2 = vld [vmem:[#allocation8 + $0xaf4] ss:$72 sps:$4 sm:$0xff]  }
 0x4ae   : > { %6580 = vmatprep.mubr.bf16.mxu1 %v14215_v28  ;;  %6631 = vmatpush1.bf16.msra.mxu0 %v13046_v44  ;;  %v13126_v43 = vld [vmem:[#allocation8 + $0x1094] ss:$72 sps:$4 sm:$0xff]   ;;  %v13121_v44 = vld [vmem:[#allocation8 + $0x1988] ss:$72 sps:$4 sm:$0xff]  }
 0x4af   : > { %6662 = vmatprep.mubr.bf16.mxu0 %v14205_v6  ;;  %6550 = vmatprep.subr.bf16.mxu1 %v13051_v45  ;;  %v13067_v6 = vld [vmem:[#allocation8 + $0x1478] ss:$72 sps:$4 sm:$0xff]  }
 0x4b0   : > { %6632 = vmatprep.subr.bf16.mxu0 %v13054_v62  ;;  %v13124_v45 = vld [vmem:[#allocation8 + $0x1090] ss:$72 sps:$4 sm:$0xff]   ;;  %v13129_v62 = vld [vmem:[#allocation8 + $0x1a1c] ss:$72 sps:$4 sm:$0xff]  }
 0x4b1   : > { %6551 = vmatpush1.bf16.msra.mxu1 %v13049_v46  ;;  %v13132_v46 = vld [vmem:[#allocation8 + $0x1124] ss:$72 sps:$4 sm:$0xff]  }
 0x4b2   : > { %6633 = vmatpush1.bf16.msra.mxu0 %v13052_v47  ;;  %6552 = vmatprep.subr.bf16.mxu1 %v13057_v48  ;;  %v13127_v47 = vld [vmem:[#allocation8 + $0x1a18] ss:$72 sps:$4 sm:$0xff]  }
 0x4b3   : > { %6634 = vmatprep.subr.bf16.mxu0 %v13060_v49  ;;  %v13130_v48 = vld [vmem:[#allocation8 + $0x1120] ss:$72 sps:$4 sm:$0xff]   ;;  %v13135_v49 = vld [vmem:[#allocation8 + $0x1aac] ss:$72 sps:$4 sm:$0xff]  }
 0x4b5   : > { %6553 = vmatpush1.bf16.msra.mxu1 %v13055_v50  ;;  %v13138_v50 = vld [vmem:[#allocation8 + $0x11b4] ss:$72 sps:$4 sm:$0xff]  }
 0x4b6   : > { %6635 = vmatpush1.bf16.msra.mxu0 %v13058_v51  ;;  %6554 = vmatprep.subr.bf16.mxu1 %v13063_v52  ;;  %v13133_v51 = vld [vmem:[#allocation8 + $0x1aa8] ss:$72 sps:$4 sm:$0xff]  }
 0x4b7   : > { %6636 = vmatprep.subr.bf16.mxu0 %v13066_v2  ;;  %v13136_v52 = vld [vmem:[#allocation8 + $0x11b0] ss:$72 sps:$4 sm:$0xff]   ;;  %v13141_v2 = vld [vmem:[#allocation8 + $0x1244] ss:$72 sps:$4 sm:$0xff]  }
 0x4b9   : > { %6555 = vmatpush1.bf16.msra.mxu1 %v13061_v55  ;;  %v13139_v55 = vld [vmem:[#allocation8 + $0x1240] ss:$72 sps:$4 sm:$0xff]  }
 0x4ba   : > { %6637 = vmatpush1.bf16.msra.mxu0 %v13064_v57  ;;  %6556 = vmatprep.subr.bf16.mxu1 %v13069_v61  ;;  %v13903_v57 = vmov 0.0   ;;  %v13144_v61 = vld [vmem:[#allocation8 + $0x12d4] ss:$72 sps:$4 sm:$0xff]  }
 0x4bb   : > { %6638 = vmatprep.subr.bf16.mxu0 %v13072_v63  ;;  %v13142_v63 = vld [vmem:[#allocation8 + $0x12d0] ss:$72 sps:$4 sm:$0xff]  }
 0x4bd   : > { %6557 = vmatpush1.bf16.msra.mxu1 %v13067_v6  ;;  %v13147_v6 = vld [vmem:[#allocation8 + $0x1364] ss:$72 sps:$4 sm:$0xff]  }
 0x4be   : > { %6639 = vmatpush1.bf16.msra.mxu0 %v13070_v0  ;;  %6558 = vmatprep.subr.bf16.mxu1 %v13075_v1  ;;  %v6789_v0 = vsel %vm6784_vm1, %v14277_v26, 0  ;;  %v13145_v1 = vld [vmem:[#allocation8 + $0x1360] ss:$72 sps:$4 sm:$0xff]  }
 0x4bf   : > { %6640 = vmatprep.subr.bf16.mxu0 %v13078_v4  ;;  %v13150_v4 = vld [vmem:[#allocation8 + $0x13f4] ss:$72 sps:$4 sm:$0xff]   ;;  %v13151_v26 = vld [vmem:[#allocation8 + $0x1480] ss:$72 sps:$4 sm:$0xff]  }
 0x4c1   : > { %6559 = vmatpush1.bf16.msra.mxu1 %v13073_v7  ;;  %v13148_v7 = vld [vmem:[#allocation8 + $0x13f0] ss:$72 sps:$4 sm:$0xff]  }
 0x4c2   : > { %6641 = vmatpush1.bf16.msra.mxu0 %v13076_v38  ;;  %6560 = vmatprep.subr.bf16.mxu1 %v13081_v9  ;;  %v13153_v38 = vld [vmem:[#allocation8 + $0x1484] ss:$72 sps:$4 sm:$0xff]   ;;  %v13156_v9 = vld [vmem:[#allocation8 + $0x1514] ss:$72 sps:$4 sm:$0xff]  }
 0x4c3   : > { %6642 = vmatprep.subr.bf16.mxu0 %v13084_v11  ;;  %v13154_v11 = vld [vmem:[#allocation8 + $0x1510] ss:$72 sps:$4 sm:$0xff]  }
 0x4c5   : > { %6561 = vmatpush1.bf16.msra.mxu1 %v13079_v12 }
 0x4c6   : > { %6643 = vmatpush1.bf16.msra.mxu0 %v13082_v13  ;;  %6562 = vmatprep.subr.bf16.mxu1 %v13087_v14  ;;  %v13159_v13 = vld [vmem:[#allocation8 + $0x15a4] ss:$72 sps:$4 sm:$0xff]  }
 0x4c7   : > { %6644 = vmatprep.subr.bf16.mxu0 %v13090_v15 }
 0x4c9   : > { %6563 = vmatpush1.bf16.msra.mxu1 %v13085_v16 }
 0x4ca   : > { %6645 = vmatpush1.bf16.msra.mxu0 %v13088_v17  ;;  %6564 = vmatprep.subr.bf16.mxu1 %v13093_v40 }
 0x4cb   : > { %6646 = vmatprep.subr.bf16.mxu0 %v13096_v18  ;;  %v13157_v18 = vld [vmem:[#allocation8 + $0x15a0] ss:$72 sps:$4 sm:$0xff]  }
 0x4cd   : > { %6565 = vmatpush1.bf16.msra.mxu1 %v13091_v19  ;;  %v13162_v19 = vld [vmem:[#allocation8 + $0x1634] ss:$72 sps:$4 sm:$0xff]  }
 0x4ce   : > { %6647 = vmatpush1.bf16.msra.mxu0 %v13094_v20  ;;  %6566 = vmatprep.subr.bf16.mxu1 %v13099_v21  ;;  %v13160_v21 = vld [vmem:[#allocation8 + $0x1630] ss:$72 sps:$4 sm:$0xff]  }
 0x4cf   : > { %6648 = vmatprep.subr.bf16.mxu0 %v13102_v56  ;;  %v13165_v56 = vld [vmem:[#allocation8 + $0x16c4] ss:$72 sps:$4 sm:$0xff]  }
 0x4d1   : > { %6567 = vmatpush1.bf16.msra.mxu1 %v13097_v24 }
 0x4d2   : > { %6649 = vmatpush1.bf16.msra.mxu0 %v13100_v25  ;;  %6568 = vmatprep.subr.bf16.mxu1 %v13105_v27  ;;  %v13163_v25 = vld [vmem:[#allocation8 + $0x16c0] ss:$72 sps:$4 sm:$0xff]   ;;  %v13168_v27 = vld [vmem:[#allocation8 + $0x1754] ss:$72 sps:$4 sm:$0xff]  }
 0x4d3   : > { %6650 = vmatprep.subr.bf16.mxu0 %v13108_v29  ;;  %v13166_v29 = vld [vmem:[#allocation8 + $0x1750] ss:$72 sps:$4 sm:$0xff]  }
 0x4d5   : > { %6569 = vmatpush1.bf16.msra.mxu1 %v13103_v30  ;;  %v13171_v30 = vld [vmem:[#allocation8 + $0x17e4] ss:$72 sps:$4 sm:$0xff]  }
 0x4d6   : > { %6651 = vmatpush1.bf16.msra.mxu0 %v13106_v31  ;;  %6570 = vmatprep.subr.bf16.mxu1 %v13111_v8  ;;  %v6973_v8 = vsel %vm6784_vm1, %v14313_v54, 0  ;;  %v13175_v54 = vld [vmem:[#allocation8 + $0x1900] ss:$72 sps:$4 sm:$0xff]  }
 0x4d7   : > { %6652 = vmatprep.subr.bf16.mxu0 %v13114_v32  ;;  %v13174_v32 = vld [vmem:[#allocation8 + $0x1874] ss:$72 sps:$4 sm:$0xff]  }
 0x4d9   : > { %6571 = vmatpush1.bf16.msra.mxu1 %v13109_v34 }
 0x4da   : > { %6653 = vmatpush1.bf16.msra.mxu0 %v13112_v36  ;;  %6572 = vmatprep.subr.bf16.mxu1 %v13117_v22  ;;  %v13172_v36 = vld [vmem:[#allocation8 + $0x1870] ss:$72 sps:$4 sm:$0xff]   ;;  %v13177_v22 = vld [vmem:[#allocation8 + $0x1904] ss:$72 sps:$4 sm:$0xff]  }
 0x4db   : > { %6654 = vmatprep.subr.bf16.mxu0 %v13120_v39 }
 0x4dd   : > { %6573 = vmatpush1.bf16.msra.mxu1 %v13115_v60  ;;  %v13180_v60 = vld [vmem:[#allocation8 + $0x1994] ss:$72 sps:$4 sm:$0xff]  }
 0x4de   : > { %6655 = vmatpush1.bf16.msra.mxu0 %v13118_v41  ;;  %6574 = vmatprep.subr.bf16.mxu1 %v13123_v42  ;;  %v13178_v41 = vld [vmem:[#allocation8 + $0x1990] ss:$72 sps:$4 sm:$0xff]   ;;  %v13183_v42 = vld [vmem:[#allocation8 + $0x1a24] ss:$72 sps:$4 sm:$0xff]  }
 0x4df   : > { %6656 = vmatprep.subr.bf16.mxu0 %v13126_v43 }
 0x4e1   : > { %6575 = vmatpush1.bf16.msra.mxu1 %v13121_v44  ;;  %v7065_v44 = vsel %vm6784_vm1, %v14323_v3, 0 }
 0x4e2   : > { %6657 = vmatpush1.bf16.msra.mxu0 %v13124_v45  ;;  %6576 = vmatprep.subr.bf16.mxu1 %v13129_v62  ;;  %v13186_v45 = vld [vmem:[#allocation8 + $0x1ab4] ss:$72 sps:$4 sm:$0xff]  }
 0x4e3   : > { %6658 = vmatprep.subr.bf16.mxu0 %v13132_v46  ;;  %v13184_v46 = vld [vmem:[#allocation8 + $0x1ab0] ss:$72 sps:$4 sm:$0xff]  }
 0x4e5   : > { %6577 = vmatpush1.bf16.msra.mxu1 %v13127_v47 }
 0x4e6   : > { %6659 = vmatpush1.bf16.msra.mxu0 %v13130_v48  ;;  %6578 = vmatprep.subr.bf16.mxu1 %v13135_v49 }
 0x4e7   : > { %6660 = vmatprep.subr.bf16.mxu0 %v13138_v50 }
 0x4e9   : > { %6579 = vmatpush1.bf16.msra.mxu1 %v13133_v51 }
 0x4ea   : > { %6661 = vmatpush1.bf16.msra.mxu0 %v13136_v52  ;;  %11555 = vmatprep.subr.bf16.mxu1 %v13903_v57 }
 0x4eb   : > { %6671 = vmatprep.subr.bf16.mxu0 %v13141_v2 }
 0x4ec   : > { %6581 = vmatmul.mubr.bf16.vlgmr.msra.gmra.mrb[16].mxu1 %v14221_v33 }
 0x4ed   : > { %6663 = vmatmul.mubr.bf16.vlgmr.msra.gmra.mrb[16].mxu0 %v14209_v23  ;;  %11557 = vmatprep.mubr.msk.bf16.mxu1 %vm13904_vm0, %v13903_v57  ;;  %v6750_v23 = vpop.permute.xlu1 %6749 }
 0x4ee   : > { %6672 = vmatpush1.bf16.msra.mxu0 %v13139_v55  ;;  %6703 = vmatprep.mubr.bf16.mxu0 %v14215_v28  ;;  %v6835_v28 = vsel %vm6784_vm1, %v6750_v23, 0 }
 0x4ef   : > { %6673 = vmatprep.subr.bf16.mxu0 %v13144_v61 }
 0x4f1   : > { %v6732_v14 = vpop.permute.xlu1 %6731 }
 0x4f2   : > { %6674 = vmatpush1.bf16.msra.mxu0 %v13142_v63  ;;  %11556 = vmatpush3.bf16.xpose.msra.mxu1 %v6789_v0 }
 0x4f3   : > { %6675 = vmatprep.subr.bf16.mxu0 %v13147_v6  ;;  %11561 = vmatprep.subr.bf16.mxu1 %v13903_v57 }
 0x4f5   : > { %v6735_v31 = vpop.permute.xlu1 %6734 }
 0x4f6   : > { %6676 = vmatpush1.bf16.msra.mxu0 %v13145_v1 }
 0x4f7   : > { %6677 = vmatprep.subr.bf16.mxu0 %v13150_v4 }
 0x4f9   : > { %11558 = vmatmul.mubr.msk.bf16.vlgmr.msra.gmra.mrb[20].mxu1 %vm6784_vm1, %v14287_v35  ;;  %v6881_v35 = vsel %vm6784_vm1, %v14279_v5, 0  ;;  %v6753_v5 = vpop.permute.xlu0 %6752  ;;  %v6756_v34 = vpop.permute.xlu1 %6755 }
 0x4fa   : > { %6678 = vmatpush1.bf16.msra.mxu0 %v13148_v7  ;;  %11562 = vmatpush3.bf16.xpose.msra.mxu1 %v6835_v28  ;;  %v6927_v24 = vsel %vm6784_vm1, %v6753_v5, 0  ;;  %v7019_v39 = vsel %vm6784_vm1, %v6756_v34, 0 }
 0x4fb   : > { %6679 = vmatprep.subr.bf16.mxu0 %v13153_v38  ;;  %11563 = vmatprep.mubr.msk.bf16.mxu1 %vm13904_vm0, %v13903_v57 }
 0x4fc   : > { %11567 = vmatprep.subr.bf16.mxu1 %v13903_v57 }
 0x4fd   : > { %v6738_v43 = vpop.permute.xlu1 %6737  ;;  %v6744_v2 = vpop.permute.xlu0 %6743 }
 0x4fe   : > { %6680 = vmatpush1.bf16.msra.mxu0 %v13151_v26 }
 0x4ff   : > { %v6336_v12 = vpop.f32.mrb[12].mxu1  ;;  %6681 = vmatprep.subr.bf16.mxu0 %v13156_v9 }
 0x500   : > { %v14352_v15 = vpack.c.bf16 %v6336_v12, %v6336_v12  ;;  %v6338_v16 = vpop.f32.mrb[13].mxu1 }
 0x501   : > { %v6340_v17 = vpop.f32.mrb[14].mxu1  ;;  %11564 = vmatmul.mubr.msk.bf16.vlgmr.msra.gmra.mrb[24].mxu1 %vm6784_vm1, %v6732_v14  ;;  %v14362_v20 = vpack.c.bf16 %v6338_v16, %v6338_v16  ;;  %v6759_v62 = vpop.permute.xlu1 %6758 }
 0x502   : > { %6682 = vmatpush1.bf16.msra.mxu0 %v13154_v11  ;;  %11568 = vmatpush3.bf16.xpose.msra.mxu1 %v6881_v35  ;;  %v6341_v40 = vpop.f32.mrb[15].mxu1  ;;  %v7111_v47 = vsel %vm6784_vm1, %v6759_v62, 0  ;;  %v7157_v48 = vsel %vm6784_vm1, %v14352_v15, 0  ;;  %v6747_v6 = vpop.permute.xlu0 %6746 }
 0x503   : > { %6761 = vrot.lane.b32.xlu1 %v14352_v15, %s13902_s25  ;;  %6683 = vmatprep.subr.bf16.mxu0 %v13159_v13  ;;  %v7249_v55 = vsel %vm6784_vm1, %v14362_v20, 0 }
 0x504   : > { %11569 = vmatprep.mubr.msk.bf16.mxu1 %vm13904_vm0, %v13903_v57  ;;  %11573 = vmatprep.subr.bf16.mxu1 %v13903_v57 }
 0x505   : > { %v6741_v3 = vpop.permute.xlu1 %6740 }
 0x506   : > { %6684 = vmatpush1.bf16.msra.mxu0 %v13157_v18 }
 0x507   : > { %6764 = vrot.lane.b32.xlu1 %v14362_v20, %s13902_s25  ;;  %6685 = vmatprep.subr.bf16.mxu0 %v13162_v19 }
 0x509   : > { %11570 = vmatmul.mubr.msk.bf16.vlgmr.msra.gmra.mrb[28].mxu1 %vm6784_vm1, %v14299_v58  ;;  %v13169_v58 = vld [vmem:[#allocation8 + $0x17e0] ss:$72 sps:$4 sm:$0xff]  }
 0x50a   : > { %6686 = vmatpush1.bf16.msra.mxu0 %v13160_v21  ;;  %11574 = vmatpush3.bf16.xpose.msra.mxu1 %v6927_v24 }
 0x50b   : > { %6687 = vmatprep.subr.bf16.mxu0 %v13165_v56  ;;  %11575 = vmatprep.mubr.msk.bf16.mxu1 %vm13904_vm0, %v13903_v57 }
 0x50c   : > { %11579 = vmatprep.subr.bf16.mxu1 %v13903_v57 }
 0x50e   : > { %6688 = vmatpush1.bf16.msra.mxu0 %v13163_v25 }
 0x50f   : > { %6689 = vmatprep.subr.bf16.mxu0 %v13168_v27 }
 0x511   : > { %11576 = vmatmul.mubr.msk.bf16.vlgmr.msra.gmra.mrb[32].mxu1 %vm6784_vm1, %v6735_v31 }
 0x512   : > { %6690 = vmatpush1.bf16.msra.mxu0 %v13166_v29  ;;  %11580 = vmatpush3.bf16.xpose.msra.mxu1 %v6973_v8 }
 0x513   : > { %6691 = vmatprep.subr.bf16.mxu0 %v13171_v30  ;;  %11581 = vmatprep.mubr.msk.bf16.mxu1 %vm13904_vm0, %v13903_v57 }
 0x514   : > { %11585 = vmatprep.subr.bf16.mxu1 %v13903_v57 }
 0x516   : > { %6692 = vmatpush1.bf16.msra.mxu0 %v13169_v58 }
 0x517   : > { %6693 = vmatprep.subr.bf16.mxu0 %v13174_v32 }
 0x519   : > { %11582 = vmatmul.mubr.msk.bf16.vlgmr.msra.gmra.mrb[36].mxu1 %vm6784_vm1, %v14319_v59  ;;  %v13181_v59 = vld [vmem:[#allocation8 + $0x1a20] ss:$72 sps:$4 sm:$0xff]  }
 0x51a   : > { %6694 = vmatpush1.bf16.msra.mxu0 %v13172_v36  ;;  %11586 = vmatpush3.bf16.xpose.msra.mxu1 %v7019_v39 }
 0x51b   : > { %6695 = vmatprep.subr.bf16.mxu0 %v13177_v22  ;;  %11587 = vmatprep.mubr.msk.bf16.mxu1 %vm13904_vm0, %v13903_v57 }
 0x51c   : > { %11591 = vmatprep.subr.bf16.mxu1 %v13903_v57 }
 0x51e   : > { %6696 = vmatpush1.bf16.msra.mxu0 %v13175_v54 }
 0x51f   : > { %6697 = vmatprep.subr.bf16.mxu0 %v13180_v60 }
 0x521   : > { %11588 = vmatmul.mubr.msk.bf16.vlgmr.msra.gmra.mrb[40].mxu1 %vm6784_vm1, %v6738_v43 }
 0x522   : > { %6698 = vmatpush1.bf16.msra.mxu0 %v13178_v41  ;;  %11592 = vmatpush3.bf16.xpose.msra.mxu1 %v7065_v44 }
 0x523   : > { %6699 = vmatprep.subr.bf16.mxu0 %v13183_v42  ;;  %11593 = vmatprep.mubr.msk.bf16.mxu1 %vm13904_vm0, %v13903_v57 }
 0x524   : > { %11597 = vmatprep.subr.bf16.mxu1 %v13903_v57 }
 0x526   : > { %6700 = vmatpush1.bf16.msra.mxu0 %v13181_v59 }
 0x527   : > { %6701 = vmatprep.subr.bf16.mxu0 %v13186_v45 }
 0x529   : > { %11594 = vmatmul.mubr.msk.bf16.vlgmr.msra.gmra.mrb[44].mxu1 %vm6784_vm1, %v14329_v10 }
 0x52a   : > { %6702 = vmatpush1.bf16.msra.mxu0 %v13184_v46  ;;  %11598 = vmatpush3.bf16.xpose.msra.mxu1 %v7111_v47 }
 0x52b   : > { %11599 = vmatprep.mubr.msk.bf16.mxu1 %vm13904_vm0, %v13903_v57  ;;  %11603 = vmatprep.subr.bf16.mxu1 %v13903_v57 }
 0x52d   : > { %6704 = vmatmul.mubr.bf16.vlgmr.msra.gmra.mrb[16].mxu0 %v14221_v33 }
 0x531   : > { %11600 = vmatmul.mubr.msk.bf16.vlgmr.msra.gmra.mrb[48].mxu1 %vm6784_vm1, %v6741_v3 }
 0x532   : > { %11604 = vmatpush3.bf16.xpose.msra.mxu1 %v7157_v48  ;;  %11605 = vmatprep.mubr.msk.bf16.mxu1 %vm13904_vm0, %v13903_v57 }
 0x533   : > { %11609 = vmatprep.subr.bf16.mxu1 %v13903_v57 }
 0x539   : > { %11606 = vmatmul.mubr.msk.bf16.vlgmr.msra.gmra.mrb[52].mxu1 %vm6784_vm1, %v14291_v37 }
 0x53a   : > { %11611 = vmatprep.mubr.msk.bf16.mxu1 %vm13904_vm0, %v13903_v57 }
 0x540   : > { %v6459_v10 = vpop.f32.mrb[12].mxu0 }
 0x541   : > { %v14407_v33 = vpop.f32.mrb[13].mxu0  ;;  %v14423_v63 = vpack.c.bf16 %v6459_v10, %v6459_v10 }
 0x542   : > { %v6463_v49 = vpop.f32.mrb[14].mxu0 }
 0x543   : > { %v6464_v50 = vpop.f32.mrb[15].mxu0  ;;  %v7487_v0 = vsel %vm7485_vm2, %v14423_v63, 0 }
 0x575   : > { %v6762_v51 = vpop.permute.xlu1 %6761 }
 0x576   : > { %v7203_v52 = vsel %vm6784_vm1, %v6762_v51, 0 }
 0x577   : > { %11610 = vmatpush3.bf16.xpose.msra.mxu1 %v7203_v52 }
 0x578   : > { %11615 = vmatprep.subr.bf16.mxu1 %v13903_v57 }
 0x579   : > { %v6765_v37 = vpop.permute.xlu1 %6764 }
 0x57a   : > { %v7295_v61 = vsel %vm6784_vm1, %v6765_v37, 0 }
 0x57e   : > { %11612 = vmatmul.mubr.msk.bf16.vlgmr.msra.gmra.mrb[56].mxu1 %vm6784_vm1, %v6744_v2 }
 0x57f   : > { %11616 = vmatpush3.bf16.xpose.msra.mxu1 %v7249_v55  ;;  %11617 = vmatprep.mubr.msk.bf16.mxu1 %vm13904_vm0, %v13903_v57 }
 0x580   : > { %11621 = vmatprep.subr.bf16.mxu1 %v13903_v57 }
 0x586   : > { %11618 = vmatmul.mubr.msk.bf16.vlgmr.msra.gmra.mrb[60].mxu1 %vm6784_vm1, %v14303_v53 }
 0x587   : > { %11622 = vmatpush3.bf16.xpose.msra.mxu1 %v7295_v61  ;;  %11623 = vmatprep.mubr.msk.bf16.mxu1 %vm13904_vm0, %v13903_v57 }
 0x588   : > { %11627 = vmatprep.subr.bf16.mxu1 %v13903_v57 }
 0x58e   : > { %11624 = vmatmul.mubr.msk.bf16.vlgmr.msra.gmra.mrb[64].mxu1 %vm6784_vm1, %v6747_v6 }
 0x58f   : > { %11628 = vmatpush3.bf16.msra.mxu1 %v7487_v0  ;;  %11629 = vmatprep.mubr.msk.bf16.mxu1 %vm13904_vm0, %v13903_v57 }
 0x590   : > { %11633 = vmatprep.subr.bf16.mxu1 %v13903_v57 }
 0x5bf   : > { %v14431_v53 = vpop.f32.mrb[16].mxu1 }
 0x5c0   : > { %v14433_v1 = vpop.f32.mrb[17].mxu1 }
 0x5c1   : > { %v6586_v4 = vpop.f32.mrb[18].mxu1 }
 0x5c2   : > { %v6587_v23 = vpop.f32.mrb[19].mxu1 }
 0x5cc   : > { %v14435_v7 = vpop.f32.mrb[20].mxu1 }
 0x5cd   : > { %v11559_v38 = vpop.f32.mrb[21].mxu1  ;;  %v7338_v28 = vsel %vm7337_vm3, %v14435_v7, -inf }
 0x5ce   : > { %7339 = vmax.xlane.f32.xlu1 %v7338_v28  ;;  %v6828_v26 = vpop.f32.mrb[22].mxu1 }
 0x5cf   : > { %v11560_v9 = vpop.f32.mrb[23].mxu1 }
 0x5d4   : > { %v14439_v11 = vpop.f32.mrb[24].mxu1 }
 0x5d5   : > { %v11565_v12 = vpop.f32.mrb[25].mxu1  ;;  %v7341_v13 = vsel %vm7337_vm3, %v14439_v11, -inf }
 0x5d6   : > { %7342 = vmax.xlane.f32.xlu0 %v7341_v13  ;;  %v6874_v14 = vpop.f32.mrb[26].mxu1 }
 0x5d7   : > { %v11566_v15 = vpop.f32.mrb[27].mxu1 }
 0x5dc   : > { %v14443_v16 = vpop.f32.mrb[28].mxu1 }
 0x5dd   : > { %v11571_v35 = vpop.f32.mrb[29].mxu1  ;;  %v7344_v17 = vsel %vm7337_vm3, %v14443_v16, -inf }
 0x5de   : > { %7345 = vmax.xlane.f32.xlu0 %v7344_v17  ;;  %v6920_v40 = vpop.f32.mrb[30].mxu1 }
 0x5df   : > { %v11572_v18 = vpop.f32.mrb[31].mxu1 }
 0x5e4   : > { %v14447_v19 = vpop.f32.mrb[32].mxu1 }
 0x5e5   : > { %v11577_v20 = vpop.f32.mrb[33].mxu1  ;;  %v7347_v5 = vsel %vm7337_vm3, %v14447_v19, -inf }
 0x5e6   : > { %7348 = vmax.xlane.f32.xlu1 %v7347_v5  ;;  %v6966_v21 = vpop.f32.mrb[34].mxu1 }
 0x5e7   : > { %v11578_v56 = vpop.f32.mrb[35].mxu1 }
 0x5ec   : > { %v14451_v24 = vpop.f32.mrb[36].mxu1 }
 0x5ed   : > { %v11583_v25 = vpop.f32.mrb[37].mxu1  ;;  %v7350_v27 = vsel %vm7337_vm3, %v14451_v24, -inf }
 0x5ee   : > { %7351 = vmax.xlane.f32.xlu0 %v7350_v27  ;;  %v7012_v29 = vpop.f32.mrb[38].mxu1 }
 0x5ef   : > { %v11584_v30 = vpop.f32.mrb[39].mxu1 }
 0x5f0   : > { %v14507_v30 = vpack.c.bf16 %v14407_v33, %v14407_v33 }
 0x5f4   : > { %v14455_v31 = vpop.f32.mrb[40].mxu1 }
 0x5f5   : > { %v11589_v8 = vpop.f32.mrb[41].mxu1  ;;  %v7353_v58 = vsel %vm7337_vm3, %v14455_v31, -inf }
 0x5f6   : > { %7354 = vmax.xlane.f32.xlu1 %v7353_v58  ;;  %v7058_v32 = vpop.f32.mrb[42].mxu1 }
 0x5f7   : > { %v11590_v34 = vpop.f32.mrb[43].mxu1 }
 0x5fc   : > { %v14459_v36 = vpop.f32.mrb[44].mxu1 }
 0x5fd   : > { %v11595_v22 = vpop.f32.mrb[45].mxu1  ;;  %v7356_v39 = vsel %vm7337_vm3, %v14459_v36, -inf }
 0x5fe   : > { %7357 = vmax.xlane.f32.xlu0 %v7356_v39  ;;  %v7104_v54 = vpop.f32.mrb[46].mxu1 }
 0x5ff   : > { %v11596_v60 = vpop.f32.mrb[47].mxu1 }
 0x600   : > { %v14463_v41 = vpop.f32.mrb[16].mxu0 }
 0x601   : > { %v14465_v42 = vpop.f32.mrb[17].mxu0 }
 0x602   : > { %v6709_v43 = vpop.f32.mrb[18].mxu0 }
 0x603   : > { %v6710_v44 = vpop.f32.mrb[19].mxu0 }
 0x604   : > { %v14467_v59 = vpop.f32.mrb[48].mxu1 }
 0x605   : > { %v11601_v45 = vpop.f32.mrb[49].mxu1  ;;  %v7359_v62 = vsel %vm7337_vm3, %v14467_v59, -inf }
 0x606   : > { %7360 = vmax.xlane.f32.xlu1 %v7359_v62  ;;  %v7150_v46 = vpop.f32.mrb[50].mxu1 }
 0x607   : > { %v11602_v47 = vpop.f32.mrb[51].mxu1 }
 0x60c   : > { %v14471_v3 = vpop.f32.mrb[52].mxu1 }
 0x60d   : > { %v11607_v48 = vpop.f32.mrb[53].mxu1  ;;  %v7362_v56 = vsel %vm7337_vm3, %v14471_v3, -inf }
 0x60e   : > { %v7196_v10 = vpop.f32.mrb[54].mxu1 }
 0x60f   : > { %v11608_v49 = vpop.f32.mrb[55].mxu1 }
 0x610   : > { %v14537_v49 = vpack.c.bf16 %v14433_v1, %v14433_v1 }
 0x651   : > { %v14473_v50 = vpop.f32.mrb[56].mxu1 }
 0x652   : > { %v11613_v51 = vpop.f32.mrb[57].mxu1  ;;  %v7365_v27 = vsel %vm7337_vm3, %v14473_v50, -inf }
 0x653   : > { %v7242_v52 = vpop.f32.mrb[58].mxu1  ;;  %v6726_v51 = vpack.c.bf16 %v14431_v53, %v14431_v53 }
 0x654   : > { %v11614_v2 = vpop.f32.mrb[59].mxu1 }
 0x659   : > { %v14475_v55 = vpop.f32.mrb[60].mxu1 }
 0x65a   : > { %v11619_v37 = vpop.f32.mrb[61].mxu1 }
 0x65b   : > { %v7288_v61 = vpop.f32.mrb[62].mxu1  ;;  %v7340_v6 = vpop.xlane.xlu1 %7339 }
 0x65c   : > { %v7374_v0 = vsub.f32 %v14435_v7, %v7340_v6  ;;  %v11620_v4 = vpop.f32.mrb[63].mxu1 }
 0x65e   : > { %v7386_v23 = vmul.f32 1.442695, %v7374_v0 }
 0x660   : > { %13621 = vpow2.f32 %v7386_v23 }
 0x661   : > { %v14478_v38 = vpop.f32.mrb[64].mxu1 }
 0x662   : > { %v11625_v28 = vpop.f32.mrb[65].mxu1  ;;  %v7371_v46 = vsel %vm7337_vm3, %v14478_v38, -inf }
 0x663   : > { %v7334_v26 = vpop.f32.mrb[66].mxu1  ;;  %v7343_v9 = vpop.xlane.xlu0 %7342 }
 0x664   : > { %v7375_v12 = vsub.f32 %v14439_v11, %v7343_v9  ;;  %v11626_v13 = vpop.f32.mrb[67].mxu1 }
 0x666   : > { %v7388_v14 = vmul.f32 1.442695, %v7375_v12 }
 0x668   : > { %13623 = vpow2.f32 %v7388_v14 }
 0x66a   : > { %v14481_v15 = vpop.eup %13621 }
 0x66b   : > { %v7346_v35 = vpop.xlane.xlu0 %7345  ;;  %v7410_v17 = vsel %vm7337_vm3, %v14481_v15, 0.0 }
 0x66c   : > { %v7376_v7 = vsub.f32 %v14443_v16, %v7346_v35  ;;  %7411 = vadd.xlane.f32.xlu0 %v7410_v17 }
 0x66e   : > { %v7390_v40 = vmul.f32 1.442695, %v7376_v7 }
 0x670   : > { %13625 = vpow2.f32 %v7390_v40 }
 0x672   : > { %v14486_v18 = vpop.eup %13623 }
 0x673   : > { %v7349_v20 = vpop.xlane.xlu1 %7348  ;;  %v7413_v11 = vsel %vm7337_vm3, %v14486_v18, 0.0 }
 0x674   : > { %v7377_v5 = vsub.f32 %v14447_v19, %v7349_v20  ;;  %7414 = vadd.xlane.f32.xlu1 %v7413_v11 }
 0x676   : > { %v7392_v21 = vmul.f32 1.442695, %v7377_v5 }
 0x678   : > { %13627 = vpow2.f32 %v7392_v21  ;;  %7363 = vmax.xlane.f32.xlu1 %v7362_v56 }
 0x67a   : > { %v14493_v25 = vpop.eup %13625 }
 0x67b   : > { %v7416_v16 = vsel %vm7337_vm3, %v14493_v25, 0.0  ;;  %v7352_v8 = vpop.xlane.xlu0 %7351 }
 0x67c   : > { %7417 = vadd.xlane.f32.xlu0 %v7416_v16  ;;  %7366 = vmax.xlane.f32.xlu1 %v7365_v27  ;;  %v7378_v58 = vsub.f32 %v14451_v24, %v7352_v8  ;;  %v7368_v24 = vsel %vm7337_vm3, %v14475_v55, -inf  ;;  %v7671_v27 = vsel %vm7485_vm2, %v6726_v51, 0 }
 0x67e   : > { %v7394_v34 = vmul.f32 1.442695, %v7378_v58 }
 0x680   : > { %13629 = vpow2.f32 %v7394_v34 }
 0x682   : > { %v14499_v29 = vpop.eup %13627 }
 0x683   : > { %v7419_v19 = vsel %vm7337_vm3, %v14499_v29, 0.0  ;;  %v7355_v32 = vpop.xlane.xlu1 %7354 }
 0x684   : > { %7420 = vadd.xlane.f32.xlu1 %v7419_v19  ;;  %v7379_v22 = vsub.f32 %v14455_v31, %v7355_v32 }
 0x68a   : > { %v14517_v45 = vpop.eup %13629 }
 0x68b   : > { %v7358_v39 = vpop.xlane.xlu0 %7357  ;;  %v7422_v31 = vsel %vm7337_vm3, %v14517_v45, 0.0 }
 0x68c   : > { %v7380_v60 = vsub.f32 %v14459_v36, %v7358_v39 }
 0x68e   : > { %v7398_v33 = vmul.f32 1.442695, %v7380_v60 }
 0x692   : > { %6767 = vrot.lane.b32.xlu0 %v14423_v63, %s13902_s25  ;;  %v7396_v63 = vmul.f32 1.442695, %v7379_v22 }
 0x693   : > { %v7361_v54 = vpop.xlane.xlu1 %7360 }
 0x694   : > { %v7381_v43 = vsub.f32 %v14467_v59, %v7361_v54  ;;  %13631 = vpow2.f32 %v7396_v63 }
 0x695   : > { %6770 = vrot.lane.b32.xlu1 %v14507_v30, %s13902_s25  ;;  %13633 = vpow2.f32 %v7398_v33 }
 0x696   : > { %v7400_v44 = vmul.f32 1.442695, %v7381_v43 }
 0x698   : > { %13635 = vpow2.f32 %v7400_v44 }
 0x69e   : > { %v14521_v62 = vpop.eup %13631 }
 0x69f   : > { %v14523_v36 = vpop.eup %13633  ;;  %v7425_v59 = vsel %vm7337_vm3, %v14521_v62, 0.0 }
 0x6a0   : > { %v7428_v48 = vsel %vm7337_vm3, %v14523_v36, 0.0 }
 0x6a2   : > { %v14529_v47 = vpop.eup %13635 }
 0x6a3   : > { %v7431_v10 = vsel %vm7337_vm3, %v14529_v47, 0.0 }
 0x6b1   : > { %7369 = vmax.xlane.f32.xlu0 %v7368_v24 }
 0x6b5   : > { %7423 = vadd.xlane.f32.xlu0 %v7422_v31 }
 0x6b9   : > { %7426 = vadd.xlane.f32.xlu0 %v7425_v59  ;;  %7372 = vmax.xlane.f32.xlu1 %v7371_v46 }
 0x6bd   : > { %7429 = vadd.xlane.f32.xlu0 %v7428_v48  ;;  %7432 = vadd.xlane.f32.xlu1 %v7431_v10  ;;  %v7763_v10 = vsel %vm7485_vm2, %v14537_v49, 0 }
 0x6ce   : > { %6776 = vrot.lane.b32.xlu1 %v14537_v49, %s13902_s25 }
 0x6d3   : > { %6773 = vrot.lane.b32.xlu0 %v6726_v51, %s13902_s25 }
 0x6f9   : > { %v7412_v52 = vpop.xlane.xlu0 %7411 }
 0x6fa   : > { %13637 = vrcp.f32 %v7412_v52 }
 0x701   : > { %v7415_v2 = vpop.xlane.xlu1 %7414 }
 0x702   : > { %13639 = vrcp.f32 %v7415_v2 }
 0x704   : > { %v13638_v37 = vpop.eup %13637 }
 0x705   : > { %v7458_v61 = vmul.f32 %v13638_v37, %v14481_v15  ;;  %v7364_v6 = vpop.xlane.xlu1 %7363  ;;  %v6728_v37 = vpack.c.bf16 %v14463_v41, %v14463_v41 }
 0x706   : > { %v7382_v0 = vsub.f32 %v14471_v3, %v7364_v6 }
 0x707   : > { %v7470_v1 = vpack.c.bf16 %v7458_v61, %v7458_v61  ;;  %v7855_v6 = vsel %vm7485_vm2, %v6728_v37, 0 }
 0x708   : > { %v7402_v4 = vmul.f32 1.442695, %v7382_v0  ;;  %v13189_v0 = vld [vmem:[#allocation10 + $0x4] ss:$24 sps:$4 sm:$0xff]  }
 0x709   : > { %11630 = vmatmul.mubr.msk.bf16.vlgmr.msra.gmra.mrb[68].mxu1 %vm7337_vm3, %v7470_v1  ;;  %v7418_v23 = vpop.xlane.xlu0 %7417  ;;  %v7367_v28 = vpop.xlane.xlu1 %7366  ;;  %9817 = vmatprep.subr.bf16.mxu0 %v13189_v0 }
 0x70a   : > { %13641 = vpow2.f32 %v7402_v4  ;;  %v7383_v53 = vsub.f32 %v14473_v50, %v7367_v28  ;;  %11635 = vmatprep.mubr.msk.bf16.mxu1 %vm13904_vm0, %v13903_v57  ;;  %v7579_v50 = vsel %vm7485_vm2, %v14507_v30, 0  ;;  %v13193_v28 = vld [vmem:[#allocation10 + $0x30] ss:$24 sps:$4 sm:$0xff]  }
 0x70b   : > { %13643 = vrcp.f32 %v7418_v23 }
 0x70c   : > { %v13640_v26 = vpop.eup %13639  ;;  %v7404_v9 = vmul.f32 1.442695, %v7383_v53  ;;  %v13195_v53 = vld [vmem:[#allocation10 + $0x34] ss:$24 sps:$4 sm:$0xff]  }
 0x70d   : > { %v7459_v12 = vmul.f32 %v13640_v26, %v14486_v18  ;;  %v6768_v13 = vpop.permute.xlu0 %6767  ;;  %v13201_v26 = vld [vmem:[#allocation10 + $0x64] ss:$24 sps:$4 sm:$0xff]  }
 0x70e   : > { %13645 = vpow2.f32 %v7404_v9  ;;  %v7533_v3 = vsel %vm7485_vm2, %v6768_v13, 0  ;;  %v13199_v9 = vld [vmem:[#allocation10 + $0x60] ss:$24 sps:$4 sm:$0xff]   ;;  %v13207_v13 = vld [vmem:[#allocation10 + $0x94] ss:$24 sps:$4 sm:$0xff]  }
 0x70f   : > { %11634 = vmatpush3.bf16.msra.mxu1 %v7533_v3  ;;  %v7471_v14 = vpack.c.bf16 %v7459_v12, %v7459_v12  ;;  %v13205_v12 = vld [vmem:[#allocation10 + $0x90] ss:$24 sps:$4 sm:$0xff]   ;;  %v13213_v3 = vld [vmem:[#allocation10 + $0xc4] ss:$24 sps:$4 sm:$0xff]  }
 0x710   : > { %11639 = vmatprep.subr.bf16.mxu1 %v13903_v57 }
 0x711   : > { %v7421_v15 = vpop.xlane.xlu1 %7420 }
 0x712   : > { %13647 = vrcp.f32 %v7421_v15  ;;  %11636 = vmatmul.mubr.msk.bf16.vlgmr.msra.gmra.mrb[72].mxu1 %vm7337_vm3, %v7471_v14  ;;  %v13211_v14 = vld [vmem:[#allocation10 + $0xc0] ss:$24 sps:$4 sm:$0xff]   ;;  %v13217_v15 = vld [vmem:[#allocation10 + $0xf0] ss:$24 sps:$4 sm:$0xff]  }
 0x713   : > { %11640 = vmatpush3.bf16.msra.mxu1 %v7579_v50  ;;  %11641 = vmatprep.mubr.msk.bf16.mxu1 %vm13904_vm0, %v13903_v57  ;;  %v13219_v50 = vld [vmem:[#allocation10 + $0xf4] ss:$24 sps:$4 sm:$0xff]  }
 0x714   : > { %v14558_v35 = vpop.eup %13641  ;;  %11645 = vmatprep.subr.bf16.mxu1 %v13903_v57 }
 0x715   : > { %v13644_v17 = vpop.eup %13643  ;;  %v7434_v7 = vsel %vm7337_vm3, %v14558_v35, 0.0  ;;  %v6771_v18 = vpop.permute.xlu1 %6770 }
 0x716   : > { %v7460_v40 = vmul.f32 %v13644_v17, %v14493_v25  ;;  %7435 = vadd.xlane.f32.xlu1 %v7434_v7  ;;  %v7625_v21 = vsel %vm7485_vm2, %v6771_v18, 0  ;;  %v13223_v17 = vld [vmem:[#allocation10 + $0x120] ss:$24 sps:$4 sm:$0xff]   ;;  %v13231_v7 = vld [vmem:[#allocation10 + $0x154] ss:$24 sps:$4 sm:$0xff]  }
 0x717   : > { %v13237_v18 = vld [vmem:[#allocation10 + $0x184] ss:$24 sps:$4 sm:$0xff]  }
 0x718   : > { %v14564_v20 = vpop.eup %13645  ;;  %v7472_v11 = vpack.c.bf16 %v7460_v40, %v7460_v40  ;;  %v13229_v40 = vld [vmem:[#allocation10 + $0x150] ss:$24 sps:$4 sm:$0xff]  }
 0x719   : > { %v7437_v5 = vsel %vm7337_vm3, %v14564_v20, 0.0 }
 0x71a   : > { %11642 = vmatmul.mubr.msk.bf16.vlgmr.msra.gmra.mrb[76].mxu1 %vm7337_vm3, %v7472_v11  ;;  %7438 = vadd.xlane.f32.xlu0 %v7437_v5  ;;  %v13235_v11 = vld [vmem:[#allocation10 + $0x180] ss:$24 sps:$4 sm:$0xff]   ;;  %v13243_v5 = vld [vmem:[#allocation10 + $0x1b4] ss:$24 sps:$4 sm:$0xff]  }
 0x71b   : > { %11646 = vmatpush3.bf16.msra.mxu1 %v7625_v21  ;;  %11647 = vmatprep.mubr.msk.bf16.mxu1 %vm13904_vm0, %v13903_v57 }
 0x71c   : > { %v13648_v56 = vpop.eup %13647  ;;  %11651 = vmatprep.subr.bf16.mxu1 %v13903_v57 }
 0x71d   : > { %v7461_v25 = vmul.f32 %v13648_v56, %v14499_v29  ;;  %v13241_v56 = vld [vmem:[#allocation10 + $0x1b0] ss:$24 sps:$4 sm:$0xff]  }
 0x71f   : > { %v7473_v16 = vpack.c.bf16 %v7461_v25, %v7461_v25  ;;  %v13249_v25 = vld [vmem:[#allocation10 + $0x1e4] ss:$24 sps:$4 sm:$0xff]  }
 0x722   : > { %11648 = vmatmul.mubr.msk.bf16.vlgmr.msra.gmra.mrb[80].mxu1 %vm7337_vm3, %v7473_v16  ;;  %v13247_v16 = vld [vmem:[#allocation10 + $0x1e0] ss:$24 sps:$4 sm:$0xff]  }
 0x723   : > { %11652 = vmatpush3.bf16.msra.mxu1 %v7671_v27  ;;  %11653 = vmatprep.mubr.msk.bf16.mxu1 %vm13904_vm0, %v13903_v57  ;;  %v13255_v27 = vld [vmem:[#allocation10 + $0x214] ss:$24 sps:$4 sm:$0xff]  }
 0x724   : > { %11657 = vmatprep.subr.bf16.mxu1 %v13903_v57 }
 0x73e   : > { %v7370_v19 = vpop.xlane.xlu0 %7369 }
 0x73f   : > { %v7384_v30 = vsub.f32 %v14475_v55, %v7370_v19  ;;  %v13253_v19 = vld [vmem:[#allocation10 + $0x210] ss:$24 sps:$4 sm:$0xff]  }
 0x741   : > { %v7406_v8 = vmul.f32 1.442695, %v7384_v30  ;;  %v13261_v30 = vld [vmem:[#allocation10 + $0x244] ss:$24 sps:$4 sm:$0xff]  }
 0x742   : > { %v7424_v58 = vpop.xlane.xlu0 %7423 }
 0x743   : > { %13649 = vpow2.f32 %v7406_v8 }
 0x744   : > { %13651 = vrcp.f32 %v7424_v58 }
 0x746   : > { %v7427_v32 = vpop.xlane.xlu0 %7426  ;;  %v7373_v29 = vpop.xlane.xlu1 %7372 }
 0x747   : > { %v7385_v34 = vsub.f32 %v14478_v38, %v7373_v29  ;;  %13653 = vrcp.f32 %v7427_v32  ;;  %v13259_v29 = vld [vmem:[#allocation10 + $0x240] ss:$24 sps:$4 sm:$0xff]  }
 0x749   : > { %v7408_v22 = vmul.f32 1.442695, %v7385_v34 }
 0x74a   : > { %v7430_v39 = vpop.xlane.xlu0 %7429  ;;  %v7433_v59 = vpop.xlane.xlu1 %7432 }
 0x74b   : > { %13655 = vpow2.f32 %v7408_v22  ;;  %v13267_v22 = vld [vmem:[#allocation10 + $0x274] ss:$24 sps:$4 sm:$0xff]  }
 0x74c   : > { %13657 = vrcp.f32 %v7430_v39 }
 0x74d   : > { %v14581_v54 = vpop.eup %13649  ;;  %13659 = vrcp.f32 %v7433_v59  ;;  %v13271_v59 = vld [vmem:[#allocation10 + $0x2a0] ss:$24 sps:$4 sm:$0xff]  }
 0x74e   : > { %v13652_v60 = vpop.eup %13651  ;;  %v7440_v63 = vsel %vm7337_vm3, %v14581_v54, 0.0  ;;  %v6774_v43 = vpop.permute.xlu0 %6773 }
 0x74f   : > { %v7462_v55 = vmul.f32 %v13652_v60, %v14517_v45  ;;  %7441 = vadd.xlane.f32.xlu0 %v7440_v63  ;;  %v7717_v24 = vsel %vm7485_vm2, %v6774_v43, 0  ;;  %v6777_v51 = vpop.permute.xlu1 %6776  ;;  %v13265_v43 = vld [vmem:[#allocation10 + $0x270] ss:$24 sps:$4 sm:$0xff]  }
 0x750   : > { %v7809_v61 = vsel %vm7485_vm2, %v6777_v51, 0 }
 0x751   : > { %v7474_v33 = vpack.c.bf16 %v7462_v55, %v7462_v55  ;;  %v13654_v44 = vpop.eup %13653 }
 0x752   : > { %v7463_v31 = vmul.f32 %v13654_v44, %v14521_v62  ;;  %v13273_v44 = vld [vmem:[#allocation10 + $0x2a4] ss:$24 sps:$4 sm:$0xff]  }
 0x753   : > { %11654 = vmatmul.mubr.msk.bf16.vlgmr.msra.gmra.mrb[84].mxu1 %vm7337_vm3, %v7474_v33 }
 0x754   : > { %11658 = vmatpush3.bf16.msra.mxu1 %v7717_v24  ;;  %11659 = vmatprep.mubr.msk.bf16.mxu1 %vm13904_vm0, %v13903_v57  ;;  %v7475_v46 = vpack.c.bf16 %v7463_v31, %v7463_v31 }
 0x755   : > { %v14590_v38 = vpop.eup %13655  ;;  %11663 = vmatprep.subr.bf16.mxu1 %v13903_v57 }
 0x756   : > { %v7443_v45 = vsel %vm7337_vm3, %v14590_v38, 0.0  ;;  %v13658_v48 = vpop.eup %13657 }
 0x757   : > { %7444 = vadd.xlane.f32.xlu1 %v7443_v45  ;;  %v7464_v62 = vmul.f32 %v13658_v48, %v14523_v36  ;;  %v13660_v2 = vpop.eup %13659  ;;  %v14614_v36 = vpack.c.bf16 %v14465_v42, %v14465_v42  ;;  %v13187_v42 = vld [vmem:[#allocation10] ss:$24 sps:$4 sm:$0xff]  }
 0x758   : > { %v7465_v49 = vmul.f32 %v13660_v2, %v14529_v47  ;;  %9818 = vmatpush1.bf16.msra.mxu0 %v13187_v42 }
 0x759   : > { %v7476_v52 = vpack.c.bf16 %v7464_v62, %v7464_v62  ;;  %9819 = vmatprep.subr.bf16.mxu0 %v13195_v53  ;;  %v7947_v45 = vsel %vm7485_vm2, %v14614_v36, 0  ;;  %v13198_v53 = vld [vmem:[#allocation10 + $0x3c] ss:$24 sps:$4 sm:$0xff]  }
 0x75a   : > { %v7477_v41 = vpack.c.bf16 %v7465_v49, %v7465_v49 }
 0x75b   : > { %11660 = vmatmul.mubr.msk.bf16.vlgmr.msra.gmra.mrb[88].mxu1 %vm7337_vm3, %v7475_v46  ;;  %v13279_v46 = vld [vmem:[#allocation10 + $0x2d4] ss:$24 sps:$4 sm:$0xff]  }
 0x75c   : > { %11664 = vmatpush3.bf16.msra.mxu1 %v7763_v10  ;;  %11665 = vmatprep.mubr.msk.bf16.mxu1 %vm13904_vm0, %v13903_v57 }
 0x75d   : > { %11669 = vmatprep.subr.bf16.mxu1 %v13903_v57  ;;  %9820 = vmatpush1.bf16.msra.mxu0 %v13193_v28  ;;  %v13190_v28 = vld [vmem:[#allocation10 + $0x8] ss:$24 sps:$4 sm:$0xff]  }
 0x75e   : > { %9821 = vmatprep.subr.bf16.mxu0 %v13201_v26 }
 0x761   : > { %9822 = vmatpush1.bf16.msra.mxu0 %v13199_v9 }
 0x762   : > { %9823 = vmatprep.subr.bf16.mxu0 %v13207_v13  ;;  %v13196_v13 = vld [vmem:[#allocation10 + $0x38] ss:$24 sps:$4 sm:$0xff]  }
 0x763   : > { %11666 = vmatmul.mubr.msk.bf16.vlgmr.msra.gmra.mrb[92].mxu1 %vm7337_vm3, %v7476_v52 }
 0x764   : > { %11670 = vmatpush3.bf16.msra.mxu1 %v7809_v61  ;;  %11671 = vmatprep.mubr.msk.bf16.mxu1 %vm13904_vm0, %v13903_v57 }
 0x765   : > { %6779 = vrot.lane.b32.xlu0 %v6728_v37, %s13902_s25  ;;  %11675 = vmatprep.subr.bf16.mxu1 %v13903_v57  ;;  %v13277_v37 = vld [vmem:[#allocation10 + $0x2d0] ss:$24 sps:$4 sm:$0xff]  }
 0x766   : > { %9824 = vmatpush1.bf16.msra.mxu0 %v13205_v12 }
 0x767   : > { %9825 = vmatprep.subr.bf16.mxu0 %v13213_v3 }
 0x768   : > { %6782 = vrot.lane.b32.xlu1 %v14614_v36, %s13902_s25  ;;  %v13192_v36 = vld [vmem:[#allocation10 + $0xc] ss:$24 sps:$4 sm:$0xff]  }
 0x76a   : > { %9826 = vmatpush1.bf16.msra.mxu0 %v13211_v14 }
 0x76b   : > { %11672 = vmatmul.mubr.msk.bf16.vlgmr.msra.gmra.mrb[96].mxu1 %vm7337_vm3, %v7477_v41  ;;  %9827 = vmatprep.subr.bf16.mxu0 %v13219_v50  ;;  %v13208_v50 = vld [vmem:[#allocation10 + $0x98] ss:$24 sps:$4 sm:$0xff]  }
 0x76c   : > { %11676 = vmatpush3.bf16.msra.mxu1 %v7855_v6  ;;  %11677 = vmatprep.mubr.msk.bf16.mxu1 %vm13904_vm0, %v13903_v57 }
 0x76d   : > { %11681 = vmatprep.subr.bf16.mxu1 %v13903_v57 }
 0x76e   : > { %9828 = vmatpush1.bf16.msra.mxu0 %v13217_v15  ;;  %v13202_v15 = vld [vmem:[#allocation10 + $0x68] ss:$24 sps:$4 sm:$0xff]  }
 0x7a3   : > { %v7436_v47 = vpop.xlane.xlu1 %7435 }
 0x7a4   : > { %13661 = vrcp.f32 %v7436_v47  ;;  %v13285_v47 = vld [vmem:[#allocation10 + $0x304] ss:$24 sps:$4 sm:$0xff]  }
 0x7a7   : > { %v7439_v21 = vpop.xlane.xlu0 %7438 }
 0x7a8   : > { %13663 = vrcp.f32 %v7439_v21  ;;  %v13232_v21 = vld [vmem:[#allocation10 + $0x158] ss:$24 sps:$4 sm:$0xff]  }
 0x7ae   : > { %v13662_v1 = vpop.eup %13661 }
 0x7af   : > { %v7466_v4 = vmul.f32 %v13662_v1, %v14558_v35  ;;  %v13225_v35 = vld [vmem:[#allocation10 + $0x124] ss:$24 sps:$4 sm:$0xff]  }
 0x7b0   : > { %9829 = vmatprep.subr.bf16.mxu0 %v13225_v35  ;;  %v13216_v35 = vld [vmem:[#allocation10 + $0xcc] ss:$24 sps:$4 sm:$0xff]  }
 0x7b1   : > { %v7478_v23 = vpack.c.bf16 %v7466_v4, %v7466_v4  ;;  %9830 = vmatpush1.bf16.msra.mxu0 %v13223_v17  ;;  %v13214_v17 = vld [vmem:[#allocation10 + $0xc8] ss:$24 sps:$4 sm:$0xff]  }
 0x7b2   : > { %9831 = vmatprep.subr.bf16.mxu0 %v13231_v7  ;;  %v13664_v8 = vpop.eup %13663  ;;  %v13222_v7 = vld [vmem:[#allocation10 + $0xfc] ss:$24 sps:$4 sm:$0xff]  }
 0x7b3   : > { %11678 = vmatmul.mubr.msk.bf16.vlgmr.msra.gmra.mrb[100].mxu1 %vm7337_vm3, %v7478_v23  ;;  %v7467_v60 = vmul.f32 %v13664_v8, %v14564_v20  ;;  %v13258_v8 = vld [vmem:[#allocation10 + $0x21c] ss:$24 sps:$4 sm:$0xff]  }
 0x7b4   : > { %11683 = vmatprep.mubr.msk.bf16.mxu1 %vm13904_vm0, %v13903_v57 }
 0x7b5   : > { %9832 = vmatpush1.bf16.msra.mxu0 %v13229_v40  ;;  %v7479_v24 = vpack.c.bf16 %v7467_v60, %v7467_v60  ;;  %v13220_v40 = vld [vmem:[#allocation10 + $0xf8] ss:$24 sps:$4 sm:$0xff]  }
 0x7b6   : > { %9833 = vmatprep.subr.bf16.mxu0 %v13237_v18  ;;  %v13228_v18 = vld [vmem:[#allocation10 + $0x12c] ss:$24 sps:$4 sm:$0xff]   ;;  %v13268_v60 = vld [vmem:[#allocation10 + $0x278] ss:$24 sps:$4 sm:$0xff]  }
 0x7b9   : > { %9834 = vmatpush1.bf16.msra.mxu0 %v13235_v11  ;;  %v13226_v11 = vld [vmem:[#allocation10 + $0x128] ss:$24 sps:$4 sm:$0xff]  }
 0x7ba   : > { %9835 = vmatprep.subr.bf16.mxu0 %v13243_v5  ;;  %v13234_v5 = vld [vmem:[#allocation10 + $0x15c] ss:$24 sps:$4 sm:$0xff]  }
 0x7bd   : > { %9836 = vmatpush1.bf16.msra.mxu0 %v13241_v56  ;;  %v13240_v56 = vld [vmem:[#allocation10 + $0x18c] ss:$24 sps:$4 sm:$0xff]  }
 0x7be   : > { %9837 = vmatprep.subr.bf16.mxu0 %v13249_v25  ;;  %v13238_v25 = vld [vmem:[#allocation10 + $0x188] ss:$24 sps:$4 sm:$0xff]  }
 0x7c1   : > { %9838 = vmatpush1.bf16.msra.mxu0 %v13247_v16  ;;  %v13246_v16 = vld [vmem:[#allocation10 + $0x1bc] ss:$24 sps:$4 sm:$0xff]  }
 0x7c2   : > { %9839 = vmatprep.subr.bf16.mxu0 %v13255_v27  ;;  %v13244_v27 = vld [vmem:[#allocation10 + $0x1b8] ss:$24 sps:$4 sm:$0xff]  }
 0x7c5   : > { %9840 = vmatpush1.bf16.msra.mxu0 %v13253_v19  ;;  %v13252_v19 = vld [vmem:[#allocation10 + $0x1ec] ss:$24 sps:$4 sm:$0xff]  }
 0x7c6   : > { %9841 = vmatprep.subr.bf16.mxu0 %v13261_v30  ;;  %v13250_v30 = vld [vmem:[#allocation10 + $0x1e8] ss:$24 sps:$4 sm:$0xff]  }
 0x7c9   : > { %9842 = vmatpush1.bf16.msra.mxu0 %v13259_v29  ;;  %v13264_v29 = vld [vmem:[#allocation10 + $0x24c] ss:$24 sps:$4 sm:$0xff]  }
 0x7ca   : > { %9843 = vmatprep.subr.bf16.mxu0 %v13267_v22  ;;  %v13270_v22 = vld [vmem:[#allocation10 + $0x27c] ss:$24 sps:$4 sm:$0xff]  }
 0x7cd   : > { %9844 = vmatpush1.bf16.msra.mxu0 %v13265_v43 }
 0x7ce   : > { %9845 = vmatprep.subr.bf16.mxu0 %v13273_v44  ;;  %v13274_v44 = vld [vmem:[#allocation10 + $0x2a8] ss:$24 sps:$4 sm:$0xff]  }
 0x7d1   : > { %9846 = vmatpush1.bf16.msra.mxu0 %v13271_v59  ;;  %v13280_v59 = vld [vmem:[#allocation10 + $0x2d8] ss:$24 sps:$4 sm:$0xff]  }
 0x7d2   : > { %9847 = vmatprep.subr.bf16.mxu0 %v13279_v46  ;;  %v13288_v46 = vld [vmem:[#allocation10 + $0x30c] ss:$24 sps:$4 sm:$0xff]  }
 0x7d5   : > { %9848 = vmatpush1.bf16.msra.mxu0 %v13277_v37 }
 0x7d6   : > { %9858 = vmatprep.subr.bf16.mxu0 %v13285_v47 }
 0x7dc   : > { %v7442_v58 = vpop.xlane.xlu0 %7441  ;;  %v14627_v32 = vpop.f32.mrb[68].mxu1 }
 0x7dd   : > { %13665 = vrcp.f32 %v7442_v58  ;;  %v11631_v34 = vpop.f32.mrb[69].mxu1  ;;  %v13256_v58 = vld [vmem:[#allocation10 + $0x218] ss:$24 sps:$4 sm:$0xff]  }
 0x7de   : > { %v7526_v39 = vpop.f32.mrb[70].mxu1  ;;  %v13262_v34 = vld [vmem:[#allocation10 + $0x248] ss:$24 sps:$4 sm:$0xff]  }
 0x7df   : > { %v11632_v63 = vpop.f32.mrb[71].mxu1 }
 0x7e0   : > { %v6780_v55 = vpop.permute.xlu0 %6779 }
 0x7e1   : > { %v7901_v33 = vsel %vm7485_vm2, %v6780_v55, 0  ;;  %v13276_v55 = vld [vmem:[#allocation10 + $0x2ac] ss:$24 sps:$4 sm:$0xff]  }
 0x7e2   : > { %11682 = vmatpush3.bf16.msra.mxu1 %v7901_v33 }
 0x7e3   : > { %11687 = vmatprep.subr.bf16.mxu1 %v13903_v57 }
 0x7e4   : > { %v7445_v31 = vpop.xlane.xlu1 %7444 }
 0x7e5   : > { %13667 = vrcp.f32 %v7445_v31  ;;  %v7569_v20 = vpop.f32.mrb[72].mxu1  ;;  %11684 = vmatmul.mubr.msk.bf16.vlgmr.msra.gmra.mrb[104].mxu1 %vm7337_vm3, %v7479_v24  ;;  %v13282_v24 = vld [vmem:[#allocation10 + $0x2dc] ss:$24 sps:$4 sm:$0xff]  }
 0x7e6   : > { %v8036_v48 = vpack.c.bf16 %v7569_v20, %v7569_v20  ;;  %v11637_v10 = vpop.f32.mrb[73].mxu1  ;;  %11688 = vmatpush3.bf16.msra.mxu1 %v7947_v45  ;;  %11689 = vmatprep.mubr.msk.bf16.mxu1 %vm13904_vm0, %v13903_v57 }
 0x7e7   : > { %v13666_v62 = vpop.eup %13665  ;;  %v7572_v51 = vpop.f32.mrb[74].mxu1  ;;  %11693 = vmatprep.subr.bf16.mxu1 %v13903_v57 }
 0x7e8   : > { %v7468_v52 = vmul.f32 %v13666_v62, %v14581_v54  ;;  %8048 = vrot.lane.b32.xlu0 %v8036_v48, %s13902_s25  ;;  %v11638_v2 = vpop.f32.mrb[75].mxu1  ;;  %v6783_v61 = vpop.permute.xlu1 %6782 }
 0x7e9   : > { %v7993_v41 = vsel %vm7485_vm2, %v6783_v61, 0 }
 0x7ea   : > { %v7480_v49 = vpack.c.bf16 %v7468_v52, %v7468_v52 }
 0x7ed   : > { %v14641_v6 = vpop.f32.mrb[76].mxu1  ;;  %11690 = vmatmul.mubr.msk.bf16.vlgmr.msra.gmra.mrb[108].mxu1 %vm7337_vm3, %v7480_v49 }
 0x7ee   : > { %11694 = vmatpush3.bf16.msra.mxu1 %v7993_v41  ;;  %v11643_v0 = vpop.f32.mrb[77].mxu1  ;;  %11695 = vmatprep.mubr.msk.bf16.mxu1 %vm13904_vm0, %v13903_v57  ;;  %v13204_v57 = vld [vmem:[#allocation10 + $0x6c] ss:$24 sps:$4 sm:$0xff]   ;;  %v8037_v47 = vpack.c.bf16 %v14641_v6, %v14641_v6  ;;  %v13292_v6 = vld [vmem:[#allocation10 + $0x338] ss:$24 sps:$4 sm:$0xff]  }
 0x7ef   : > { %v13668_v54 = vpop.eup %13667  ;;  %v7618_v1 = vpop.f32.mrb[78].mxu1  ;;  %9940 = vmatprep.subr.bf16.mxu1 %v13192_v36 }
 0x7f0   : > { %v7469_v42 = vmul.f32 %v13668_v54, %v14590_v38  ;;  %v11644_v4 = vpop.f32.mrb[79].mxu1  ;;  %v13210_v38 = vld [vmem:[#allocation10 + $0x9c] ss:$24 sps:$4 sm:$0xff]   ;;  %v8035_v54 = vpack.c.bf16 %v14627_v32, %v14627_v32  ;;  %v13289_v32 = vld [vmem:[#allocation10 + $0x330] ss:$24 sps:$4 sm:$0xff]  }
 0x7f1   : > { %v13286_v4 = vld [vmem:[#allocation10 + $0x308] ss:$24 sps:$4 sm:$0xff]  }
 0x7f2   : > { %v7481_v23 = vpack.c.bf16 %v7469_v42, %v7469_v42  ;;  %v13283_v42 = vld [vmem:[#allocation10 + $0x300] ss:$24 sps:$4 sm:$0xff]  }
 0x7f5   : > { %v7661_v26 = vpop.f32.mrb[80].mxu1  ;;  %11696 = vmatmul.mubr.msk.bf16.vlgmr.msra.gmra.mrb[112].mxu1 %vm7337_vm3, %v7481_v23 }
 0x7f6   : > { %v8038_v9 = vpack.c.bf16 %v7661_v26, %v7661_v26  ;;  %v11649_v12 = vpop.f32.mrb[81].mxu1  ;;  %9941 = vmatpush1.bf16.msra.mxu1 %v13190_v28  ;;  %v13291_v28 = vld [vmem:[#allocation10 + $0x334] ss:$24 sps:$4 sm:$0xff]  }
 0x7f7   : > { %v7664_v3 = vpop.f32.mrb[82].mxu1  ;;  %9942 = vmatprep.subr.bf16.mxu1 %v13198_v53  ;;  %v13294_v53 = vld [vmem:[#allocation10 + $0x33c] ss:$24 sps:$4 sm:$0xff]   ;;  %v13300_v12 = vld [vmem:[#allocation10 + $0x36c] ss:$24 sps:$4 sm:$0xff]  }
 0x7f8   : > { %8051 = vrot.lane.b32.xlu1 %v8038_v9, %s13902_s25  ;;  %v11650_v14 = vpop.f32.mrb[83].mxu1  ;;  %v13297_v9 = vld [vmem:[#allocation10 + $0x364] ss:$24 sps:$4 sm:$0xff]   ;;  %v13298_v3 = vld [vmem:[#allocation10 + $0x368] ss:$24 sps:$4 sm:$0xff]  }
 0x7f9   : > { %v13306_v14 = vld [vmem:[#allocation10 + $0x39c] ss:$24 sps:$4 sm:$0xff]  }
 0x7fa   : > { %9943 = vmatpush1.bf16.msra.mxu1 %v13196_v13  ;;  %v13295_v13 = vld [vmem:[#allocation10 + $0x360] ss:$24 sps:$4 sm:$0xff]  }
 0x7fb   : > { %9944 = vmatprep.subr.bf16.mxu1 %v13204_v57  ;;  %v13303_v57 = vld [vmem:[#allocation10 + $0x394] ss:$24 sps:$4 sm:$0xff]  }
 0x7fe   : > { %9945 = vmatpush1.bf16.msra.mxu1 %v13202_v15  ;;  %v13301_v15 = vld [vmem:[#allocation10 + $0x390] ss:$24 sps:$4 sm:$0xff]  }
 0x7ff   : > { %9946 = vmatprep.subr.bf16.mxu1 %v13210_v38  ;;  %v13304_v38 = vld [vmem:[#allocation10 + $0x398] ss:$24 sps:$4 sm:$0xff]  }
 0x802   : > { %9947 = vmatpush1.bf16.msra.mxu1 %v13208_v50  ;;  %v13309_v50 = vld [vmem:[#allocation10 + $0x3c4] ss:$24 sps:$4 sm:$0xff]  }
 0x803   : > { %9948 = vmatprep.subr.bf16.mxu1 %v13216_v35  ;;  %v13312_v35 = vld [vmem:[#allocation10 + $0x3cc] ss:$24 sps:$4 sm:$0xff]  }
 0x806   : > { %9949 = vmatpush1.bf16.msra.mxu1 %v13214_v17  ;;  %v13307_v17 = vld [vmem:[#allocation10 + $0x3c0] ss:$24 sps:$4 sm:$0xff]  }
 0x807   : > { %9950 = vmatprep.subr.bf16.mxu1 %v13222_v7  ;;  %v13310_v7 = vld [vmem:[#allocation10 + $0x3c8] ss:$24 sps:$4 sm:$0xff]  }
 0x80a   : > { %9951 = vmatpush1.bf16.msra.mxu1 %v13220_v40  ;;  %v13315_v40 = vld [vmem:[#allocation10 + $0x3f4] ss:$24 sps:$4 sm:$0xff]  }
 0x80b   : > { %9952 = vmatprep.subr.bf16.mxu1 %v13228_v18  ;;  %v13318_v18 = vld [vmem:[#allocation10 + $0x3fc] ss:$24 sps:$4 sm:$0xff]  }
 0x80e   : > { %9953 = vmatpush1.bf16.msra.mxu1 %v13226_v11  ;;  %v13313_v11 = vld [vmem:[#allocation10 + $0x3f0] ss:$24 sps:$4 sm:$0xff]  }
 0x80f   : > { %9954 = vmatprep.subr.bf16.mxu1 %v13234_v5  ;;  %v13316_v5 = vld [vmem:[#allocation10 + $0x3f8] ss:$24 sps:$4 sm:$0xff]  }
 0x812   : > { %9955 = vmatpush1.bf16.msra.mxu1 %v13232_v21  ;;  %v13321_v21 = vld [vmem:[#allocation10 + $0x424] ss:$24 sps:$4 sm:$0xff]  }
 0x813   : > { %9956 = vmatprep.subr.bf16.mxu1 %v13240_v56  ;;  %v13324_v56 = vld [vmem:[#allocation10 + $0x42c] ss:$24 sps:$4 sm:$0xff]  }
 0x816   : > { %9957 = vmatpush1.bf16.msra.mxu1 %v13238_v25  ;;  %v13319_v25 = vld [vmem:[#allocation10 + $0x420] ss:$24 sps:$4 sm:$0xff]  }
 0x817   : > { %9958 = vmatprep.subr.bf16.mxu1 %v13246_v16  ;;  %v13322_v16 = vld [vmem:[#allocation10 + $0x428] ss:$24 sps:$4 sm:$0xff]  }
 0x81a   : > { %9959 = vmatpush1.bf16.msra.mxu1 %v13244_v27  ;;  %v13327_v27 = vld [vmem:[#allocation10 + $0x454] ss:$24 sps:$4 sm:$0xff]  }
 0x81b   : > { %9960 = vmatprep.subr.bf16.mxu1 %v13252_v19  ;;  %v13330_v19 = vld [vmem:[#allocation10 + $0x45c] ss:$24 sps:$4 sm:$0xff]  }
 0x81e   : > { %9961 = vmatpush1.bf16.msra.mxu1 %v13250_v30 }
 0x81f   : > { %9962 = vmatprep.subr.bf16.mxu1 %v13258_v8  ;;  %v13325_v8 = vld [vmem:[#allocation10 + $0x450] ss:$24 sps:$4 sm:$0xff]  }
 0x822   : > { %9963 = vmatpush1.bf16.msra.mxu1 %v13256_v58  ;;  %v13328_v58 = vld [vmem:[#allocation10 + $0x458] ss:$24 sps:$4 sm:$0xff]  }
 0x823   : > { %9964 = vmatprep.subr.bf16.mxu1 %v13264_v29 }
 0x826   : > { %v14649_v39 = vpop.f32.mrb[84].mxu1  ;;  %9965 = vmatpush1.bf16.msra.mxu1 %v13262_v34  ;;  %v13333_v34 = vld [vmem:[#allocation10 + $0x484] ss:$24 sps:$4 sm:$0xff]  }
 0x827   : > { %v11655_v63 = vpop.f32.mrb[85].mxu1  ;;  %9966 = vmatprep.subr.bf16.mxu1 %v13270_v22  ;;  %v13336_v22 = vld [vmem:[#allocation10 + $0x48c] ss:$24 sps:$4 sm:$0xff]  }
 0x828   : > { %v7710_v43 = vpop.f32.mrb[86].mxu1 }
 0x829   : > { %v11656_v33 = vpop.f32.mrb[87].mxu1  ;;  %v13334_v43 = vld [vmem:[#allocation10 + $0x488] ss:$24 sps:$4 sm:$0xff]  }
 0x82a   : > { %9967 = vmatpush1.bf16.msra.mxu1 %v13268_v60  ;;  %v13339_v33 = vld [vmem:[#allocation10 + $0x4b4] ss:$24 sps:$4 sm:$0xff]  }
 0x82b   : > { %9968 = vmatprep.subr.bf16.mxu1 %v13276_v55  ;;  %v13331_v55 = vld [vmem:[#allocation10 + $0x480] ss:$24 sps:$4 sm:$0xff]  }
 0x82e   : > { %v7753_v31 = vpop.f32.mrb[88].mxu1  ;;  %9969 = vmatpush1.bf16.msra.mxu1 %v13274_v44  ;;  %v13342_v44 = vld [vmem:[#allocation10 + $0x4bc] ss:$24 sps:$4 sm:$0xff]  }
 0x82f   : > { %v8040_v45 = vpack.c.bf16 %v7753_v31, %v7753_v31  ;;  %v11661_v20 = vpop.f32.mrb[89].mxu1  ;;  %9970 = vmatprep.subr.bf16.mxu1 %v13282_v24  ;;  %v13337_v24 = vld [vmem:[#allocation10 + $0x4b0] ss:$24 sps:$4 sm:$0xff]  }
 0x830   : > { %v7756_v48 = vpop.f32.mrb[90].mxu1  ;;  %v13340_v31 = vld [vmem:[#allocation10 + $0x4b8] ss:$24 sps:$4 sm:$0xff]  }
 0x831   : > { %8054 = vrot.lane.b32.xlu0 %v8040_v45, %s13902_s25  ;;  %v11662_v10 = vpop.f32.mrb[91].mxu1  ;;  %v13348_v45 = vld [vmem:[#allocation10 + $0x4ec] ss:$24 sps:$4 sm:$0xff]   ;;  %v13343_v20 = vld [vmem:[#allocation10 + $0x4e0] ss:$24 sps:$4 sm:$0xff]  }
 0x832   : > { %9971 = vmatpush1.bf16.msra.mxu1 %v13280_v59  ;;  %v13345_v59 = vld [vmem:[#allocation10 + $0x4e4] ss:$24 sps:$4 sm:$0xff]   ;;  %v13351_v48 = vld [vmem:[#allocation10 + $0x514] ss:$24 sps:$4 sm:$0xff]  }
 0x833   : > { %9981 = vmatprep.subr.bf16.mxu1 %v13288_v46  ;;  %v13346_v46 = vld [vmem:[#allocation10 + $0x4e8] ss:$24 sps:$4 sm:$0xff]   ;;  %v13354_v10 = vld [vmem:[#allocation10 + $0x51c] ss:$24 sps:$4 sm:$0xff]  }
 0x836   : > { %v14652_v62 = vpop.f32.mrb[92].mxu1 }
 0x837   : > { %v11667_v51 = vpop.f32.mrb[93].mxu1 }
 0x838   : > { %v7802_v52 = vpop.f32.mrb[94].mxu1  ;;  %v13349_v51 = vld [vmem:[#allocation10 + $0x510] ss:$24 sps:$4 sm:$0xff]  }
 0x839   : > { %v11668_v2 = vpop.f32.mrb[95].mxu1  ;;  %v13352_v52 = vld [vmem:[#allocation10 + $0x518] ss:$24 sps:$4 sm:$0xff]  }
 0x83a   : > { %v13357_v2 = vld [vmem:[#allocation10 + $0x544] ss:$24 sps:$4 sm:$0xff]  }
 0x83e   : > { %v7845_v37 = vpop.f32.mrb[96].mxu1 }
 0x83f   : > { %v8042_v61 = vpack.c.bf16 %v7845_v37, %v7845_v37  ;;  %v11673_v49 = vpop.f32.mrb[97].mxu1  ;;  %v13360_v37 = vld [vmem:[#allocation10 + $0x54c] ss:$24 sps:$4 sm:$0xff]  }
 0x840   : > { %v7848_v36 = vpop.f32.mrb[98].mxu1  ;;  %v13358_v49 = vld [vmem:[#allocation10 + $0x548] ss:$24 sps:$4 sm:$0xff]  }
 0x841   : > { %8057 = vrot.lane.b32.xlu1 %v8042_v61, %s13902_s25  ;;  %v11674_v41 = vpop.f32.mrb[99].mxu1  ;;  %v13355_v61 = vld [vmem:[#allocation10 + $0x540] ss:$24 sps:$4 sm:$0xff]   ;;  %v13363_v36 = vld [vmem:[#allocation10 + $0x574] ss:$24 sps:$4 sm:$0xff]  }
 0x842   : > { %v13366_v41 = vld [vmem:[#allocation10 + $0x57c] ss:$24 sps:$4 sm:$0xff]  }
 0x85a   : > { %v8049_v0 = vpop.permute.xlu0 %8048 }
 0x85b   : > { %v14663_v26 = vsel %vm6784_vm1, %v8035_v54, %v8049_v0  ;;  %v13364_v0 = vld [vmem:[#allocation10 + $0x578] ss:$24 sps:$4 sm:$0xff]   ;;  %v13369_v54 = vld [vmem:[#allocation10 + $0x5a4] ss:$24 sps:$4 sm:$0xff]  }
 0x86a   : > { %v8052_v1 = vpop.permute.xlu1 %8051 }
 0x86b   : > { %v14660_v23 = vsel %vm6784_vm1, %v8037_v47, %v8052_v1  ;;  %v13361_v47 = vld [vmem:[#allocation10 + $0x570] ss:$24 sps:$4 sm:$0xff]   ;;  %v13372_v1 = vld [vmem:[#allocation10 + $0x5ac] ss:$24 sps:$4 sm:$0xff]  }
 0x86c   : > { %9849 = vmatprep.mubr.bf16.mxu0 %v14660_v23  ;;  %9972 = vmatprep.mubr.bf16.mxu1 %v14660_v23 }
 0x86d   : > { %9850 = vmatmul.mubr.bf16.vlgmr.msra.gmra.mrb[20].mxu0 %v14663_v26  ;;  %9973 = vmatmul.mubr.bf16.vlgmr.msra.gmra.mrb[116].mxu1 %v14663_v26 }
 0x86e   : > { %9859 = vmatpush1.bf16.msra.mxu0 %v13283_v42  ;;  %9982 = vmatpush1.bf16.msra.mxu1 %v13286_v4  ;;  %v13367_v42 = vld [vmem:[#allocation10 + $0x5a0] ss:$24 sps:$4 sm:$0xff]  }
 0x86f   : > { %9860 = vmatprep.subr.bf16.mxu0 %v13291_v28  ;;  %9983 = vmatprep.subr.bf16.mxu1 %v13294_v53  ;;  %v13370_v4 = vld [vmem:[#allocation10 + $0x5a8] ss:$24 sps:$4 sm:$0xff]   ;;  %v13375_v28 = vld [vmem:[#allocation10 + $0x5d4] ss:$24 sps:$4 sm:$0xff]  }
 0x870   : > { %v13378_v53 = vld [vmem:[#allocation10 + $0x5dc] ss:$24 sps:$4 sm:$0xff]  }
 0x872   : > { %9861 = vmatpush1.bf16.msra.mxu0 %v13289_v32  ;;  %9984 = vmatpush1.bf16.msra.mxu1 %v13292_v6  ;;  %v13373_v32 = vld [vmem:[#allocation10 + $0x5d0] ss:$24 sps:$4 sm:$0xff]  }
 0x873   : > { %9862 = vmatprep.subr.bf16.mxu0 %v13297_v9  ;;  %9985 = vmatprep.subr.bf16.mxu1 %v13300_v12  ;;  %v13376_v6 = vld [vmem:[#allocation10 + $0x5d8] ss:$24 sps:$4 sm:$0xff]   ;;  %v13381_v9 = vld [vmem:[#allocation10 + $0x604] ss:$24 sps:$4 sm:$0xff]  }
 0x874   : > { %v13384_v12 = vld [vmem:[#allocation10 + $0x60c] ss:$24 sps:$4 sm:$0xff]  }
 0x876   : > { %9863 = vmatpush1.bf16.msra.mxu0 %v13295_v13  ;;  %9986 = vmatpush1.bf16.msra.mxu1 %v13298_v3  ;;  %v8041_v13 = vpack.c.bf16 %v14652_v62, %v14652_v62 }
 0x877   : > { %9864 = vmatprep.subr.bf16.mxu0 %v13303_v57  ;;  %9987 = vmatprep.subr.bf16.mxu1 %v13306_v14  ;;  %v8039_v57 = vpack.c.bf16 %v14649_v39, %v14649_v39  ;;  %v13385_v39 = vld [vmem:[#allocation10 + $0x630] ss:$24 sps:$4 sm:$0xff]  }
 0x87a   : > { %9865 = vmatpush1.bf16.msra.mxu0 %v13301_v15  ;;  %9988 = vmatpush1.bf16.msra.mxu1 %v13304_v38  ;;  %v13379_v15 = vld [vmem:[#allocation10 + $0x600] ss:$24 sps:$4 sm:$0xff]  }
 0x87b   : > { %9866 = vmatprep.subr.bf16.mxu0 %v13309_v50  ;;  %9989 = vmatprep.subr.bf16.mxu1 %v13312_v35  ;;  %v13382_v38 = vld [vmem:[#allocation10 + $0x608] ss:$24 sps:$4 sm:$0xff]   ;;  %v13387_v35 = vld [vmem:[#allocation10 + $0x634] ss:$24 sps:$4 sm:$0xff]  }
 0x87e   : > { %9867 = vmatpush1.bf16.msra.mxu0 %v13307_v17  ;;  %9990 = vmatpush1.bf16.msra.mxu1 %v13310_v7  ;;  %v13390_v17 = vld [vmem:[#allocation10 + $0x63c] ss:$24 sps:$4 sm:$0xff]  }
 0x87f   : > { %9868 = vmatprep.subr.bf16.mxu0 %v13315_v40  ;;  %9991 = vmatprep.subr.bf16.mxu1 %v13318_v18  ;;  %v13388_v40 = vld [vmem:[#allocation10 + $0x638] ss:$24 sps:$4 sm:$0xff]   ;;  %v13393_v18 = vld [vmem:[#allocation10 + $0x664] ss:$24 sps:$4 sm:$0xff]  }
 0x882   : > { %9869 = vmatpush1.bf16.msra.mxu0 %v13313_v11  ;;  %9992 = vmatpush1.bf16.msra.mxu1 %v13316_v5 }
 0x883   : > { %9870 = vmatprep.subr.bf16.mxu0 %v13321_v21  ;;  %9993 = vmatprep.subr.bf16.mxu1 %v13324_v56  ;;  %v13396_v21 = vld [vmem:[#allocation10 + $0x66c] ss:$24 sps:$4 sm:$0xff]  }
 0x886   : > { %v14669_v30 = vpop.f32.mrb[100].mxu1  ;;  %9871 = vmatpush1.bf16.msra.mxu0 %v13319_v25  ;;  %9994 = vmatpush1.bf16.msra.mxu1 %v13322_v16  ;;  %v13391_v16 = vld [vmem:[#allocation10 + $0x660] ss:$24 sps:$4 sm:$0xff]  }
 0x887   : > { %v11679_v29 = vpop.f32.mrb[101].mxu1  ;;  %9872 = vmatprep.subr.bf16.mxu0 %v13327_v27  ;;  %9995 = vmatprep.subr.bf16.mxu1 %v13330_v19  ;;  %v13394_v27 = vld [vmem:[#allocation10 + $0x668] ss:$24 sps:$4 sm:$0xff]   ;;  %v13399_v19 = vld [vmem:[#allocation10 + $0x694] ss:$24 sps:$4 sm:$0xff]  }
 0x888   : > { %v7894_v60 = vpop.f32.mrb[102].mxu1 }
 0x889   : > { %v11680_v63 = vpop.f32.mrb[103].mxu1 }
 0x88a   : > { %9873 = vmatpush1.bf16.msra.mxu0 %v13325_v8  ;;  %9996 = vmatpush1.bf16.msra.mxu1 %v13328_v58  ;;  %v13402_v8 = vld [vmem:[#allocation10 + $0x69c] ss:$24 sps:$4 sm:$0xff]   ;;  %v13397_v58 = vld [vmem:[#allocation10 + $0x690] ss:$24 sps:$4 sm:$0xff]   ;;  %v13408_v63 = vld [vmem:[#allocation10 + $0x6cc] ss:$24 sps:$4 sm:$0xff]  }
 0x88b   : > { %9874 = vmatprep.subr.bf16.mxu0 %v13333_v34  ;;  %9997 = vmatprep.subr.bf16.mxu1 %v13336_v22  ;;  %v13400_v34 = vld [vmem:[#allocation10 + $0x698] ss:$24 sps:$4 sm:$0xff]   ;;  %v13405_v22 = vld [vmem:[#allocation10 + $0x6c4] ss:$24 sps:$4 sm:$0xff]  }
 0x88e   : > { %9875 = vmatpush1.bf16.msra.mxu0 %v13331_v55  ;;  %9998 = vmatpush1.bf16.msra.mxu1 %v13334_v43 }
 0x88f   : > { %9876 = vmatprep.subr.bf16.mxu0 %v13339_v33  ;;  %9999 = vmatprep.subr.bf16.mxu1 %v13342_v44  ;;  %v13403_v33 = vld [vmem:[#allocation10 + $0x6c0] ss:$24 sps:$4 sm:$0xff]  }
 0x890   : > { %v13406_v44 = vld [vmem:[#allocation10 + $0x6c8] ss:$24 sps:$4 sm:$0xff]  }
 0x892   : > { %9877 = vmatpush1.bf16.msra.mxu0 %v13337_v24  ;;  %10000 = vmatpush1.bf16.msra.mxu1 %v13340_v31  ;;  %v13411_v24 = vld [vmem:[#allocation10 + $0x6f4] ss:$24 sps:$4 sm:$0xff]  }
 0x893   : > { %9878 = vmatprep.subr.bf16.mxu0 %v13345_v59  ;;  %10001 = vmatprep.subr.bf16.mxu1 %v13348_v45  ;;  %v13414_v31 = vld [vmem:[#allocation10 + $0x6fc] ss:$24 sps:$4 sm:$0xff]   ;;  %v13409_v59 = vld [vmem:[#allocation10 + $0x6f0] ss:$24 sps:$4 sm:$0xff]  }
 0x896   : > { %9879 = vmatpush1.bf16.msra.mxu0 %v13343_v20  ;;  %10002 = vmatpush1.bf16.msra.mxu1 %v13346_v46  ;;  %v13412_v20 = vld [vmem:[#allocation10 + $0x6f8] ss:$24 sps:$4 sm:$0xff]   ;;  %v13417_v46 = vld [vmem:[#allocation10 + $0x724] ss:$24 sps:$4 sm:$0xff]  }
 0x897   : > { %9880 = vmatprep.subr.bf16.mxu0 %v13351_v48  ;;  %10003 = vmatprep.subr.bf16.mxu1 %v13354_v10 }
 0x89a   : > { %9881 = vmatpush1.bf16.msra.mxu0 %v13349_v51  ;;  %10004 = vmatpush1.bf16.msra.mxu1 %v13352_v52  ;;  %v13420_v51 = vld [vmem:[#allocation10 + $0x72c] ss:$24 sps:$4 sm:$0xff]  }
 0x89b   : > { %9882 = vmatprep.subr.bf16.mxu0 %v13357_v2  ;;  %10005 = vmatprep.subr.bf16.mxu1 %v13360_v37  ;;  %v13415_v37 = vld [vmem:[#allocation10 + $0x720] ss:$24 sps:$4 sm:$0xff]  }
 0x89e   : > { %9883 = vmatpush1.bf16.msra.mxu0 %v13355_v61  ;;  %10006 = vmatpush1.bf16.msra.mxu1 %v13358_v49  ;;  %v13418_v61 = vld [vmem:[#allocation10 + $0x728] ss:$24 sps:$4 sm:$0xff]   ;;  %v13423_v49 = vld [vmem:[#allocation10 + $0x754] ss:$24 sps:$4 sm:$0xff]  }
 0x89f   : > { %9884 = vmatprep.subr.bf16.mxu0 %v13363_v36  ;;  %10007 = vmatprep.subr.bf16.mxu1 %v13366_v41  ;;  %v13426_v36 = vld [vmem:[#allocation10 + $0x75c] ss:$24 sps:$4 sm:$0xff]   ;;  %v13421_v41 = vld [vmem:[#allocation10 + $0x750] ss:$24 sps:$4 sm:$0xff]  }
 0x8a2   : > { %9885 = vmatpush1.bf16.msra.mxu0 %v13361_v47  ;;  %10008 = vmatpush1.bf16.msra.mxu1 %v13364_v0  ;;  %v13424_v47 = vld [vmem:[#allocation10 + $0x758] ss:$24 sps:$4 sm:$0xff]   ;;  %v13429_v0 = vld [vmem:[#allocation10 + $0x784] ss:$24 sps:$4 sm:$0xff]  }
 0x8a3   : > { %9886 = vmatprep.subr.bf16.mxu0 %v13369_v54  ;;  %10009 = vmatprep.subr.bf16.mxu1 %v13372_v1  ;;  %v8055_v3 = vpop.permute.xlu0 %8054  ;;  %v13432_v54 = vld [vmem:[#allocation10 + $0x78c] ss:$24 sps:$4 sm:$0xff]   ;;  %v13427_v1 = vld [vmem:[#allocation10 + $0x780] ss:$24 sps:$4 sm:$0xff]  }
 0x8a4   : > { %v14679_v7 = vsel %vm6784_vm1, %v8039_v57, %v8055_v3  ;;  %v13447_v3 = vld [vmem:[#allocation10 + $0x814] ss:$24 sps:$4 sm:$0xff]  }
 0x8a5   : > { %v13450_v57 = vld [vmem:[#allocation10 + $0x81c] ss:$24 sps:$4 sm:$0xff]  }
 0x8a6   : > { %9887 = vmatpush1.bf16.msra.mxu0 %v13367_v42  ;;  %10010 = vmatpush1.bf16.msra.mxu1 %v13370_v4  ;;  %v13430_v42 = vld [vmem:[#allocation10 + $0x788] ss:$24 sps:$4 sm:$0xff]   ;;  %v13435_v4 = vld [vmem:[#allocation10 + $0x7b4] ss:$24 sps:$4 sm:$0xff]  }
 0x8a7   : > { %9888 = vmatprep.subr.bf16.mxu0 %v13375_v28  ;;  %10011 = vmatprep.subr.bf16.mxu1 %v13378_v53  ;;  %v13438_v28 = vld [vmem:[#allocation10 + $0x7bc] ss:$24 sps:$4 sm:$0xff]   ;;  %v13433_v53 = vld [vmem:[#allocation10 + $0x7b0] ss:$24 sps:$4 sm:$0xff]  }
 0x8aa   : > { %9889 = vmatpush1.bf16.msra.mxu0 %v13373_v32  ;;  %10012 = vmatpush1.bf16.msra.mxu1 %v13376_v6  ;;  %v13436_v32 = vld [vmem:[#allocation10 + $0x7b8] ss:$24 sps:$4 sm:$0xff]   ;;  %v13441_v6 = vld [vmem:[#allocation10 + $0x7e4] ss:$24 sps:$4 sm:$0xff]  }
 0x8ab   : > { %9899 = vmatprep.subr.bf16.mxu0 %v13381_v9  ;;  %10022 = vmatprep.subr.bf16.mxu1 %v13384_v12  ;;  %v13444_v9 = vld [vmem:[#allocation10 + $0x7ec] ss:$24 sps:$4 sm:$0xff]   ;;  %v13439_v12 = vld [vmem:[#allocation10 + $0x7e0] ss:$24 sps:$4 sm:$0xff]  }
 0x8b3   : > { %v8058_v14 = vpop.permute.xlu1 %8057 }
 0x8b4   : > { %v14676_v50 = vsel %vm6784_vm1, %v8041_v13, %v8058_v14  ;;  %v13442_v13 = vld [vmem:[#allocation10 + $0x7e8] ss:$24 sps:$4 sm:$0xff]  }
 0x8b5   : > { %9890 = vmatprep.mubr.bf16.mxu0 %v14676_v50  ;;  %10013 = vmatprep.mubr.bf16.mxu1 %v14676_v50  ;;  %v13445_v14 = vld [vmem:[#allocation10 + $0x810] ss:$24 sps:$4 sm:$0xff]  }
 0x8b6   : > { %9891 = vmatmul.mubr.bf16.vlgmr.msra.gmra.mrb[20].mxu0 %v14679_v7  ;;  %10014 = vmatmul.mubr.bf16.vlgmr.msra.gmra.mrb[116].mxu1 %v14679_v7 }
 0x8b7   : > { %9900 = vmatpush1.bf16.msra.mxu0 %v13379_v15  ;;  %10023 = vmatpush1.bf16.msra.mxu1 %v13382_v38  ;;  %v13448_v15 = vld [vmem:[#allocation10 + $0x818] ss:$24 sps:$4 sm:$0xff]   ;;  %v13453_v38 = vld [vmem:[#allocation10 + $0x844] ss:$24 sps:$4 sm:$0xff]  }
 0x8b8   : > { %v7937_v62 = vpop.f32.mrb[104].mxu1  ;;  %9901 = vmatprep.subr.bf16.mxu0 %v13387_v35  ;;  %10024 = vmatprep.subr.bf16.mxu1 %v13390_v17  ;;  %v13456_v35 = vld [vmem:[#allocation10 + $0x84c] ss:$24 sps:$4 sm:$0xff]   ;;  %v13451_v17 = vld [vmem:[#allocation10 + $0x840] ss:$24 sps:$4 sm:$0xff]  }
 0x8b9   : > { %v8044_v11 = vpack.c.bf16 %v7937_v62, %v7937_v62  ;;  %v11685_v5 = vpop.f32.mrb[105].mxu1  ;;  %v13459_v62 = vld [vmem:[#allocation10 + $0x874] ss:$24 sps:$4 sm:$0xff]  }
 0x8ba   : > { %v7940_v56 = vpop.f32.mrb[106].mxu1  ;;  %v13465_v5 = vld [vmem:[#allocation10 + $0x8a4] ss:$24 sps:$4 sm:$0xff]  }
 0x8bb   : > { %8060 = vrot.lane.b32.xlu0 %v8044_v11, %s13902_s25  ;;  %v11686_v25 = vpop.f32.mrb[107].mxu1  ;;  %9902 = vmatpush1.bf16.msra.mxu0 %v13385_v39  ;;  %v13454_v39 = vld [vmem:[#allocation10 + $0x848] ss:$24 sps:$4 sm:$0xff]   ;;  %v13460_v11 = vld [vmem:[#allocation10 + $0x878] ss:$24 sps:$4 sm:$0xff]  }
 0x8bc   : > { %10025 = vmatpush1.bf16.msra.mxu1 %v13388_v40  ;;  %9903 = vmatprep.subr.bf16.mxu0 %v13393_v18  ;;  %v13462_v40 = vld [vmem:[#allocation10 + $0x87c] ss:$24 sps:$4 sm:$0xff]   ;;  %v13457_v18 = vld [vmem:[#allocation10 + $0x870] ss:$24 sps:$4 sm:$0xff]   ;;  %v13463_v56 = vld [vmem:[#allocation10 + $0x8a0] ss:$24 sps:$4 sm:$0xff]  }
 0x8bd   : > { %10026 = vmatprep.subr.bf16.mxu1 %v13396_v21  ;;  %v13468_v21 = vld [vmem:[#allocation10 + $0x8ac] ss:$24 sps:$4 sm:$0xff]   ;;  %v13466_v25 = vld [vmem:[#allocation10 + $0x8a8] ss:$24 sps:$4 sm:$0xff]  }
 0x8bf   : > { %9904 = vmatpush1.bf16.msra.mxu0 %v13391_v16  ;;  %v13471_v16 = vld [vmem:[#allocation10 + $0x8d4] ss:$24 sps:$4 sm:$0xff]  }
 0x8c0   : > { %v14686_v29 = vpop.f32.mrb[108].mxu1  ;;  %10027 = vmatpush1.bf16.msra.mxu1 %v13394_v27  ;;  %9905 = vmatprep.subr.bf16.mxu0 %v13399_v19  ;;  %v13474_v27 = vld [vmem:[#allocation10 + $0x8dc] ss:$24 sps:$4 sm:$0xff]   ;;  %v13469_v19 = vld [vmem:[#allocation10 + $0x8d0] ss:$24 sps:$4 sm:$0xff]  }
 0x8c1   : > { %v11691_v60 = vpop.f32.mrb[109].mxu1  ;;  %10028 = vmatprep.subr.bf16.mxu1 %v13402_v8  ;;  %v13472_v8 = vld [vmem:[#allocation10 + $0x8d8] ss:$24 sps:$4 sm:$0xff]  }
 0x8c2   : > { %v7986_v55 = vpop.f32.mrb[110].mxu1  ;;  %v8043_v60 = vpack.c.bf16 %v14669_v30, %v14669_v30  ;;  %v13478_v30 = vld [vmem:[#allocation10 + $0x40] ss:$24 sps:$4 sm:$0xff]  }
 0x8c3   : > { %v11692_v43 = vpop.f32.mrb[111].mxu1  ;;  %9906 = vmatpush1.bf16.msra.mxu0 %v13397_v58  ;;  %v13477_v58 = vld [vmem:[#allocation10 + $0x14] ss:$24 sps:$4 sm:$0xff]   ;;  %v13475_v55 = vld [vmem:[#allocation10 + $0x10] ss:$24 sps:$4 sm:$0xff]  }
 0x8c4   : > { %10029 = vmatpush1.bf16.msra.mxu1 %v13400_v34  ;;  %9907 = vmatprep.subr.bf16.mxu0 %v13405_v22  ;;  %v8045_v34 = vpack.c.bf16 %v14686_v29, %v14686_v29  ;;  %v13483_v29 = vld [vmem:[#allocation10 + $0x74] ss:$24 sps:$4 sm:$0xff]  }
 0x8c5   : > { %10030 = vmatprep.subr.bf16.mxu1 %v13408_v63 }
 0x8c7   : > { %9908 = vmatpush1.bf16.msra.mxu0 %v13403_v33  ;;  %v13480_v33 = vld [vmem:[#allocation10 + $0x44] ss:$24 sps:$4 sm:$0xff]  }
 0x8c8   : > { %v8029_v45 = vpop.f32.mrb[112].mxu1  ;;  %10031 = vmatpush1.bf16.msra.mxu1 %v13406_v44  ;;  %9909 = vmatprep.subr.bf16.mxu0 %v13411_v24  ;;  %v13481_v24 = vld [vmem:[#allocation10 + $0x70] ss:$24 sps:$4 sm:$0xff]  }
 0x8c9   : > { %v8046_v48 = vpack.c.bf16 %v8029_v45, %v8029_v45  ;;  %v11697_v10 = vpop.f32.mrb[113].mxu1  ;;  %10032 = vmatprep.subr.bf16.mxu1 %v13414_v31  ;;  %v13486_v31 = vld [vmem:[#allocation10 + $0xa4] ss:$24 sps:$4 sm:$0xff]   ;;  %v13489_v45 = vld [vmem:[#allocation10 + $0xd4] ss:$24 sps:$4 sm:$0xff]  }
 0x8ca   : > { %v8032_v52 = vpop.f32.mrb[114].mxu1  ;;  %v13495_v10 = vld [vmem:[#allocation10 + $0x134] ss:$24 sps:$4 sm:$0xff]  }
 0x8cb   : > { %8063 = vrot.lane.b32.xlu1 %v8046_v48, %s13902_s25  ;;  %v11698_v2 = vpop.f32.mrb[115].mxu1  ;;  %9910 = vmatpush1.bf16.msra.mxu0 %v13409_v59  ;;  %v13484_v59 = vld [vmem:[#allocation10 + $0xa0] ss:$24 sps:$4 sm:$0xff]  }
 0x8cc   : > { %10033 = vmatpush1.bf16.msra.mxu1 %v13412_v20  ;;  %9911 = vmatprep.subr.bf16.mxu0 %v13417_v46  ;;  %v13487_v20 = vld [vmem:[#allocation10 + $0xd0] ss:$24 sps:$4 sm:$0xff]   ;;  %v13492_v46 = vld [vmem:[#allocation10 + $0x104] ss:$24 sps:$4 sm:$0xff]   ;;  %v13490_v48 = vld [vmem:[#allocation10 + $0x100] ss:$24 sps:$4 sm:$0xff]  }
 0x8cd   : > { %10034 = vmatprep.subr.bf16.mxu1 %v13420_v51  ;;  %v13498_v51 = vld [vmem:[#allocation10 + $0x164] ss:$24 sps:$4 sm:$0xff]   ;;  %v13496_v52 = vld [vmem:[#allocation10 + $0x160] ss:$24 sps:$4 sm:$0xff]   ;;  %v13501_v2 = vld [vmem:[#allocation10 + $0x194] ss:$24 sps:$4 sm:$0xff]  }
 0x8cf   : > { %9912 = vmatpush1.bf16.msra.mxu0 %v13415_v37  ;;  %v13499_v37 = vld [vmem:[#allocation10 + $0x190] ss:$24 sps:$4 sm:$0xff]  }
 0x8d0   : > { %10035 = vmatpush1.bf16.msra.mxu1 %v13418_v61  ;;  %9913 = vmatprep.subr.bf16.mxu0 %v13423_v49  ;;  %v13504_v61 = vld [vmem:[#allocation10 + $0x1c4] ss:$24 sps:$4 sm:$0xff]   ;;  %v13502_v49 = vld [vmem:[#allocation10 + $0x1c0] ss:$24 sps:$4 sm:$0xff]  }
 0x8d1   : > { %10036 = vmatprep.subr.bf16.mxu1 %v13426_v36  ;;  %v13507_v36 = vld [vmem:[#allocation10 + $0x1f4] ss:$24 sps:$4 sm:$0xff]  }
 0x8d3   : > { %9914 = vmatpush1.bf16.msra.mxu0 %v13421_v41  ;;  %v13505_v41 = vld [vmem:[#allocation10 + $0x1f0] ss:$24 sps:$4 sm:$0xff]  }
 0x8d4   : > { %10037 = vmatpush1.bf16.msra.mxu1 %v13424_v47  ;;  %9915 = vmatprep.subr.bf16.mxu0 %v13429_v0  ;;  %v13510_v47 = vld [vmem:[#allocation10 + $0x224] ss:$24 sps:$4 sm:$0xff]   ;;  %v13508_v0 = vld [vmem:[#allocation10 + $0x220] ss:$24 sps:$4 sm:$0xff]  }
 0x8d5   : > { %10038 = vmatprep.subr.bf16.mxu1 %v13432_v54  ;;  %v13513_v54 = vld [vmem:[#allocation10 + $0x254] ss:$24 sps:$4 sm:$0xff]  }
 0x8d7   : > { %9916 = vmatpush1.bf16.msra.mxu0 %v13427_v1  ;;  %v13511_v1 = vld [vmem:[#allocation10 + $0x250] ss:$24 sps:$4 sm:$0xff]  }
 0x8d8   : > { %10039 = vmatpush1.bf16.msra.mxu1 %v13430_v42  ;;  %9917 = vmatprep.subr.bf16.mxu0 %v13435_v4  ;;  %v13516_v42 = vld [vmem:[#allocation10 + $0x284] ss:$24 sps:$4 sm:$0xff]   ;;  %v13514_v4 = vld [vmem:[#allocation10 + $0x280] ss:$24 sps:$4 sm:$0xff]  }
 0x8d9   : > { %10040 = vmatprep.subr.bf16.mxu1 %v13438_v28  ;;  %v13519_v28 = vld [vmem:[#allocation10 + $0x2b4] ss:$24 sps:$4 sm:$0xff]  }
 0x8db   : > { %9918 = vmatpush1.bf16.msra.mxu0 %v13433_v53  ;;  %v13517_v53 = vld [vmem:[#allocation10 + $0x2b0] ss:$24 sps:$4 sm:$0xff]  }
 0x8dc   : > { %10041 = vmatpush1.bf16.msra.mxu1 %v13436_v32  ;;  %9919 = vmatprep.subr.bf16.mxu0 %v13441_v6  ;;  %v13522_v32 = vld [vmem:[#allocation10 + $0x2e4] ss:$24 sps:$4 sm:$0xff]   ;;  %v13520_v6 = vld [vmem:[#allocation10 + $0x2e0] ss:$24 sps:$4 sm:$0xff]  }
 0x8dd   : > { %10042 = vmatprep.subr.bf16.mxu1 %v13444_v9  ;;  %v13525_v9 = vld [vmem:[#allocation10 + $0x314] ss:$24 sps:$4 sm:$0xff]  }
 0x8df   : > { %9920 = vmatpush1.bf16.msra.mxu0 %v13439_v12  ;;  %v13523_v12 = vld [vmem:[#allocation10 + $0x310] ss:$24 sps:$4 sm:$0xff]  }
 0x8e0   : > { %10043 = vmatpush1.bf16.msra.mxu1 %v13442_v13  ;;  %9921 = vmatprep.subr.bf16.mxu0 %v13447_v3  ;;  %v13528_v13 = vld [vmem:[#allocation10 + $0x344] ss:$24 sps:$4 sm:$0xff]   ;;  %v13526_v3 = vld [vmem:[#allocation10 + $0x340] ss:$24 sps:$4 sm:$0xff]  }
 0x8e1   : > { %10044 = vmatprep.subr.bf16.mxu1 %v13450_v57  ;;  %v13531_v57 = vld [vmem:[#allocation10 + $0x374] ss:$24 sps:$4 sm:$0xff]  }
 0x8e3   : > { %9922 = vmatpush1.bf16.msra.mxu0 %v13445_v14  ;;  %v13529_v14 = vld [vmem:[#allocation10 + $0x370] ss:$24 sps:$4 sm:$0xff]  }
 0x8e4   : > { %10045 = vmatpush1.bf16.msra.mxu1 %v13448_v15  ;;  %9923 = vmatprep.subr.bf16.mxu0 %v13453_v38  ;;  %v13534_v15 = vld [vmem:[#allocation10 + $0x3a4] ss:$24 sps:$4 sm:$0xff]   ;;  %v13532_v38 = vld [vmem:[#allocation10 + $0x3a0] ss:$24 sps:$4 sm:$0xff]  }
 0x8e5   : > { %10046 = vmatprep.subr.bf16.mxu1 %v13456_v35  ;;  %v13537_v35 = vld [vmem:[#allocation10 + $0x3d4] ss:$24 sps:$4 sm:$0xff]  }
 0x8e7   : > { %9924 = vmatpush1.bf16.msra.mxu0 %v13451_v17  ;;  %v13535_v17 = vld [vmem:[#allocation10 + $0x3d0] ss:$24 sps:$4 sm:$0xff]  }
 0x8e8   : > { %10047 = vmatpush1.bf16.msra.mxu1 %v13454_v39  ;;  %9925 = vmatprep.subr.bf16.mxu0 %v13459_v62  ;;  %v13540_v39 = vld [vmem:[#allocation10 + $0x404] ss:$24 sps:$4 sm:$0xff]   ;;  %v13543_v62 = vld [vmem:[#allocation10 + $0x434] ss:$24 sps:$4 sm:$0xff]  }
 0x8e9   : > { %10048 = vmatprep.subr.bf16.mxu1 %v13462_v40  ;;  %v13546_v40 = vld [vmem:[#allocation10 + $0x464] ss:$24 sps:$4 sm:$0xff]  }
 0x8eb   : > { %9926 = vmatpush1.bf16.msra.mxu0 %v13457_v18  ;;  %v13544_v18 = vld [vmem:[#allocation10 + $0x460] ss:$24 sps:$4 sm:$0xff]  }
 0x8ec   : > { %10049 = vmatpush1.bf16.msra.mxu1 %v13460_v11  ;;  %9927 = vmatprep.subr.bf16.mxu0 %v13465_v5  ;;  %v13549_v11 = vld [vmem:[#allocation10 + $0x494] ss:$24 sps:$4 sm:$0xff]   ;;  %v13547_v5 = vld [vmem:[#allocation10 + $0x490] ss:$24 sps:$4 sm:$0xff]  }
 0x8ed   : > { %10050 = vmatprep.subr.bf16.mxu1 %v13468_v21  ;;  %v13552_v21 = vld [vmem:[#allocation10 + $0x4c4] ss:$24 sps:$4 sm:$0xff]  }
 0x8ef   : > { %9928 = vmatpush1.bf16.msra.mxu0 %v13463_v56  ;;  %v13550_v56 = vld [vmem:[#allocation10 + $0x4c0] ss:$24 sps:$4 sm:$0xff]  }
 0x8f0   : > { %10051 = vmatpush1.bf16.msra.mxu1 %v13466_v25  ;;  %9929 = vmatprep.subr.bf16.mxu0 %v13471_v16  ;;  %v13555_v25 = vld [vmem:[#allocation10 + $0x4f4] ss:$24 sps:$4 sm:$0xff]   ;;  %v13553_v16 = vld [vmem:[#allocation10 + $0x4f0] ss:$24 sps:$4 sm:$0xff]  }
 0x8f1   : > { %10052 = vmatprep.subr.bf16.mxu1 %v13474_v27  ;;  %v13558_v27 = vld [vmem:[#allocation10 + $0x524] ss:$24 sps:$4 sm:$0xff]  }
 0x8f3   : > { %9930 = vmatpush1.bf16.msra.mxu0 %v13469_v19  ;;  %v13556_v19 = vld [vmem:[#allocation10 + $0x520] ss:$24 sps:$4 sm:$0xff]  }
 0x8f4   : > { %10053 = vmatpush1.bf16.msra.mxu1 %v13472_v8  ;;  %10063 = vmatprep.subr.bf16.mxu0 %v13477_v58  ;;  %v13561_v8 = vld [vmem:[#allocation10 + $0x554] ss:$24 sps:$4 sm:$0xff]   ;;  %v13559_v58 = vld [vmem:[#allocation10 + $0x550] ss:$24 sps:$4 sm:$0xff]  }
 0x92d   : > { %v8061_v22 = vpop.permute.xlu0 %8060 }
 0x92e   : > { %v14697_v44 = vsel %vm6784_vm1, %v8043_v60, %v8061_v22  ;;  %v13562_v22 = vld [vmem:[#allocation10 + $0x580] ss:$24 sps:$4 sm:$0xff]   ;;  %v13567_v60 = vld [vmem:[#allocation10 + $0x5b4] ss:$24 sps:$4 sm:$0xff]  }
 0x93d   : > { %v8064_v63 = vpop.permute.xlu1 %8063 }
 0x93e   : > { %v14694_v43 = vsel %vm6784_vm1, %v8045_v34, %v8064_v63  ;;  %v13564_v34 = vld [vmem:[#allocation10 + $0x584] ss:$24 sps:$4 sm:$0xff]   ;;  %v13565_v63 = vld [vmem:[#allocation10 + $0x5b0] ss:$24 sps:$4 sm:$0xff]  }
 0x93f   : > { %9931 = vmatprep.mubr.bf16.mxu0 %v14694_v43  ;;  %10054 = vmatprep.mubr.bf16.mxu1 %v14694_v43 }
 0x940   : > { %9932 = vmatmul.mubr.bf16.vlgmr.msra.gmra.mrb[20].mxu0 %v14697_v44  ;;  %10055 = vmatmul.mubr.bf16.vlgmr.msra.gmra.mrb[116].mxu1 %v14697_v44 }
 0x941   : > { %10064 = vmatpush1.bf16.msra.mxu0 %v13475_v55  ;;  %10095 = vmatprep.mubr.bf16.mxu0 %v14660_v23  ;;  %v13493_v23 = vld [vmem:[#allocation10 + $0x130] ss:$24 sps:$4 sm:$0xff]   ;;  %v13570_v55 = vld [vmem:[#allocation10 + $0x5e4] ss:$24 sps:$4 sm:$0xff]  }
 0x942   : > { %10065 = vmatprep.subr.bf16.mxu0 %v13480_v33  ;;  %v13568_v33 = vld [vmem:[#allocation10 + $0x5e0] ss:$24 sps:$4 sm:$0xff]  }
 0x945   : > { %10066 = vmatpush1.bf16.msra.mxu0 %v13478_v30  ;;  %v13573_v30 = vld [vmem:[#allocation10 + $0x614] ss:$24 sps:$4 sm:$0xff]  }
 0x946   : > { %10067 = vmatprep.subr.bf16.mxu0 %v13483_v29  ;;  %v13571_v29 = vld [vmem:[#allocation10 + $0x610] ss:$24 sps:$4 sm:$0xff]  }
 0x949   : > { %10068 = vmatpush1.bf16.msra.mxu0 %v13481_v24  ;;  %v13576_v24 = vld [vmem:[#allocation10 + $0x644] ss:$24 sps:$4 sm:$0xff]  }
 0x94a   : > { %10069 = vmatprep.subr.bf16.mxu0 %v13486_v31  ;;  %v13574_v31 = vld [vmem:[#allocation10 + $0x640] ss:$24 sps:$4 sm:$0xff]  }
 0x94d   : > { %10070 = vmatpush1.bf16.msra.mxu0 %v13484_v59  ;;  %v13579_v59 = vld [vmem:[#allocation10 + $0x674] ss:$24 sps:$4 sm:$0xff]  }
 0x94e   : > { %10071 = vmatprep.subr.bf16.mxu0 %v13489_v45  ;;  %v13577_v45 = vld [vmem:[#allocation10 + $0x670] ss:$24 sps:$4 sm:$0xff]  }
 0x951   : > { %10072 = vmatpush1.bf16.msra.mxu0 %v13487_v20  ;;  %v13582_v20 = vld [vmem:[#allocation10 + $0x6a4] ss:$24 sps:$4 sm:$0xff]  }
 0x952   : > { %10073 = vmatprep.subr.bf16.mxu0 %v13492_v46  ;;  %v13580_v46 = vld [vmem:[#allocation10 + $0x6a0] ss:$24 sps:$4 sm:$0xff]  }
 0x955   : > { %10074 = vmatpush1.bf16.msra.mxu0 %v13490_v48  ;;  %v13585_v48 = vld [vmem:[#allocation10 + $0x6d4] ss:$24 sps:$4 sm:$0xff]  }
 0x956   : > { %10075 = vmatprep.subr.bf16.mxu0 %v13495_v10  ;;  %v13583_v10 = vld [vmem:[#allocation10 + $0x6d0] ss:$24 sps:$4 sm:$0xff]  }
 0x959   : > { %10076 = vmatpush1.bf16.msra.mxu0 %v13493_v23  ;;  %v13588_v23 = vld [vmem:[#allocation10 + $0x704] ss:$24 sps:$4 sm:$0xff]  }
 0x95a   : > { %10077 = vmatprep.subr.bf16.mxu0 %v13498_v51  ;;  %v13591_v51 = vld [vmem:[#allocation10 + $0x734] ss:$24 sps:$4 sm:$0xff]  }
 0x95d   : > { %10078 = vmatpush1.bf16.msra.mxu0 %v13496_v52  ;;  %v13594_v52 = vld [vmem:[#allocation10 + $0x764] ss:$24 sps:$4 sm:$0xff]  }
 0x95e   : > { %10079 = vmatprep.subr.bf16.mxu0 %v13501_v2  ;;  %v13592_v2 = vld [vmem:[#allocation10 + $0x760] ss:$24 sps:$4 sm:$0xff]  }
 0x961   : > { %10080 = vmatpush1.bf16.msra.mxu0 %v13499_v37  ;;  %v13597_v37 = vld [vmem:[#allocation10 + $0x794] ss:$24 sps:$4 sm:$0xff]  }
 0x962   : > { %10081 = vmatprep.subr.bf16.mxu0 %v13504_v61  ;;  %v13595_v61 = vld [vmem:[#allocation10 + $0x790] ss:$24 sps:$4 sm:$0xff]  }
 0x965   : > { %10082 = vmatpush1.bf16.msra.mxu0 %v13502_v49  ;;  %v13600_v49 = vld [vmem:[#allocation10 + $0x7c4] ss:$24 sps:$4 sm:$0xff]  }
 0x966   : > { %10083 = vmatprep.subr.bf16.mxu0 %v13507_v36  ;;  %v13598_v36 = vld [vmem:[#allocation10 + $0x7c0] ss:$24 sps:$4 sm:$0xff]  }
 0x969   : > { %10084 = vmatpush1.bf16.msra.mxu0 %v13505_v41  ;;  %v13603_v41 = vld [vmem:[#allocation10 + $0x7f4] ss:$24 sps:$4 sm:$0xff]  }
 0x96a   : > { %10085 = vmatprep.subr.bf16.mxu0 %v13510_v47  ;;  %v13601_v47 = vld [vmem:[#allocation10 + $0x7f0] ss:$24 sps:$4 sm:$0xff]  }
 0x96d   : > { %10086 = vmatpush1.bf16.msra.mxu0 %v13508_v0  ;;  %v13606_v0 = vld [vmem:[#allocation10 + $0x824] ss:$24 sps:$4 sm:$0xff]  }
 0x96e   : > { %10087 = vmatprep.subr.bf16.mxu0 %v13513_v54  ;;  %v13604_v54 = vld [vmem:[#allocation10 + $0x820] ss:$24 sps:$4 sm:$0xff]  }
 0x971   : > { %10088 = vmatpush1.bf16.msra.mxu0 %v13511_v1  ;;  %v13609_v1 = vld [vmem:[#allocation10 + $0x854] ss:$24 sps:$4 sm:$0xff]  }
 0x972   : > { %10089 = vmatprep.subr.bf16.mxu0 %v13516_v42  ;;  %v13607_v42 = vld [vmem:[#allocation10 + $0x850] ss:$24 sps:$4 sm:$0xff]  }
 0x975   : > { %10090 = vmatpush1.bf16.msra.mxu0 %v13514_v4  ;;  %v13612_v4 = vld [vmem:[#allocation10 + $0x884] ss:$24 sps:$4 sm:$0xff]  }
 0x976   : > { %10091 = vmatprep.subr.bf16.mxu0 %v13519_v28  ;;  %v13610_v28 = vld [vmem:[#allocation10 + $0x880] ss:$24 sps:$4 sm:$0xff]  }
 0x979   : > { %10092 = vmatpush1.bf16.msra.mxu0 %v13517_v53  ;;  %v13615_v53 = vld [vmem:[#allocation10 + $0x8b4] ss:$24 sps:$4 sm:$0xff]  }
 0x97a   : > { %10093 = vmatprep.subr.bf16.mxu0 %v13522_v32  ;;  %v13613_v32 = vld [vmem:[#allocation10 + $0x8b0] ss:$24 sps:$4 sm:$0xff]  }
 0x97d   : > { %10094 = vmatpush1.bf16.msra.mxu0 %v13520_v6  ;;  %v13618_v6 = vld [vmem:[#allocation10 + $0x8e4] ss:$24 sps:$4 sm:$0xff]  }
 0x97e   : > { %10104 = vmatprep.subr.bf16.mxu0 %v13525_v9  ;;  %v13616_v9 = vld [vmem:[#allocation10 + $0x8e0] ss:$24 sps:$4 sm:$0xff]  }
 0x980   : > { %10096 = vmatmul.mubr.bf16.vlgmr.msra.gmra.mrb[24].mxu0 %v14663_v26  ;;  %v13538_v26 = vld [vmem:[#allocation10 + $0x400] ss:$24 sps:$4 sm:$0xff]  }
 0x981   : > { %10105 = vmatpush1.bf16.msra.mxu0 %v13523_v12  ;;  %10136 = vmatprep.mubr.bf16.mxu0 %v14676_v50  ;;  %v13541_v50 = vld [vmem:[#allocation10 + $0x430] ss:$24 sps:$4 sm:$0xff]  }
 0x982   : > { %10106 = vmatprep.subr.bf16.mxu0 %v13528_v13 }
 0x985   : > { %10107 = vmatpush1.bf16.msra.mxu0 %v13526_v3 }
 0x986   : > { %10108 = vmatprep.subr.bf16.mxu0 %v13531_v57 }
 0x989   : > { %10109 = vmatpush1.bf16.msra.mxu0 %v13529_v14 }
 0x98a   : > { %10110 = vmatprep.subr.bf16.mxu0 %v13534_v15 }
 0x98d   : > { %10111 = vmatpush1.bf16.msra.mxu0 %v13532_v38 }
 0x98e   : > { %10112 = vmatprep.subr.bf16.mxu0 %v13537_v35 }
 0x991   : > { %10113 = vmatpush1.bf16.msra.mxu0 %v13535_v17 }
 0x992   : > { %10114 = vmatprep.subr.bf16.mxu0 %v13540_v39 }
 0x995   : > { %10115 = vmatpush1.bf16.msra.mxu0 %v13538_v26 }
 0x996   : > { %10116 = vmatprep.subr.bf16.mxu0 %v13543_v62 }
 0x999   : > { %10117 = vmatpush1.bf16.msra.mxu0 %v13541_v50 }
 0x99a   : > { %10118 = vmatprep.subr.bf16.mxu0 %v13546_v40 }
 0x99d   : > { %10119 = vmatpush1.bf16.msra.mxu0 %v13544_v18 }
 0x99e   : > { %10120 = vmatprep.subr.bf16.mxu0 %v13549_v11 }
 0x9a1   : > { %10121 = vmatpush1.bf16.msra.mxu0 %v13547_v5 }
 0x9a2   : > { %10122 = vmatprep.subr.bf16.mxu0 %v13552_v21 }
 0x9a5   : > { %10123 = vmatpush1.bf16.msra.mxu0 %v13550_v56 }
 0x9a6   : > { %10124 = vmatprep.subr.bf16.mxu0 %v13555_v25 }
 0x9a9   : > { %10125 = vmatpush1.bf16.msra.mxu0 %v13553_v16 }
 0x9aa   : > { %10126 = vmatprep.subr.bf16.mxu0 %v13558_v27 }
 0x9ad   : > { %10127 = vmatpush1.bf16.msra.mxu0 %v13556_v19 }
 0x9ae   : > { %10128 = vmatprep.subr.bf16.mxu0 %v13561_v8 }
 0x9b1   : > { %10129 = vmatpush1.bf16.msra.mxu0 %v13559_v58 }
 0x9b2   : > { %10130 = vmatprep.subr.bf16.mxu0 %v13564_v34 }
 0x9b5   : > { %10131 = vmatpush1.bf16.msra.mxu0 %v13562_v22 }
 0x9b6   : > { %10132 = vmatprep.subr.bf16.mxu0 %v13567_v60 }
 0x9b9   : > { %10133 = vmatpush1.bf16.msra.mxu0 %v13565_v63 }
 0x9ba   : > { %10134 = vmatprep.subr.bf16.mxu0 %v13570_v55 }
 0x9bd   : > { %10135 = vmatpush1.bf16.msra.mxu0 %v13568_v33 }
 0x9be   : > { %10145 = vmatprep.subr.bf16.mxu0 %v13573_v30 }
 0x9c0   : > { %10137 = vmatmul.mubr.bf16.vlgmr.msra.gmra.mrb[24].mxu0 %v14679_v7  ;;  %v13586_v7 = vld [vmem:[#allocation10 + $0x700] ss:$24 sps:$4 sm:$0xff]  }
 0x9c1   : > { %10146 = vmatpush1.bf16.msra.mxu0 %v13571_v29  ;;  %10177 = vmatprep.mubr.bf16.mxu0 %v14694_v43  ;;  %v13589_v43 = vld [vmem:[#allocation10 + $0x730] ss:$24 sps:$4 sm:$0xff]  }
 0x9c2   : > { %10147 = vmatprep.subr.bf16.mxu0 %v13576_v24 }
 0x9c5   : > { %10148 = vmatpush1.bf16.msra.mxu0 %v13574_v31 }
 0x9c6   : > { %10149 = vmatprep.subr.bf16.mxu0 %v13579_v59 }
 0x9c9   : > { %10150 = vmatpush1.bf16.msra.mxu0 %v13577_v45 }
 0x9ca   : > { %10151 = vmatprep.subr.bf16.mxu0 %v13582_v20 }
 0x9cd   : > { %10152 = vmatpush1.bf16.msra.mxu0 %v13580_v46 }
 0x9ce   : > { %10153 = vmatprep.subr.bf16.mxu0 %v13585_v48 }
 0x9d1   : > { %10154 = vmatpush1.bf16.msra.mxu0 %v13583_v10 }
 0x9d2   : > { %10155 = vmatprep.subr.bf16.mxu0 %v13588_v23 }
 0x9d5   : > { %10156 = vmatpush1.bf16.msra.mxu0 %v13586_v7 }
 0x9d6   : > { %10157 = vmatprep.subr.bf16.mxu0 %v13591_v51 }
 0x9d9   : > { %10158 = vmatpush1.bf16.msra.mxu0 %v13589_v43 }
 0x9da   : > { %10159 = vmatprep.subr.bf16.mxu0 %v13594_v52 }
 0x9dd   : > { %10160 = vmatpush1.bf16.msra.mxu0 %v13592_v2 }
 0x9de   : > { %10161 = vmatprep.subr.bf16.mxu0 %v13597_v37 }
 0x9e1   : > { %10162 = vmatpush1.bf16.msra.mxu0 %v13595_v61 }
 0x9e2   : > { %10163 = vmatprep.subr.bf16.mxu0 %v13600_v49 }
 0x9e5   : > { %10164 = vmatpush1.bf16.msra.mxu0 %v13598_v36 }
 0x9e6   : > { %10165 = vmatprep.subr.bf16.mxu0 %v13603_v41 }
 0x9e9   : > { %10166 = vmatpush1.bf16.msra.mxu0 %v13601_v47 }
 0x9ea   : > { %10167 = vmatprep.subr.bf16.mxu0 %v13606_v0 }
 0x9ed   : > { %10168 = vmatpush1.bf16.msra.mxu0 %v13604_v54 }
 0x9ee   : > { %10169 = vmatprep.subr.bf16.mxu0 %v13609_v1 }
 0x9f1   : > { %10170 = vmatpush1.bf16.msra.mxu0 %v13607_v42 }
 0x9f2   : > { %10171 = vmatprep.subr.bf16.mxu0 %v13612_v4 }
 0x9f5   : > { %10172 = vmatpush1.bf16.msra.mxu0 %v13610_v28 }
 0x9f6   : > { %10173 = vmatprep.subr.bf16.mxu0 %v13615_v53 }
 0x9f9   : > { %10174 = vmatpush1.bf16.msra.mxu0 %v13613_v32 }
 0x9fa   : > { %10175 = vmatprep.subr.bf16.mxu0 %v13618_v6 }
 0x9fd   : > { %10176 = vmatpush1.bf16.msra.mxu0 %v13616_v9 }
 0xa00   : > { %10178 = vmatmul.mubr.bf16.vlgmr.msra.gmra.mrb[24].mxu0 %v14697_v44 }
 0xa13   : > { %v9933_v12 = vpop.f32.mrb[20].mxu0  ;;  %v10056_v13 = vpop.f32.mrb[116].mxu1 }
 0xa14   : > { %10186 = vst [vmem:[%s294_s28] sm:$0xff] %v9933_v12  ;;  %10188 = vst [vmem:[%s294_s28 + $0x10] sm:$0xff] %v10056_v13  ;;  %v9935_v3 = vpop.f32.mrb[21].mxu0  ;;  %v10058_v57 = vpop.f32.mrb[117].mxu1 }
 0xa15   : > { %10187 = vst [vmem:[%s294_s28 + $0x8] sm:$0xff] %v9935_v3  ;;  %10189 = vst [vmem:[%s294_s28 + $0x18] sm:$0xff] %v10058_v57  ;;  %v9937_v14 = vpop.f32.mrb[22].mxu0  ;;  %v10060_v15 = vpop.f32.mrb[118].mxu1 }
 0xa16   : > { %v9938_v38 = vpop.f32.mrb[23].mxu0  ;;  %v10061_v35 = vpop.f32.mrb[119].mxu1 }
 0xad3   : > { %v10179_v17 = vpop.f32.mrb[24].mxu0 }
 0xad4   : > { %10190 = vst [vmem:[%s294_s28 + $0x20] sm:$0xff] %v10179_v17  ;;  %v10181_v44 = vpop.f32.mrb[25].mxu0 }
 0xad5   : > { %10191 = vst [vmem:[%s294_s28 + $0x28] sm:$0xff] %v10181_v44  ;;  %v10183_v39 = vpop.f32.mrb[26].mxu0 }
 0xad6   : > { %v10184_v26 = vpop.f32.mrb[27].mxu0 }
 0xad7   : > { %13830 = shalt.err (!%p13827_p1)
}
 0xad8   : > { %s13831_s17 = scalar_lea.hbm %s14715_s13, 768  ;;  %s13835_s6 = scalar_lea.hbm %s14764_s5, 1536 }
 0xad9   : > { %p13832_p3 = scmp.ne.s32.totalorder %s14715_s13, %s13831_s17  ;;  %p13836_p0 = scmp.lt.u32.totalorder %s14715_s13, %s14764_s5 }
 0xada   : > { %p13837_p2 = scmp.lt.u32.totalorder %s13835_s6, %s13831_s17  ;;  %p13839_p10 = scmp.lt.u32.totalorder %s13831_s17, %s14715_s13 }
 0xadb   : > { %p13833_p9 = pnand %p13832_p3, %p14781_p6 }
 0xadc   : > { %p13838_p8 = por %p13837_p2, %p13836_p0 }
 0xadd   : > { %p13834_p13 = pneg %p13833_p9 }
 0xade   : > { %p13840_p11 = por %p13839_p10, %p13838_p8 }
 0xae0   : > { %p13841_p12 = pnand %p13840_p11, %p13834_p13 }
 0xae2   : > { %13844 = shalt.err (!%p13841_p12)
}
 0xae3   : > { %11815 = dma.vmem_to_hbm [thread:$0]  (%p14781_p6), %s14717_s30, 768, %s14715_s13, %s10193_s15  }
 0xae4 PF: > { %s10219_s28 = sand.u32 1, %s13879_s18   ;;  %p14782_p5 = scmp.ne.s32.totalorder %s14774_s10, 0 }
 0xae5   : > { %p14783_p7 = scmp.ge.s32.totalorder %s13891_s21, 2  ;;  %s10220_s14 = scalar_lea.sflag [#allocation4], %s10219_s28 }
 0xae7   : > { %p11835_p4 = pnand %p14783_p7, %p14782_p5 }
 0xae9   : > { %13874 = dma.done.wait (!%p11835_p4), %s10220_s14, 768  }
 0xaea   : > { %13876 = vsyncadd (!%p11835_p4), %s10220_s14, 4294966528  ;;  %p20_p1 = scmp.ge.s32.totalorder %s14069_s27, 4   ;;  %s14784_s18 = smov %s13883_s19 }
 0xaeb   : > { %s14785_s19 = smov %s13887_s20  ;;  %s14786_s20 = smov %s14080_s8 }
 0xaec   : > { %s14787_s21 = smov %s14069_s27  ;;  %22 = sbr.rel (!%p20_p1) target bundleno = 7 (0x7), region = 101 }
 0xaf3   :  { %10225 = vsyncpa [#allocation3], 1 }
 0xaf4   :  { %10227 = vsyncpa [#allocation3 + $0x1], 1 }
 0xaf5   :  { %10228 = vsyncpa [#allocation6], 1 }
 0xaf6   :  { %10229 = vsyncpa [#allocation9], 1 }
 0xaf7   :  { %10230 = vsyncpa [#allocation4], 1 }
 0xaf8   :  { %10232 = vsyncpa [#allocation4 + $0x1], 1 }

</bundles_post_ra>
